<compile_context>
chip_gen: v7x
topology: tpu7x:2x2x1
jax: 0.10.0
libtpu: 0.0.40
codegen_flags: <defaults>
</compile_context>

<pallas_src>
import numpy as np
import jax
import jax.numpy as jnp
from jax.experimental import pallas as pl
from jax.experimental.pallas import tpu as pltpu

KSIZE = 7
PAD = (KSIZE - 1) // 2  # 3


def _conv_matrix(w_taps, H, W):
    """Return M of shape (H*W, H*W) such that  z_flat @ M  equals the 'same'
    (zero-padded) 7x7 cross-correlation (PyTorch Conv2d) of the (H, W) map z
    with tap weights w_taps (7x7).  Requires W >= KSIZE so each (src, dst)
    pair maps to at most one tap."""
    HW = H * W
    tap_id = np.zeros((HW, HW), np.int32)  # 0 -> no contribution
    for kh in range(KSIZE):
        dh = kh - PAD
        for kw in range(KSIZE):
            dw = kw - PAD
            t = kh * KSIZE + kw + 1
            for h in range(H):
                hi = h + dh
                if hi < 0 or hi >= H:
                    continue
                for w in range(W):
                    wi = w + dw
                    if wi < 0 or wi >= W:
                        continue
                    tap_id[hi * W + wi, h * W + w] = t
    w_ext = jnp.concatenate(
        [jnp.zeros((1,), jnp.float32), w_taps.astype(jnp.float32).reshape(-1)])
    return w_ext[tap_id]  # (HW, HW) float32


def _attention_gate_kernel(b_ref, x_ref, mmax_ref, msum_ref, o_ref):
    # x_ref: (Bb, C, HW) lane-dense block of the input.
    xv = x_ref[...]

    # --- ZPool: channel max and channel sum (1/C folded into msum weights) ---
    zmax = jnp.max(xv, axis=1).astype(jnp.float32)          # (Bb, HW)
    zsum = jnp.sum(xv.astype(jnp.float32), axis=1)          # (Bb, HW)

    # --- 7x7 conv (+ folded BN scale) as two MXU matmuls, + BN bias ---
    y = (jnp.dot(zmax, mmax_ref[...],
                 preferred_element_type=jnp.float32,
                 precision=jax.lax.Precision.HIGHEST)
         + jnp.dot(zsum, msum_ref[...],
                   preferred_element_type=jnp.float32,
                   precision=jax.lax.Precision.HIGHEST)
         + b_ref[0])                                          # (Bb, HW)

    scale = jax.nn.sigmoid(y)                                 # (Bb, HW) f32

    # --- gate the input in its native dtype; store lane-dense ---
    o_ref[...] = (xv * scale[:, None, :].astype(xv.dtype)).astype(o_ref.dtype)


def _choose_batch_block(N, C, HW, itemsize, target_bytes=4 << 20):
    per_batch = max(1, C * HW * itemsize)
    bb = max(1, min(N, target_bytes // per_batch))
    if N >= 2:                       # keep >= 2 grid steps (v7x: 2 TensorCores)
        bb = min(bb, max(1, N // 2))
    bb = int(bb)
    while N % bb:                    # largest divisor of N not exceeding bb
        bb -= 1
    return bb


def attention_gate(x, conv_w, bn_gamma, bn_beta, bn_mean, bn_var,
                   eps=1e-5, batch_block=None):
    """x: (N, C, H, W). conv_w: (1, 2, 7, 7). BN params: shape (1,). Eval-mode BN."""
    N, C, H, W = x.shape
    HW = H * W
    assert W >= KSIZE, "conv-matrix construction assumes W >= kernel size"

    # Fold eval-mode BatchNorm into conv weights / one bias scalar,
    # and fold 1/C (ZPool mean) into the mean-channel weights.
    bn_scale = bn_gamma / jnp.sqrt(bn_var + eps)                # (1,)
    w_max = conv_w[0, 0] * bn_scale[0]                          # (7, 7)
    w_mean = conv_w[0, 1] * (bn_scale[0] / C)                   # (7, 7)
    bias = (bn_beta - bn_mean * bn_scale).astype(jnp.float32)   # (1,)

    m_max = _conv_matrix(w_max, H, W)   # (HW, HW)
    m_sum = _conv_matrix(w_mean, H, W)  # (HW, HW)

    # Free reshape (contiguous NCHW) to a lane-dense layout.
    x_flat = x.reshape(N, C, HW)

    if batch_block is None:
        batch_block = _choose_batch_block(N, C, HW, x.dtype.itemsize)
    grid = (N // batch_block,)

    block_bytes = batch_block * C * HW * x.dtype.itemsize
    mat_bytes = 2 * HW * HW * 4
    vmem_limit = int(max(32 << 20, 4 * block_bytes + 2 * mat_bytes + (4 << 20)))

    out = pl.pallas_call(
        _attention_gate_kernel,
        out_shape=jax.ShapeDtypeStruct((N, C, HW), x.dtype),
        grid_spec=pltpu.PrefetchScalarGridSpec(
            num_scalar_prefetch=0,
            grid=grid,
            in_specs=[
                pl.BlockSpec((1,), lambda b: (0,),
                             memory_space=pltpu.MemorySpace.SMEM),
                pl.BlockSpec((batch_block, C, HW), lambda b: (b, 0, 0)),
                # Conv matrices: constant block index -> fetched once, resident.
                pl.BlockSpec((HW, HW), lambda b: (0, 0)),
                pl.BlockSpec((HW, HW), lambda b: (0, 0)),
            ],
            out_specs=pl.BlockSpec((batch_block, C, HW), lambda b: (b, 0, 0)),
        ),
        compiler_params=pltpu.CompilerParams(
            dimension_semantics=("parallel",),
            vmem_limit_bytes=vmem_limit),
    )(bias, x_flat, m_max, m_sum)

    return out.reshape(N, C, H, W)


def attention_gate_ref(x, conv_w, bn_gamma, bn_beta, bn_mean, bn_var, eps=1e-5):
    """Pure-JAX reference mirroring the PyTorch forward (BN in eval mode)."""
    zmax = jnp.max(x, axis=1, keepdims=True)
    zmean = jnp.mean(x, axis=1, keepdims=True)
    zc = jnp.concatenate([zmax, zmean], axis=1)  # (N, 2, H, W)
    y = jax.lax.conv_general_dilated(
        zc, conv_w, window_strides=(1, 1), padding=[(PAD, PAD), (PAD, PAD)],
        dimension_numbers=("NCHW", "OIHW", "NCHW"))
    y = (y - bn_mean.reshape(1, -1, 1, 1)) / jnp.sqrt(
        bn_var.reshape(1, -1, 1, 1) + eps)
    y = y * bn_gamma.reshape(1, -1, 1, 1) + bn_beta.reshape(1, -1, 1, 1)
    return x * jax.nn.sigmoid(y)


if __name__ == "__main__":
    key = jax.random.PRNGKey(0)
    k_x, k_w, k_g, k_b, k_m, k_v = jax.random.split(key, 6)

    N, C, H, W = 2, 4, 16, 16
    x = jax.random.normal(k_x, (N, C, H, W), dtype=jnp.float32)

    # Deterministic synthetic parameters (Conv2d(2,1,7,7,bias=False) + BatchNorm2d(1)).
    conv_w = jax.random.normal(k_w, (1, 2, KSIZE, KSIZE), dtype=jnp.float32) * 0.1
    bn_gamma = 1.0 + 0.1 * jax.random.normal(k_g, (1,), dtype=jnp.float32)
    bn_beta = 0.1 * jax.random.normal(k_b, (1,), dtype=jnp.float32)
    bn_mean = 0.1 * jax.random.normal(k_m, (1,), dtype=jnp.float32)
    bn_var = 1.0 + 0.1 * jax.random.uniform(k_v, (1,), dtype=jnp.float32)

    out = attention_gate(x, conv_w, bn_gamma, bn_beta, bn_mean, bn_var)
    out = jax.block_until_ready(out)

    ref = attention_gate_ref(x, conv_w, bn_gamma, bn_beta, bn_mean, bn_var)
    # Tolerance accounts for MXU accumulation order / multi-pass f32 matmul.
    np.testing.assert_allclose(np.asarray(out), np.asarray(ref),
                               rtol=1e-3, atol=2e-3)
    print("KERNEL_OK")
</pallas_src>

<mosaic_0001>
module attributes {stable_mosaic.version = 11 : i64} {
  func.func @_attention_gate_kernel(%arg0: i32, %arg1: memref<1xf32, #tpu.memory_space<smem>>, %arg2: memref<1x4x256xf32, #tpu.memory_space<vmem>>, %arg3: memref<256x256xf32, #tpu.memory_space<vmem>>, %arg4: memref<256x256xf32, #tpu.memory_space<vmem>>, %arg5: memref<1x4x256xf32, #tpu.memory_space<vmem>>) attributes {dimension_semantics = [#tpu.dimension_semantics<parallel>], iteration_bounds = array<i64: 2>, scalar_prefetch = 0 : i64, scratch_operands = 0 : i64, tpu.core_type = #tpu.core_type<tc>, window_params = [{transform_indices = @transform_0, window_bounds = array<i64: 1>}, {transform_indices = @transform_1, window_bounds = array<i64: 1, 4, 256>}, {pipeline_mode = #tpu.pipeline_mode<synchronous>, transform_indices = @transform_2, window_bounds = array<i64: 256, 256>}, {pipeline_mode = #tpu.pipeline_mode<synchronous>, transform_indices = @transform_3, window_bounds = array<i64: 256, 256>}, {transform_indices = @transform_4, window_bounds = array<i64: 1, 4, 256>}]} {
    %c0 = arith.constant 0 : index
    %c0_0 = arith.constant 0 : index
    %c0_1 = arith.constant 0 : index
    %0 = vector.load %arg2[%c0, %c0_0, %c0_1] : memref<1x4x256xf32, #tpu.memory_space<vmem>>, vector<1x4x256xf32>
    %cst = arith.constant dense<0xFF800000> : vector<1x256xf32>
    %1 = vector.multi_reduction <maximumf>, %0, %cst [1] : vector<1x4x256xf32> to vector<1x256xf32>
    %cst_2 = arith.constant dense<0.000000e+00> : vector<1x256xf32>
    %2 = vector.multi_reduction <add>, %0, %cst_2 [1] : vector<1x4x256xf32> to vector<1x256xf32>
    %c0_3 = arith.constant 0 : index
    %c0_4 = arith.constant 0 : index
    %3 = vector.load %arg3[%c0_3, %c0_4] : memref<256x256xf32, #tpu.memory_space<vmem>>, vector<256x256xf32>
    %cst_5 = arith.constant dense<0.000000e+00> : vector<1x256xf32>
    %4 = tpu.matmul %1, %3, %cst_5 {dimension_numbers = #tpu.dot_dimension_numbers<[1], [0], [0], [1], [0, 0, 1, 1], [], []>, precision = #tpu.contract_precision<fp32>} : vector<1x256xf32>, vector<256x256xf32>, vector<1x256xf32> -> vector<1x256xf32>
    %c0_6 = arith.constant 0 : index
    %c0_7 = arith.constant 0 : index
    %5 = vector.load %arg4[%c0_6, %c0_7] : memref<256x256xf32, #tpu.memory_space<vmem>>, vector<256x256xf32>
    %cst_8 = arith.constant dense<0.000000e+00> : vector<1x256xf32>
    %6 = tpu.matmul %2, %5, %cst_8 {dimension_numbers = #tpu.dot_dimension_numbers<[1], [0], [0], [1], [0, 0, 1, 1], [], []>, precision = #tpu.contract_precision<fp32>} : vector<1x256xf32>, vector<256x256xf32>, vector<1x256xf32> -> vector<1x256xf32>
    %7 = arith.addf %4, %6 : vector<1x256xf32>
    %c0_9 = arith.constant 0 : index
    %8 = memref.load %arg1[%c0_9] : memref<1xf32, #tpu.memory_space<smem>>
    %9 = vector.broadcast %8 : f32 to vector<1x256xf32>
    %10 = arith.addf %7, %9 : vector<1x256xf32>
    %11 = arith.negf %10 : vector<1x256xf32>
    %12 = math.exp %11 : vector<1x256xf32>
    %cst_10 = arith.constant 1.000000e+00 : f32
    %13 = vector.broadcast %cst_10 : f32 to vector<1x256xf32>
    %14 = arith.addf %13, %12 : vector<1x256xf32>
    %15 = arith.divf %13, %14 : vector<1x256xf32>
    %16 = vector.shape_cast %15 : vector<1x256xf32> to vector<1x1x256xf32>
    %17 = vector.broadcast %16 : vector<1x1x256xf32> to vector<1x4x256xf32>
    %18 = arith.mulf %0, %17 : vector<1x4x256xf32>
    %c0_11 = arith.constant 0 : index
    %c0_12 = arith.constant 0 : index
    %c0_13 = arith.constant 0 : index
    %19 = vector.load %arg5[%c0_11, %c0_12, %c0_13] : memref<1x4x256xf32, #tpu.memory_space<vmem>>, vector<1x4x256xf32>
    tpu.vector_store %arg5[%c0_11, %c0_12, %c0_13], %18 {strides = array<i32>} : memref<1x4x256xf32, #tpu.memory_space<vmem>>, vector<1x4x256xf32>,
    return
  }
  func.func @transform_0(%arg0: i32) -> i32 {
    %c0_i32 = arith.constant 0 : i32
    %c0_i32_0 = arith.constant 0 : i32
    return %c0_i32 : i32
  }
  func.func @transform_1(%arg0: i32) -> (i32, i32, i32) {
    %c0_i32 = arith.constant 0 : i32
    %c0_i32_0 = arith.constant 0 : i32
    %c0_i32_1 = arith.constant 0 : i32
    return %arg0, %c0_i32, %c0_i32_0 : i32, i32, i32
  }
  func.func @transform_2(%arg0: i32) -> (i32, i32) {
    %c0_i32 = arith.constant 0 : i32
    %c0_i32_0 = arith.constant 0 : i32
    %c0_i32_1 = arith.constant 0 : i32
    return %c0_i32, %c0_i32_0 : i32, i32
  }
  func.func @transform_3(%arg0: i32) -> (i32, i32) {
    %c0_i32 = arith.constant 0 : i32
    %c0_i32_0 = arith.constant 0 : i32
    %c0_i32_1 = arith.constant 0 : i32
    return %c0_i32, %c0_i32_0 : i32, i32
  }
  func.func @transform_4(%arg0: i32) -> (i32, i32, i32) {
    %c0_i32 = arith.constant 0 : i32
    %c0_i32_0 = arith.constant 0 : i32
    %c0_i32_1 = arith.constant 0 : i32
    return %arg0, %c0_i32, %c0_i32_0 : i32, i32, i32
  }
}

</mosaic_0001>

<bundles_post_ra>
// kernel: tpu_custom_call.1
= control target key start
LH: loop header
LB: loop body
LE: loop exit
PB: predicated region body
PF: predicated region fallthrough
CT: control target
= control target key end

     0   :  { %s6056_s0 = inlined_call_operand.<no memory space> [shape: f32[1], index: 0, kind: input, shape index: {}]   ;;  %s6057_s1 = inlined_call_operand.hbm [shape: f32[2,4,256], index: 1, kind: input, shape index: {}]   ;;  %s6058_s2 = inlined_call_operand.hbm [shape: f32[256,256], index: 2, kind: input, shape index: {}]   ;;  %s6059_s3 = inlined_call_operand.hbm [shape: f32[256,256], index: 3, kind: input, shape index: {}]   ;;  %s6060_s4 = inlined_call_operand.hbm [shape: f32[2,4,256], index: 4, kind: output, shape index: {}]  }
   0x1   :  { %9 = sst [smem:[#allocation2]] %s6056_s0 }
   0x2   :  { %10 = vsyncpa [#allocation4], 0 }
   0x3   :  { %12 = vsyncpa [#allocation4 + $0x1], 0 }
   0x4   :  { %13 = vsyncpa [#allocation7], 0 }
   0x5   :  { %14 = vsyncpa [#allocation5], 0 }
   0x6   :  { %16 = vsyncpa [#allocation5 + $0x1], 0  ;;  %s4190_s17 = smov 0   ;;  %s4192_s18 = smov 0  }
   0x7   :  { %s4194_s19 = smov 0   ;;  %s4196_s20 = smov 0  }
   0x8 LB: > { %s4211_s0 = sadd.s32 4294967295, %s4154_s20   ;;  %s3107_s21 = sadd.s32 4294967294, %s4154_s20   ;;  %s4154_s20 = sphi %s4196_s20, %s7361_s20   ;;  %s4150_s19 = sphi %s4194_s19, %s7360_s19   ;;  %s4146_s18 = sphi %s4192_s18, %s7359_s18   ;;  %s4142_s17 = sphi %s4190_s17, %s7358_s17  }
   0x9   : > { %p63_p0 = scmp.ne.s32.totalorder %s4146_s18, %s4142_s17  ;;  %p6061_p1 = scmp.eq.s32.totalorder %s4211_s0, 0 }
   0xa   : > { %p135_p3 = scmp.eq.s32.totalorder %s3107_s21, 1  ;;  %p3108_p5 = scmp.ge.s32.totalorder %s4154_s20, 1 }
   0xb   : > { %p4220_p4 = por %p6061_p1, %p63_p0  ;;  %p142_p7 = scmp.lt.s32.totalorder %s4154_s20, 3 }
   0xc   : > { %p4225_p6 = por %p135_p3, %p63_p0  ;;  %s4156_s25 = smov [#allocation6]  }
   0xd   : > { %s6572_s22 = scalar_select %p4220_p4, 1, 0 }
   0xe   : > { %s6573_s23 = scalar_select %p4225_p6, 1, 0 }
   0xf   : > { %p4230_p8 = pnand %p3108_p5, %p142_p7  ;;  %s157_s26 = sshll.u32 %s4156_s25, 4  ;;  %s4234_s26 = int_to_ptr.vmem [resolvable:$true] %s157_s26 }
  0x10   : > { %s4157_s28 = smov [#allocation8]   ;;  %s3998_s6 = scalar_lea.hbm %s6058_s2, 8192 }
  0x11   : > { %p3931_p9 = pneg %p4230_p8  ;;  %s170_s29 = sshll.u32 %s4157_s28, 4  ;;  %s4245_s29 = int_to_ptr.vmem [resolvable:$true] %s170_s29 }
  0x12   : > { %p3999_p12 = scmp.ne.s32.totalorder %s6058_s2, %s3998_s6  ;;  %p4005_p5 = scmp.lt.u32.totalorder %s3998_s6, %s6058_s2 }
  0x13   : > { %p4241_p11 = pnand %p3931_p9, %p6061_p1 }
  0x15   : > { %p4000_p13 = pneg %p4241_p11 }
  0x17   : > { %p4001_p0 = pnand %p4000_p13, %p3999_p12 }
  0x19   : > { %p4002_p3 = pneg %p4001_p0 }
  0x1b   : > { %p4007_p7 = pnand %p4005_p5, %p4002_p3 }
  0x1d   : > { %4010 = shalt.err (!%p4007_p7)
}
  0x1e   : > { %s4011_s11 = scalar_lea.vmem %s4234_s26, 8192  ;;  %p4019_p2 = scmp.lt.s32.totalorder %s4234_s26, %s4234_s26 }
  0x1f   : > { %p4012_p9 = scmp.ne.s32.totalorder %s4234_s26, %s4011_s11  ;;  %p4020_p12 = scmp.lt.s32.totalorder %s4011_s11, %s4011_s11 }
  0x21   : > { %p4014_p10 = pnand %p4012_p9, %p4000_p13  ;;  %p4021_p0 = por %p4020_p12, %p4019_p2 }
  0x23   : > { %p4015_p1 = pneg %p4014_p10 }
  0x25   : > { %p4022_p6 = pnand %p4021_p0, %p4015_p1 }
  0x27   : > { %4025 = shalt.err (!%p4022_p6)
}
  0x28   : > { %s4158_s12 = smov 256   ;;  %s4159_s13 = smov 16  }
  0x29   : > { %3934 = dma.hbm_to_vmem [thread:$0]  (!%p4241_p11), %s6058_s2, 8192, %s4234_s26, [#allocation7], %s4158_s12, %s4158_s12, %s4159_s13  }
  0x2a   : > { %s4026_s25 = scalar_lea.hbm %s6059_s3, 8192 }
  0x2b   : > { %p4027_p2 = scmp.ne.s32.totalorder %s6059_s3, %s4026_s25  ;;  %p4033_p10 = scmp.lt.u32.totalorder %s4026_s25, %s6059_s3 }
  0x2d   : > { %p4029_p1 = pnand %p4027_p2, %p4000_p13 }
  0x2f   : > { %p4030_p6 = pneg %p4029_p1 }
  0x31   : > { %p4035_p3 = pnand %p4033_p10, %p4030_p6 }
  0x33   : > { %4038 = shalt.err (!%p4035_p3)
}
  0x34   : > { %s4039_s26 = scalar_lea.vmem %s4245_s29, 8192  ;;  %p4047_p12 = scmp.lt.s32.totalorder %s4245_s29, %s4245_s29 }
  0x35   : > { %p4040_p5 = scmp.ne.s32.totalorder %s4245_s29, %s4039_s26  ;;  %p4048_p0 = scmp.lt.s32.totalorder %s4039_s26, %s4039_s26 }
  0x37   : > { %p4042_p7 = pnand %p4040_p5, %p4000_p13  ;;  %p4049_p2 = por %p4048_p0, %p4047_p12 }
  0x39   : > { %p4043_p9 = pneg %p4042_p7 }
  0x3b   : > { %p4050_p1 = pnand %p4049_p2, %p4043_p9 }
  0x3d   : > { %4053 = shalt.err (!%p4050_p1)
}
  0x3e   : > { %3937 = dma.hbm_to_vmem [thread:$0]  (!%p4241_p11), %s6059_s3, 8192, %s4245_s29, [#allocation7], %s4158_s12, %s4158_s12, %s4159_s13  }
  0x3f   : > { %s4300_s9 = sadd.s32 1, %s4154_s20   ;;  %s50_s27 = sadd.s32 1, %s4150_s19 }
  0x40   : > { %s47_s10 = ssub.s32 %s4154_s20, %s4300_s9  ;;  %p57_p13 = scmp.ne.s32.totalorder %s4150_s19, %s4146_s18 }
  0x41   : > { %p48_p6 = scmp.eq.s32.totalorder %s47_s10, 0  ;;  %p58_p10 = scmp.eq.s32.totalorder %s4154_s20, 0 }
  0x42   : > { %p6576_p3 = scmp.eq.s32.totalorder %s4211_s0, 1  ;;  %p3948_p7 = scmp.lt.s32.totalorder %s4154_s20, 2 }
  0x43   : > { %s4316_s14 = scalar_select %p48_p6, %s4150_s19, %s50_s27  }
  0x44   : > { %p4310_p5 = por %p6576_p3, %p57_p13  ;;  %p59_p9 = por %p58_p10, %p57_p13 }
  0x45   : > { %s184_s15 = sand.u32 1, %s4150_s19   ;;  %s3127_s29 = sshll.u32 %s4154_s20, 7 }
  0x46   : > { %s6577_s11 = scalar_select %p4310_p5, 1, 0 }
  0x47   : > { %s3112_s16 = sshll.u32 %s184_s15, 3  ;;  %s4323_s21 = scalar_lea.hbm %s6057_s1, %s3127_s29 }
  0x48   : > { %s188_s25 = scalar_lea.vmem [#allocation3], %s3112_s16  ;;  %p4327_p11 = pnand %p3948_p7, %p59_p9 }
  0x49   : > { %s196_s28 = sshll.u32 %s188_s25, 4  ;;  %s185_s5 = scalar_lea.sflag [#allocation4], %s184_s15  ;;  %s4325_s28 = int_to_ptr.vmem [resolvable:$true] %s196_s28 }
  0x4a   : > { %s4054_s6 = scalar_lea.hbm %s4323_s21, 128  ;;  %p4056_p0 = pneg %p4327_p11 }
  0x4b   : > { %p4055_p12 = scmp.ne.s32.totalorder %s4323_s21, %s4054_s6  ;;  %s4059_s8 = scalar_lea.hbm %s6057_s1, 256 }
  0x4c   : > { %p4060_p13 = scmp.lt.u32.totalorder %s4323_s21, %s6057_s1  ;;  %p4061_p6 = scmp.lt.u32.totalorder %s4059_s8, %s4054_s6 }
  0x4d   : > { %p4057_p2 = pnand %p4056_p0, %p4055_p12  ;;  %p4063_p3 = scmp.lt.u32.totalorder %s4054_s6, %s4323_s21 }
  0x4e   : > { %p4062_p10 = por %p4061_p6, %p4060_p13 }
  0x4f   : > { %p4058_p1 = pneg %p4057_p2 }
  0x50   : > { %p4064_p7 = por %p4063_p3, %p4062_p10 }
  0x52   : > { %p4065_p9 = pnand %p4064_p7, %p4058_p1 }
  0x54   : > { %4068 = shalt.err (!%p4065_p9)
}
  0x55   : > { %s4069_s15 = scalar_lea.vmem %s4325_s28, 128  ;;  %s4160_s16 = smov [#allocation3]  }
  0x56   : > { %p4070_p12 = scmp.ne.s32.totalorder %s4325_s28, %s4069_s15  ;;  %s4074_s29 = sshll.u32 %s4160_s16, 4  ;;  %s4075_s29 = int_to_ptr.vmem [resolvable:$false] %s4074_s29 }
  0x57   : > { %s4076_s12 = scalar_lea.vmem %s4075_s29, 256  ;;  %p4077_p4 = scmp.lt.s32.totalorder %s4325_s28, %s4075_s29 }
  0x58   : > { %p4072_p2 = pnand %p4070_p12, %p4056_p0  ;;  %p4078_p13 = scmp.lt.s32.totalorder %s4076_s12, %s4069_s15 }
  0x5a   : > { %p4073_p5 = pneg %p4072_p2  ;;  %p4079_p6 = por %p4078_p13, %p4077_p4 }
  0x5c   : > { %p4080_p10 = pnand %p4079_p6, %p4073_p5 }
  0x5e   : > { %4083 = shalt.err (!%p4080_p10)
}
  0x5f   : > { %3941 = dma.hbm_to_vmem [thread:$0]  (!%p4327_p11), %s4323_s21, 128, %s4325_s28, %s185_s5  }
  0x60   : > { %205 = sbr.rel (%p4230_p8) target bundleno = 854 (0x356), region = 36 }
  0x67   : > { %s4359_s13 = sand.u32 1, %s4146_s18   ;;  %p6579_p4 = scmp.ne.s32.totalorder %s6572_s22, 0 }
  0x68   : > { %s3116_s25 = sshll.u32 %s4359_s13, 3  ;;  %s208_s6 = scalar_lea.sflag [#allocation4], %s4359_s13 }
  0x69   : > { %s4365_s26 = scalar_lea.vmem [#allocation3], %s3116_s25 }
  0x6a   : > { %4129 = dma.done.wait (%p6579_p4), %s208_s6, 128  }
  0x6b   : > { %4131 = vsyncadd (%p6579_p4), %s208_s6, 4294967168  ;;  %p6580_p5 = scmp.eq.s32.totalorder %s4211_s0, 0 }
  0x6d   : > { %4133 = dma.done.wait (%p6580_p5), [#allocation7], 16384   ;;  %p6581_p8 = pmov %p6580_p5 }
  0x6e   : > { %v342_v0 = vld [vmem:[#allocation8 + $0x8] sm:$0xff]  ;;  %v344_v1 = vld [vmem:[#allocation8 + $0x18] sm:$0xff]  ;;  %v341_v7 = vld [vmem:[#allocation8] sm:$0xff]  ;;  %vm248_vm0 = vcmask 1043456   ;;  %s2973_s22 = sld [smem:[#allocation2]]  ;;  %s3128_s24 = sshll.u32 %s4211_s0, 7 }
  0x6f   : > { %4135 = vsyncadd (%p6581_p8), [#allocation7], 4294950912  ;;  %v278_v2 = vld [vmem:[#allocation6 + $0x8] sm:$0xff]  ;;  %v405_v3 = vand.u32 4294901760, %v342_v0  ;;  %v409_v4 = vand.u32 4294901760, %v344_v1  ;;  %v280_v5 = vld [vmem:[#allocation6 + $0x18] sm:$0xff]  ;;  %s6012_s7 = scalar_lea.hbm %s6060_s4, %s3128_s24 }
  0x70   : > { %v1689_v6 = vand.u32 4294901760, %v278_v2  ;;  %v343_v8 = vld [vmem:[#allocation8 + $0x10] sm:$0xff]  ;;  %v1693_v9 = vand.u32 4294901760, %v280_v5  ;;  %v407_v10 = vand.u32 4294901760, %v341_v7  ;;  %v277_v12 = vld [vmem:[#allocation6] sm:$0xff]  ;;  %v346_v14 = vld [vmem:[#allocation8 + $0x28] sm:$0xff] }
  0x71   : > { %v411_v11 = vand.u32 4294901760, %v343_v8  ;;  %v279_v13 = vld [vmem:[#allocation6 + $0x10] sm:$0xff]  ;;  %v4375_v15 = vpack.c.bf16 %v409_v4, %v405_v3  ;;  %v4377_v16 = vsub.f32 %v342_v0, %v405_v3  ;;  %v4379_v17 = vsub.f32 %v344_v1, %v409_v4  ;;  %v348_v19 = vld [vmem:[#allocation8 + $0x38] sm:$0xff]  ;;  %v282_v20 = vld [vmem:[#allocation6 + $0x28] sm:$0xff]  ;;  %s243_s21 = scalar_lea.vmem [#allocation9], %s3116_s25  ;;  %s3004_s8 = scalar_lea.sflag [#allocation5], %s4359_s13 }
  0x72   : > { %v4381_v18 = vsub.f32 %v278_v2, %v1689_v6  ;;  %v284_v21 = vld [vmem:[#allocation6 + $0x38] sm:$0xff]  ;;  %v4383_v22 = vpack.c.bf16 %v1693_v9, %v1689_v6  ;;  %v4385_v23 = vsub.f32 %v280_v5, %v1693_v9  ;;  %v4389_v25 = vsub.f32 %v341_v7, %v407_v10  ;;  %v345_v26 = vld [vmem:[#allocation8 + $0x20] sm:$0xff]  ;;  %v347_v31 = vld [vmem:[#allocation8 + $0x30] sm:$0xff]  ;;  %s3018_s28 = sshll.u32 %s243_s21, 4  ;;  %p7355_p0 = scmp.ne.s32.totalorder %s6577_s11, 0  ;;  %s6014_s28 = int_to_ptr.vmem [resolvable:$true] %s3018_s28 }
  0x73   : > { %6582 = vst [vmem:[#allocation13_spill] sm:$0xff] %v4375_v15  ;;  %6583 = vst [vmem:[#allocation14_spill] sm:$0xff] %v4377_v16  ;;  %v4387_v24 = vpack.c.bf16 %v411_v11, %v407_v10  ;;  %3130 = vmatprep.subr.bf16.mxu1 %v4375_v15  ;;  %v4392_v27 = vsub.f32 %v343_v8, %v411_v11  ;;  %v1691_v28 = vand.u32 4294901760, %v277_v12  ;;  %v1695_v29 = vand.u32 4294901760, %v279_v13  ;;  %v281_v36 = vld [vmem:[#allocation6 + $0x20] sm:$0xff]  ;;  %v283_v37 = vld [vmem:[#allocation6 + $0x30] sm:$0xff] }
  0x74   : > { %6584 = vst [vmem:[#allocation15_spill] sm:$0xff] %v4379_v17  ;;  %6585 = vst [vmem:[#allocation16_spill] sm:$0xff] %v4381_v18  ;;  %v413_v30 = vand.u32 4294901760, %v346_v14  ;;  %3514 = vmatprep.subr.bf16.mxu0 %v4383_v22  ;;  %v417_v32 = vand.u32 4294901760, %v348_v19  ;;  %v1697_v33 = vand.u32 4294901760, %v282_v20  ;;  %v1701_v34 = vand.u32 4294901760, %v284_v21 }
  0x75   : > { %6586 = vst [vmem:[#allocation17_spill] sm:$0xff] %v4383_v22  ;;  %6587 = vst [vmem:[#allocation18_spill] sm:$0xff] %v4385_v23  ;;  %3132 = vmatpush1.bf16.msra.mxu1 %v4387_v24  ;;  %v415_v35 = vand.u32 4294901760, %v345_v26  ;;  %v4396_v38 = vpack.c.bf16 %v1695_v29, %v1691_v28  ;;  %v4398_v39 = vsub.f32 %v277_v12, %v1691_v28  ;;  %v350_v42 = vld [vmem:[#allocation8 + $0x48] sm:$0xff]  ;;  %v352_v43 = vld [vmem:[#allocation8 + $0x58] sm:$0xff]  ;;  %v419_v51 = vand.u32 4294901760, %v347_v31 }
  0x76   : > { %6588 = vst [vmem:[#allocation19_spill] sm:$0xff] %v4387_v24  ;;  %6589 = vst [vmem:[#allocation20_spill] sm:$0xff] %v4389_v25  ;;  %v4400_v40 = vsub.f32 %v279_v13, %v1695_v29  ;;  %v4402_v41 = vsub.f32 %v346_v14, %v413_v30  ;;  %v286_v44 = vld [vmem:[#allocation6 + $0x48] sm:$0xff]  ;;  %v4404_v45 = vpack.c.bf16 %v417_v32, %v413_v30  ;;  %v288_v49 = vld [vmem:[#allocation6 + $0x58] sm:$0xff]  ;;  %v1699_v53 = vand.u32 4294901760, %v281_v36  ;;  %s4084_s27 = scalar_lea.vmem %s6014_s28, 128 }
  0x77   : > { %6590 = vst [vmem:[#allocation21_spill] sm:$0xff] %v4392_v27  ;;  %6591 = vst [vmem:[#allocation22_spill] sm:$0xff] %v4396_v38  ;;  %v4406_v46 = vsub.f32 %v348_v19, %v417_v32  ;;  %v4408_v47 = vpack.c.bf16 %v1701_v34, %v1697_v33  ;;  %v4410_v48 = vsub.f32 %v282_v20, %v1697_v33  ;;  %3516 = vmatpush1.bf16.msra.mxu0 %v4396_v38  ;;  %v349_v58 = vld [vmem:[#allocation8 + $0x40] sm:$0xff]  ;;  %v351_v59 = vld [vmem:[#allocation8 + $0x50] sm:$0xff]  ;;  %p4085_p11 = scmp.ne.s32.totalorder %s6014_s28, %s4084_s27  ;;  %s4161_s0 = smov [#allocation9]  }
  0x78   : > { %6592 = vst [vmem:[#allocation23_spill] sm:$0xff] %v4398_v39  ;;  %6593 = vst [vmem:[#allocation24_spill] sm:$0xff] %v4400_v40  ;;  %v4413_v50 = vsub.f32 %v284_v21, %v1701_v34  ;;  %v4415_v52 = vsub.f32 %v345_v26, %v415_v35  ;;  %3134 = vmatprep.subr.bf16.mxu1 %v4404_v45  ;;  %v1703_v54 = vand.u32 4294901760, %v283_v37  ;;  %v421_v55 = vand.u32 4294901760, %v350_v42  ;;  %v285_v0 = vld [vmem:[#allocation6 + $0x40] sm:$0xff]  ;;  %v287_v1 = vld [vmem:[#allocation6 + $0x50] sm:$0xff] }
  0x79   : > { %6594 = vst [vmem:[#allocation25_spill] sm:$0xff] %v4402_v41  ;;  %6595 = vst [vmem:[#allocation26_spill] sm:$0xff] %v4404_v45  ;;  %3518 = vmatprep.subr.bf16.mxu0 %v4408_v47  ;;  %v425_v56 = vand.u32 4294901760, %v352_v43  ;;  %v1705_v57 = vand.u32 4294901760, %v286_v44  ;;  %v4419_v60 = vpack.c.bf16 %v419_v51, %v415_v35  ;;  %v4421_v61 = vsub.f32 %v347_v31, %v419_v51  ;;  %v354_v2 = vld [vmem:[#allocation8 + $0x68] sm:$0xff]  ;;  %v356_v7 = vld [vmem:[#allocation8 + $0x78] sm:$0xff]  ;;  %p4086_p1 = pnand %p4085_p11, %p7355_p0 }
  0x7a   : > { %6596 = vst [vmem:[#allocation27_spill] sm:$0xff] %v4406_v46  ;;  %6597 = vst [vmem:[#allocation28_spill] sm:$0xff] %v4408_v47  ;;  %v4423_v62 = vsub.f32 %v281_v36, %v1699_v53  ;;  %v1709_v63 = vand.u32 4294901760, %v288_v49  ;;  %v4425_v3 = vpack.c.bf16 %v1703_v54, %v1699_v53  ;;  %v4427_v4 = vsub.f32 %v283_v37, %v1703_v54  ;;  %v290_v8 = vld [vmem:[#allocation6 + $0x68] sm:$0xff]  ;;  %v292_v9 = vld [vmem:[#allocation6 + $0x78] sm:$0xff]  ;;  %s4088_s10 = sshll.u32 %s4161_s0, 4  ;;  %s4089_s10 = int_to_ptr.vmem [resolvable:$false] %s4088_s10 }
  0x7b   : > { %6598 = vst [vmem:[#allocation29_spill] sm:$0xff] %v4410_v48  ;;  %6599 = vst [vmem:[#allocation30_spill] sm:$0xff] %v4413_v50  ;;  %v4429_v5 = vpack.c.bf16 %v425_v56, %v421_v55  ;;  %v4431_v6 = vsub.f32 %v350_v42, %v421_v55  ;;  %3136 = vmatpush1.bf16.msra.mxu1 %v4419_v60  ;;  %v4434_v10 = vsub.f32 %v352_v43, %v425_v56  ;;  %v353_v31 = vld [vmem:[#allocation8 + $0x60] sm:$0xff]  ;;  %v355_v36 = vld [vmem:[#allocation8 + $0x70] sm:$0xff]  ;;  %p4087_p3 = pneg %p4086_p1  ;;  %s4090_s15 = scalar_lea.vmem %s4089_s10, 256 }
  0x7c   : > { %6600 = vst [vmem:[#allocation31_spill] sm:$0xff] %v4415_v52  ;;  %6601 = vst [vmem:[#allocation32_spill] sm:$0xff] %v4419_v60  ;;  %v4436_v11 = vpack.c.bf16 %v1709_v63, %v1705_v57  ;;  %v4438_v12 = vsub.f32 %v286_v44, %v1705_v57  ;;  %v4440_v13 = vsub.f32 %v288_v49, %v1709_v63  ;;  %3520 = vmatpush1.bf16.msra.mxu0 %v4425_v3  ;;  %v289_v37 = vld [vmem:[#allocation6 + $0x60] sm:$0xff]  ;;  %v291_v42 = vld [vmem:[#allocation6 + $0x70] sm:$0xff]  ;;  %p4091_p7 = scmp.lt.s32.totalorder %s6014_s28, %s4089_s10  ;;  %p4092_p9 = scmp.lt.s32.totalorder %s4090_s15, %s4084_s27 }
  0x7d   : > { %6602 = vst [vmem:[#allocation33_spill] sm:$0xff] %v4421_v61  ;;  %6603 = vst [vmem:[#allocation34_spill] sm:$0xff] %v4423_v62  ;;  %3138 = vmatprep.subr.bf16.mxu1 %v4429_v5  ;;  %v423_v14 = vand.u32 4294901760, %v349_v58  ;;  %v427_v19 = vand.u32 4294901760, %v351_v59  ;;  %v1707_v20 = vand.u32 4294901760, %v285_v0  ;;  %v1711_v21 = vand.u32 4294901760, %v287_v1 }
  0x7e   : > { %6604 = vst [vmem:[#allocation35_spill] sm:$0xff] %v4425_v3  ;;  %6605 = vst [vmem:[#allocation36_spill] sm:$0xff] %v4427_v4  ;;  %3522 = vmatprep.subr.bf16.mxu0 %v4436_v11  ;;  %v429_v26 = vand.u32 4294901760, %v354_v2  ;;  %v433_v28 = vand.u32 4294901760, %v356_v7  ;;  %v1713_v29 = vand.u32 4294901760, %v290_v8  ;;  %v1717_v30 = vand.u32 4294901760, %v292_v9  ;;  %p4093_p12 = por %p4092_p9, %p4091_p7 }
  0x7f   : > { %6606 = vst [vmem:[#allocation37_spill] sm:$0xff] %v4429_v5  ;;  %6607 = vst [vmem:[#allocation38_spill] sm:$0xff] %v4431_v6  ;;  %v4445_v32 = vpack.c.bf16 %v427_v19, %v423_v14  ;;  %v4447_v33 = vsub.f32 %v349_v58, %v423_v14  ;;  %v4449_v34 = vsub.f32 %v351_v59, %v427_v19  ;;  %v358_v53 = vld [vmem:[#allocation8 + $0x88] sm:$0xff]  ;;  %v360_v54 = vld [vmem:[#allocation8 + $0x98] sm:$0xff]  ;;  %v431_v59 = vand.u32 4294901760, %v353_v31 }
  0x80   : > { %6608 = vst [vmem:[#allocation39_spill] sm:$0xff] %v4434_v10  ;;  %6609 = vst [vmem:[#allocation40_spill] sm:$0xff] %v4436_v11  ;;  %v4451_v35 = vpack.c.bf16 %v1711_v21, %v1707_v20  ;;  %v4453_v43 = vsub.f32 %v285_v0, %v1707_v20  ;;  %v4455_v44 = vsub.f32 %v287_v1, %v1711_v21  ;;  %v294_v55 = vld [vmem:[#allocation6 + $0x88] sm:$0xff]  ;;  %v435_v0 = vand.u32 4294901760, %v355_v36  ;;  %v296_v14 = vld [vmem:[#allocation6 + $0x98] sm:$0xff]  ;;  %p4094_p2 = pnand %p4093_p12, %p4087_p3 }
  0x81   : > { %6610 = vst [vmem:[#allocation41_spill] sm:$0xff] %v4438_v12  ;;  %6611 = vst [vmem:[#allocation42_spill] sm:$0xff] %v4440_v13  ;;  %v4457_v49 = vpack.c.bf16 %v433_v28, %v429_v26  ;;  %v4459_v51 = vsub.f32 %v354_v2, %v429_v26  ;;  %3140 = vmatpush1.bf16.msra.mxu1 %v4445_v32  ;;  %v4463_v56 = vsub.f32 %v356_v7, %v433_v28  ;;  %v357_v26 = vld [vmem:[#allocation8 + $0x80] sm:$0xff]  ;;  %v359_v28 = vld [vmem:[#allocation8 + $0x90] sm:$0xff] }
  0x82   : > { %6612 = vst [vmem:[#allocation43_spill] sm:$0xff] %v4445_v32  ;;  %6613 = vst [vmem:[#allocation44_spill] sm:$0xff] %v4447_v33  ;;  %3524 = vmatpush1.bf16.msra.mxu0 %v4451_v35  ;;  %v4465_v57 = vpack.c.bf16 %v1717_v30, %v1713_v29  ;;  %v4467_v58 = vsub.f32 %v290_v8, %v1713_v29  ;;  %v4470_v63 = vsub.f32 %v292_v9, %v1717_v30  ;;  %v293_v8 = vld [vmem:[#allocation6 + $0x80] sm:$0xff]  ;;  %v362_v32 = vld [vmem:[#allocation8 + $0xa8] sm:$0xff] }
  0x83   : > { %6614 = vst [vmem:[#allocation45_spill] sm:$0xff] %v4449_v34  ;;  %6615 = vst [vmem:[#allocation46_spill] sm:$0xff] %v4451_v35  ;;  %3142 = vmatprep.subr.bf16.mxu1 %v4457_v49  ;;  %v1715_v1 = vand.u32 4294901760, %v289_v37  ;;  %v1719_v2 = vand.u32 4294901760, %v291_v42  ;;  %v4473_v19 = vsub.f32 %v353_v31, %v431_v59  ;;  %v437_v20 = vand.u32 4294901760, %v358_v53  ;;  %v364_v11 = vld [vmem:[#allocation8 + $0xb8] sm:$0xff] }
  0x84   : > { %6616 = vst [vmem:[#allocation47_spill] sm:$0xff] %v4453_v43  ;;  %6617 = vst [vmem:[#allocation48_spill] sm:$0xff] %v4455_v44  ;;  %3526 = vmatprep.subr.bf16.mxu0 %v4465_v57  ;;  %v441_v7 = vand.u32 4294901760, %v360_v54  ;;  %v1721_v21 = vand.u32 4294901760, %v294_v55  ;;  %v4475_v29 = vpack.c.bf16 %v435_v0, %v431_v59  ;;  %v4477_v35 = vsub.f32 %v355_v36, %v435_v0  ;;  %v298_v47 = vld [vmem:[#allocation6 + $0xa8] sm:$0xff]  ;;  %v297_v45 = vld [vmem:[#allocation6 + $0xa0] sm:$0xff] }
  0x85   : > { %6618 = vst [vmem:[#allocation49_spill] sm:$0xff] %v4457_v49  ;;  %6619 = vst [vmem:[#allocation50_spill] sm:$0xff] %v4459_v51  ;;  %v4479_v9 = vpack.c.bf16 %v1719_v2, %v1715_v1  ;;  %v4481_v30 = vsub.f32 %v289_v37, %v1715_v1  ;;  %v295_v49 = vld [vmem:[#allocation6 + $0x90] sm:$0xff]  ;;  %v4487_v5 = vsub.f32 %v358_v53, %v437_v20  ;;  %v1725_v36 = vand.u32 4294901760, %v296_v14  ;;  %v300_v53 = vld [vmem:[#allocation6 + $0xb8] sm:$0xff] }
  0x86   : > { %6620 = vst [vmem:[#allocation51_spill] sm:$0xff] %v4463_v56  ;;  %6621 = vst [vmem:[#allocation52_spill] sm:$0xff] %v4465_v57  ;;  %v4483_v57 = vsub.f32 %v291_v42, %v1719_v2  ;;  %v4485_v31 = vpack.c.bf16 %v441_v7, %v437_v20  ;;  %v4489_v3 = vsub.f32 %v360_v54, %v441_v7  ;;  %3144 = vmatpush1.bf16.msra.mxu1 %v4475_v29  ;;  %v299_v15 = vld [vmem:[#allocation6 + $0xb0] sm:$0xff] }
  0x87   : > { %6622 = vst [vmem:[#allocation53_spill] sm:$0xff] %v4467_v58  ;;  %6623 = vst [vmem:[#allocation54_spill] sm:$0xff] %v4470_v63  ;;  %3528 = vmatpush1.bf16.msra.mxu0 %v4479_v9  ;;  %v4493_v59 = vsub.f32 %v294_v55, %v1721_v21  ;;  %v439_v37 = vand.u32 4294901760, %v357_v26  ;;  %v443_v0 = vand.u32 4294901760, %v359_v28  ;;  %v1723_v1 = vand.u32 4294901760, %v293_v8  ;;  %v361_v55 = vld [vmem:[#allocation8 + $0xa0] sm:$0xff] }
  0x88   : > { %6624 = vst [vmem:[#allocation55_spill] sm:$0xff] %v4473_v19  ;;  %6625 = vst [vmem:[#allocation56_spill] sm:$0xff] %v4475_v29  ;;  %3146 = vmatprep.subr.bf16.mxu1 %v4485_v31  ;;  %v1727_v42 = vand.u32 4294901760, %v295_v49  ;;  %v445_v2 = vand.u32 4294901760, %v362_v32  ;;  %v449_v60 = vand.u32 4294901760, %v364_v11  ;;  %v4496_v20 = vpack.c.bf16 %v1725_v36, %v1721_v21  ;;  %v363_v29 = vld [vmem:[#allocation8 + $0xb0] sm:$0xff] }
  0x89   : > { %6626 = vst [vmem:[#allocation57_spill] sm:$0xff] %v4477_v35  ;;  %6627 = vst [vmem:[#allocation58_spill] sm:$0xff] %v4479_v9  ;;  %v4498_v54 = vsub.f32 %v296_v14, %v1725_v36  ;;  %v4500_v7 = vpack.c.bf16 %v443_v0, %v439_v37  ;;  %v4502_v9 = vsub.f32 %v357_v26, %v439_v37  ;;  %v366_v21 = vld [vmem:[#allocation8 + $0xc8] sm:$0xff]  ;;  %v447_v37 = vand.u32 4294901760, %v361_v55 }
  0x8a   : > { %6628 = vst [vmem:[#allocation59_spill] sm:$0xff] %v4481_v30  ;;  %6629 = vst [vmem:[#allocation60_spill] sm:$0xff] %v4483_v57  ;;  %v4504_v38 = vsub.f32 %v359_v28, %v443_v0  ;;  %v4508_v24 = vsub.f32 %v293_v8, %v1723_v1  ;;  %v4510_v22 = vsub.f32 %v295_v49, %v1727_v42  ;;  %3530 = vmatprep.subr.bf16.mxu0 %v4496_v20 }
  0x8b   : > { %6630 = vst [vmem:[#allocation61_spill] sm:$0xff] %v4485_v31  ;;  %6631 = vst [vmem:[#allocation62_spill] sm:$0xff] %v4487_v5  ;;  %v4506_v31 = vpack.c.bf16 %v1727_v42, %v1723_v1  ;;  %3148 = vmatpush1.bf16.msra.mxu1 %v4500_v7  ;;  %v4514_v14 = vpack.c.bf16 %v449_v60, %v445_v2  ;;  %v4516_v26 = vsub.f32 %v362_v32, %v445_v2 }
  0x8c   : > { %6632 = vst [vmem:[#allocation63_spill] sm:$0xff] %v4489_v3  ;;  %6633 = vst [vmem:[#allocation64_spill] sm:$0xff] %v4493_v59  ;;  %v368_v59 = vld [vmem:[#allocation8 + $0xd8] sm:$0xff]  ;;  %v4518_v36 = vsub.f32 %v364_v11, %v449_v60  ;;  %v1729_v28 = vand.u32 4294901760, %v298_v47  ;;  %v1733_v8 = vand.u32 4294901760, %v300_v53  ;;  %v451_v49 = vand.u32 4294901760, %v363_v29 }
  0x8d   : > { %6634 = vst [vmem:[#allocation65_spill] sm:$0xff] %v4496_v20  ;;  %6635 = vst [vmem:[#allocation66_spill] sm:$0xff] %v4498_v54  ;;  %3532 = vmatpush1.bf16.msra.mxu0 %v4506_v31  ;;  %v1731_v0 = vand.u32 4294901760, %v297_v45  ;;  %3150 = vmatprep.subr.bf16.mxu1 %v4514_v14  ;;  %v1735_v42 = vand.u32 4294901760, %v299_v15  ;;  %v453_v20 = vand.u32 4294901760, %v366_v21  ;;  %v4530_v2 = vsub.f32 %v361_v55, %v447_v37  ;;  %v372_v54 = vld [vmem:[#allocation8 + $0xf8] sm:$0xff] }
  0x8e   : > { %6636 = vst [vmem:[#allocation67_spill] sm:$0xff] %v4500_v7  ;;  %6637 = vst [vmem:[#allocation68_spill] sm:$0xff] %v4502_v9  ;;  %v4522_v1 = vsub.f32 %v298_v47, %v1729_v28  ;;  %v457_v7 = vand.u32 4294901760, %v368_v59  ;;  %v4524_v32 = vpack.c.bf16 %v1733_v8, %v1729_v28  ;;  %v4526_v60 = vsub.f32 %v300_v53, %v1733_v8  ;;  %v303_v9 = vld [vmem:[#allocation6 + $0xd0] sm:$0xff]  ;;  %v370_v28 = vld [vmem:[#allocation8 + $0xe8] sm:$0xff] }
  0x8f   : > { %6638 = vst [vmem:[#allocation69_spill] sm:$0xff] %v4504_v38  ;;  %6639 = vst [vmem:[#allocation70_spill] sm:$0xff] %v4506_v31  ;;  %v4528_v11 = vpack.c.bf16 %v451_v49, %v447_v37  ;;  %v365_v31 = vld [vmem:[#allocation8 + $0xc0] sm:$0xff]  ;;  %v4532_v38 = vsub.f32 %v363_v29, %v451_v49  ;;  %v4534_v47 = vpack.c.bf16 %v1735_v42, %v1731_v0 }
  0x90   : > { %6640 = vst [vmem:[#allocation71_spill] sm:$0xff] %v4508_v24  ;;  %6641 = vst [vmem:[#allocation72_spill] sm:$0xff] %v4510_v22  ;;  %v302_v22 = vld [vmem:[#allocation6 + $0xc8] sm:$0xff]  ;;  %v304_v24 = vld [vmem:[#allocation6 + $0xd8] sm:$0xff]  ;;  %3534 = vmatprep.subr.bf16.mxu0 %v4524_v32  ;;  %v4542_v53 = vpack.c.bf16 %v457_v7, %v453_v20  ;;  %v4544_v55 = vsub.f32 %v366_v21, %v453_v20  ;;  %v4546_v8 = vsub.f32 %v368_v59, %v457_v7 }
  0x91   : > { %6642 = vst [vmem:[#allocation73_spill] sm:$0xff] %v4514_v14  ;;  %6643 = vst [vmem:[#allocation74_spill] sm:$0xff] %v4516_v26  ;;  %v301_v26 = vld [vmem:[#allocation6 + $0xc0] sm:$0xff]  ;;  %v4536_v14 = vsub.f32 %v297_v45, %v1731_v0  ;;  %3152 = vmatpush1.bf16.msra.mxu1 %v4528_v11  ;;  %v1737_v29 = vand.u32 4294901760, %v302_v22  ;;  %3536 = vmatpush1.bf16.msra.mxu0 %v4534_v47  ;;  %v1741_v45 = vand.u32 4294901760, %v304_v24  ;;  %v455_v37 = vand.u32 4294901760, %v365_v31 }
  0x92   : > { %6644 = vst [vmem:[#allocation75_spill] sm:$0xff] %v4518_v36  ;;  %6645 = vst [vmem:[#allocation76_spill] sm:$0xff] %v4522_v1  ;;  %v367_v36 = vld [vmem:[#allocation8 + $0xd0] sm:$0xff]  ;;  %v4538_v1 = vsub.f32 %v299_v15, %v1735_v42  ;;  %v1739_v49 = vand.u32 4294901760, %v301_v26  ;;  %3154 = vmatprep.subr.bf16.mxu1 %v4542_v53  ;;  %v1743_v42 = vand.u32 4294901760, %v303_v9 }
  0x93   : > { %6646 = vst [vmem:[#allocation77_spill] sm:$0xff] %v4524_v32  ;;  %6647 = vst [vmem:[#allocation78_spill] sm:$0xff] %v4526_v60  ;;  %v459_v15 = vand.u32 4294901760, %v367_v36  ;;  %v4550_v0 = vsub.f32 %v302_v22, %v1737_v29  ;;  %v461_v32 = vand.u32 4294901760, %v370_v28  ;;  %v4552_v20 = vpack.c.bf16 %v1741_v45, %v1737_v29  ;;  %v374_v29 = vld [vmem:[#allocation8 + $0x108] sm:$0xff]  ;;  %v376_v60 = vld [vmem:[#allocation8 + $0x118] sm:$0xff] }
  0x94   : > { %6648 = vst [vmem:[#allocation79_spill] sm:$0xff] %v4528_v11  ;;  %6649 = vst [vmem:[#allocation80_spill] sm:$0xff] %v4530_v2  ;;  %v465_v11 = vand.u32 4294901760, %v372_v54  ;;  %v4554_v59 = vsub.f32 %v304_v24, %v1741_v45  ;;  %v4558_v21 = vsub.f32 %v365_v31, %v455_v37  ;;  %v4562_v22 = vpack.c.bf16 %v1743_v42, %v1739_v49  ;;  %v307_v2 = vld [vmem:[#allocation6 + $0xf0] sm:$0xff] }
  0x95   : > { %6650 = vst [vmem:[#allocation81_spill] sm:$0xff] %v4532_v38  ;;  %6651 = vst [vmem:[#allocation82_spill] sm:$0xff] %v4534_v47  ;;  %v4556_v7 = vpack.c.bf16 %v459_v15, %v455_v37  ;;  %v369_v47 = vld [vmem:[#allocation8 + $0xe0] sm:$0xff]  ;;  %v4560_v38 = vsub.f32 %v367_v36, %v459_v15  ;;  %3538 = vmatprep.subr.bf16.mxu0 %v4552_v20  ;;  %v4572_v31 = vsub.f32 %v370_v28, %v461_v32 }
  0x96   : > { %6652 = vst [vmem:[#allocation83_spill] sm:$0xff] %v4536_v14  ;;  %6653 = vst [vmem:[#allocation84_spill] sm:$0xff] %v4538_v1  ;;  %v306_v1 = vld [vmem:[#allocation6 + $0xe8] sm:$0xff]  ;;  %v308_v14 = vld [vmem:[#allocation6 + $0xf8] sm:$0xff]  ;;  %v4570_v24 = vpack.c.bf16 %v465_v11, %v461_v32  ;;  %v4574_v45 = vsub.f32 %v372_v54, %v465_v11  ;;  %3540 = vmatpush1.bf16.msra.mxu0 %v4562_v22  ;;  %v463_v37 = vand.u32 4294901760, %v369_v47 }
  0x97   : > { %6654 = vst [vmem:[#allocation85_spill] sm:$0xff] %v4542_v53  ;;  %6655 = vst [vmem:[#allocation86_spill] sm:$0xff] %v4544_v55  ;;  %v305_v55 = vld [vmem:[#allocation6 + $0xe0] sm:$0xff]  ;;  %v4564_v53 = vsub.f32 %v301_v26, %v1739_v49  ;;  %3156 = vmatpush1.bf16.msra.mxu1 %v4556_v7  ;;  %v1745_v36 = vand.u32 4294901760, %v306_v1  ;;  %v1749_v26 = vand.u32 4294901760, %v308_v14 }
  0x98   : > { %6656 = vst [vmem:[#allocation87_spill] sm:$0xff] %v4546_v8  ;;  %6657 = vst [vmem:[#allocation88_spill] sm:$0xff] %v4550_v0  ;;  %v371_v8 = vld [vmem:[#allocation8 + $0xf0] sm:$0xff]  ;;  %v4566_v0 = vsub.f32 %v303_v9, %v1743_v42  ;;  %v1747_v15 = vand.u32 4294901760, %v305_v55  ;;  %3158 = vmatprep.subr.bf16.mxu1 %v4570_v24  ;;  %v1751_v42 = vand.u32 4294901760, %v307_v2  ;;  %v4586_v28 = vsub.f32 %v369_v47, %v463_v37 }
  0x99   : > { %6658 = vst [vmem:[#allocation89_spill] sm:$0xff] %v4552_v20  ;;  %6659 = vst [vmem:[#allocation90_spill] sm:$0xff] %v4554_v59  ;;  %v467_v9 = vand.u32 4294901760, %v371_v8  ;;  %v4578_v49 = vsub.f32 %v306_v1, %v1745_v36  ;;  %v469_v20 = vand.u32 4294901760, %v374_v29  ;;  %v4580_v32 = vpack.c.bf16 %v1749_v26, %v1745_v36  ;;  %v378_v36 = vld [vmem:[#allocation8 + $0x128] sm:$0xff]  ;;  %v380_v59 = vld [vmem:[#allocation8 + $0x138] sm:$0xff] }
  0x9a   : > { %6660 = vst [vmem:[#allocation91_spill] sm:$0xff] %v4556_v7  ;;  %6661 = vst [vmem:[#allocation92_spill] sm:$0xff] %v4558_v21  ;;  %v473_v7 = vand.u32 4294901760, %v376_v60  ;;  %v4582_v54 = vsub.f32 %v308_v14, %v1749_v26  ;;  %v4590_v1 = vpack.c.bf16 %v1751_v42, %v1747_v15  ;;  %v311_v21 = vld [vmem:[#allocation6 + $0x110] sm:$0xff] }
  0x9b   : > { %6662 = vst [vmem:[#allocation93_spill] sm:$0xff] %v4560_v38  ;;  %6663 = vst [vmem:[#allocation94_spill] sm:$0xff] %v4562_v22  ;;  %v4584_v11 = vpack.c.bf16 %v467_v9, %v463_v37  ;;  %v373_v22 = vld [vmem:[#allocation8 + $0x100] sm:$0xff]  ;;  %v4588_v38 = vsub.f32 %v371_v8, %v467_v9  ;;  %3542 = vmatprep.subr.bf16.mxu0 %v4580_v32  ;;  %v4600_v47 = vsub.f32 %v374_v29, %v469_v20 }
  0x9c   : > { %6664 = vst [vmem:[#allocation95_spill] sm:$0xff] %v4564_v53  ;;  %6665 = vst [vmem:[#allocation96_spill] sm:$0xff] %v4566_v0  ;;  %v310_v0 = vld [vmem:[#allocation6 + $0x108] sm:$0xff]  ;;  %v312_v53 = vld [vmem:[#allocation6 + $0x118] sm:$0xff]  ;;  %v4598_v14 = vpack.c.bf16 %v473_v7, %v469_v20  ;;  %v4602_v26 = vsub.f32 %v376_v60, %v473_v7  ;;  %3544 = vmatpush1.bf16.msra.mxu0 %v4590_v1  ;;  %v471_v37 = vand.u32 4294901760, %v373_v22 }
  0x9d   : > { %6666 = vst [vmem:[#allocation97_spill] sm:$0xff] %v4570_v24  ;;  %6667 = vst [vmem:[#allocation98_spill] sm:$0xff] %v4572_v31  ;;  %v309_v31 = vld [vmem:[#allocation6 + $0x100] sm:$0xff]  ;;  %v4592_v24 = vsub.f32 %v305_v55, %v1747_v15  ;;  %3160 = vmatpush1.bf16.msra.mxu1 %v4584_v11  ;;  %v1753_v8 = vand.u32 4294901760, %v310_v0  ;;  %v1757_v55 = vand.u32 4294901760, %v312_v53 }
  0x9e   : > { %6668 = vst [vmem:[#allocation99_spill] sm:$0xff] %v4574_v45  ;;  %6669 = vst [vmem:[#allocation100_spill] sm:$0xff] %v4578_v49  ;;  %v375_v45 = vld [vmem:[#allocation8 + $0x110] sm:$0xff]  ;;  %v4594_v49 = vsub.f32 %v307_v2, %v1751_v42  ;;  %v1755_v9 = vand.u32 4294901760, %v309_v31  ;;  %3162 = vmatprep.subr.bf16.mxu1 %v4598_v14  ;;  %v1759_v42 = vand.u32 4294901760, %v311_v21  ;;  %v4614_v29 = vsub.f32 %v373_v22, %v471_v37 }
  0x9f   : > { %6670 = vst [vmem:[#allocation101_spill] sm:$0xff] %v4580_v32  ;;  %6671 = vst [vmem:[#allocation102_spill] sm:$0xff] %v4582_v54  ;;  %v475_v2 = vand.u32 4294901760, %v375_v45  ;;  %v4606_v15 = vsub.f32 %v310_v0, %v1753_v8  ;;  %v477_v32 = vand.u32 4294901760, %v378_v36  ;;  %v4608_v20 = vpack.c.bf16 %v1757_v55, %v1753_v8  ;;  %v382_v8 = vld [vmem:[#allocation8 + $0x148] sm:$0xff]  ;;  %v384_v54 = vld [vmem:[#allocation8 + $0x158] sm:$0xff] }
  0xa0   : > { %6672 = vst [vmem:[#allocation103_spill] sm:$0xff] %v4584_v11  ;;  %6673 = vst [vmem:[#allocation104_spill] sm:$0xff] %v4586_v28  ;;  %v481_v11 = vand.u32 4294901760, %v380_v59  ;;  %v4610_v60 = vsub.f32 %v312_v53, %v1757_v55  ;;  %v4618_v0 = vpack.c.bf16 %v1759_v42, %v1755_v9  ;;  %v315_v28 = vld [vmem:[#allocation6 + $0x130] sm:$0xff] }
  0xa1   : > { %6674 = vst [vmem:[#allocation105_spill] sm:$0xff] %v4588_v38  ;;  %6675 = vst [vmem:[#allocation106_spill] sm:$0xff] %v4590_v1  ;;  %v4612_v7 = vpack.c.bf16 %v475_v2, %v471_v37  ;;  %v377_v1 = vld [vmem:[#allocation8 + $0x120] sm:$0xff]  ;;  %v4616_v38 = vsub.f32 %v375_v45, %v475_v2  ;;  %3546 = vmatprep.subr.bf16.mxu0 %v4608_v20  ;;  %v4628_v22 = vsub.f32 %v378_v36, %v477_v32 }
  0xa2   : > { %6676 = vst [vmem:[#allocation107_spill] sm:$0xff] %v4592_v24  ;;  %6677 = vst [vmem:[#allocation108_spill] sm:$0xff] %v4594_v49  ;;  %v314_v49 = vld [vmem:[#allocation6 + $0x128] sm:$0xff]  ;;  %v316_v24 = vld [vmem:[#allocation6 + $0x138] sm:$0xff]  ;;  %v4626_v53 = vpack.c.bf16 %v481_v11, %v477_v32  ;;  %v4630_v55 = vsub.f32 %v380_v59, %v481_v11  ;;  %3548 = vmatpush1.bf16.msra.mxu0 %v4618_v0  ;;  %v479_v37 = vand.u32 4294901760, %v377_v1 }
  0xa3   : > { %6678 = vst [vmem:[#allocation109_spill] sm:$0xff] %v4598_v14  ;;  %6679 = vst [vmem:[#allocation110_spill] sm:$0xff] %v4600_v47  ;;  %v313_v47 = vld [vmem:[#allocation6 + $0x120] sm:$0xff]  ;;  %v4620_v14 = vsub.f32 %v309_v31, %v1755_v9  ;;  %3164 = vmatpush1.bf16.msra.mxu1 %v4612_v7  ;;  %v1761_v45 = vand.u32 4294901760, %v314_v49  ;;  %v1765_v31 = vand.u32 4294901760, %v316_v24 }
  0xa4   : > { %6680 = vst [vmem:[#allocation111_spill] sm:$0xff] %v4602_v26  ;;  %6681 = vst [vmem:[#allocation112_spill] sm:$0xff] %v4606_v15  ;;  %v379_v26 = vld [vmem:[#allocation8 + $0x130] sm:$0xff]  ;;  %v4622_v15 = vsub.f32 %v311_v21, %v1759_v42  ;;  %v1763_v2 = vand.u32 4294901760, %v313_v47  ;;  %3166 = vmatprep.subr.bf16.mxu1 %v4626_v53  ;;  %v1767_v42 = vand.u32 4294901760, %v315_v28  ;;  %v4642_v36 = vsub.f32 %v377_v1, %v479_v37 }
  0xa5   : > { %6682 = vst [vmem:[#allocation113_spill] sm:$0xff] %v4608_v20  ;;  %6683 = vst [vmem:[#allocation114_spill] sm:$0xff] %v4610_v60  ;;  %v483_v21 = vand.u32 4294901760, %v379_v26  ;;  %v4634_v9 = vsub.f32 %v314_v49, %v1761_v45  ;;  %v485_v20 = vand.u32 4294901760, %v382_v8  ;;  %v4636_v32 = vpack.c.bf16 %v1765_v31, %v1761_v45  ;;  %v386_v45 = vld [vmem:[#allocation8 + $0x168] sm:$0xff]  ;;  %v388_v60 = vld [vmem:[#allocation8 + $0x178] sm:$0xff] }
  0xa6   : > { %6684 = vst [vmem:[#allocation115_spill] sm:$0xff] %v4612_v7  ;;  %6685 = vst [vmem:[#allocation116_spill] sm:$0xff] %v4614_v29  ;;  %v489_v7 = vand.u32 4294901760, %v384_v54  ;;  %v4638_v59 = vsub.f32 %v316_v24, %v1765_v31  ;;  %v4646_v49 = vpack.c.bf16 %v1767_v42, %v1763_v2  ;;  %v319_v29 = vld [vmem:[#allocation6 + $0x150] sm:$0xff] }
  0xa7   : > { %6686 = vst [vmem:[#allocation117_spill] sm:$0xff] %v4616_v38  ;;  %6687 = vst [vmem:[#allocation118_spill] sm:$0xff] %v4618_v0  ;;  %v4640_v11 = vpack.c.bf16 %v483_v21, %v479_v37  ;;  %v381_v0 = vld [vmem:[#allocation8 + $0x140] sm:$0xff]  ;;  %v4644_v38 = vsub.f32 %v379_v26, %v483_v21  ;;  %3550 = vmatprep.subr.bf16.mxu0 %v4636_v32  ;;  %v4656_v1 = vsub.f32 %v382_v8, %v485_v20 }
  0xa8   : > { %6688 = vst [vmem:[#allocation119_spill] sm:$0xff] %v4620_v14  ;;  %6689 = vst [vmem:[#allocation120_spill] sm:$0xff] %v4622_v15  ;;  %v318_v15 = vld [vmem:[#allocation6 + $0x148] sm:$0xff]  ;;  %v320_v14 = vld [vmem:[#allocation6 + $0x158] sm:$0xff]  ;;  %v4654_v24 = vpack.c.bf16 %v489_v7, %v485_v20  ;;  %v4658_v31 = vsub.f32 %v384_v54, %v489_v7  ;;  %3552 = vmatpush1.bf16.msra.mxu0 %v4646_v49  ;;  %v487_v37 = vand.u32 4294901760, %v381_v0 }
  0xa9   : > { %6690 = vst [vmem:[#allocation121_spill] sm:$0xff] %v4626_v53  ;;  %6691 = vst [vmem:[#allocation122_spill] sm:$0xff] %v4628_v22  ;;  %v317_v22 = vld [vmem:[#allocation6 + $0x140] sm:$0xff]  ;;  %v4648_v53 = vsub.f32 %v313_v47, %v1763_v2  ;;  %3168 = vmatpush1.bf16.msra.mxu1 %v4640_v11  ;;  %v1769_v26 = vand.u32 4294901760, %v318_v15  ;;  %v1773_v47 = vand.u32 4294901760, %v320_v14 }
  0xaa   : > { %6692 = vst [vmem:[#allocation123_spill] sm:$0xff] %v4630_v55  ;;  %6693 = vst [vmem:[#allocation124_spill] sm:$0xff] %v4634_v9  ;;  %v383_v55 = vld [vmem:[#allocation8 + $0x150] sm:$0xff]  ;;  %v4650_v9 = vsub.f32 %v315_v28, %v1767_v42  ;;  %v1771_v21 = vand.u32 4294901760, %v317_v22  ;;  %3170 = vmatprep.subr.bf16.mxu1 %v4654_v24  ;;  %v1775_v42 = vand.u32 4294901760, %v319_v29  ;;  %v4670_v8 = vsub.f32 %v381_v0, %v487_v37 }
  0xab   : > { %6694 = vst [vmem:[#allocation125_spill] sm:$0xff] %v4636_v32  ;;  %6695 = vst [vmem:[#allocation126_spill] sm:$0xff] %v4638_v59  ;;  %v491_v28 = vand.u32 4294901760, %v383_v55  ;;  %v4662_v2 = vsub.f32 %v318_v15, %v1769_v26  ;;  %v493_v32 = vand.u32 4294901760, %v386_v45  ;;  %v4664_v20 = vpack.c.bf16 %v1773_v47, %v1769_v26  ;;  %v390_v26 = vld [vmem:[#allocation8 + $0x188] sm:$0xff]  ;;  %v392_v59 = vld [vmem:[#allocation8 + $0x198] sm:$0xff] }
  0xac   : > { %6696 = vst [vmem:[#allocation127_spill] sm:$0xff] %v4640_v11  ;;  %6697 = vst [vmem:[#allocation128_spill] sm:$0xff] %v4642_v36  ;;  %v497_v11 = vand.u32 4294901760, %v388_v60  ;;  %v4666_v54 = vsub.f32 %v320_v14, %v1773_v47  ;;  %v4674_v15 = vpack.c.bf16 %v1775_v42, %v1771_v21  ;;  %v323_v36 = vld [vmem:[#allocation6 + $0x170] sm:$0xff] }
  0xad   : > { %6698 = vst [vmem:[#allocation129_spill] sm:$0xff] %v4644_v38  ;;  %6699 = vst [vmem:[#allocation130_spill] sm:$0xff] %v4646_v49  ;;  %v4668_v7 = vpack.c.bf16 %v491_v28, %v487_v37  ;;  %v385_v49 = vld [vmem:[#allocation8 + $0x160] sm:$0xff]  ;;  %v4672_v38 = vsub.f32 %v383_v55, %v491_v28  ;;  %3554 = vmatprep.subr.bf16.mxu0 %v4664_v20  ;;  %v4684_v0 = vsub.f32 %v386_v45, %v493_v32 }
  0xae   : > { %6700 = vst [vmem:[#allocation131_spill] sm:$0xff] %v4648_v53  ;;  %6701 = vst [vmem:[#allocation132_spill] sm:$0xff] %v4650_v9  ;;  %v322_v9 = vld [vmem:[#allocation6 + $0x168] sm:$0xff]  ;;  %v324_v53 = vld [vmem:[#allocation6 + $0x178] sm:$0xff]  ;;  %v4682_v14 = vpack.c.bf16 %v497_v11, %v493_v32  ;;  %v4686_v47 = vsub.f32 %v388_v60, %v497_v11  ;;  %3556 = vmatpush1.bf16.msra.mxu0 %v4674_v15  ;;  %v495_v37 = vand.u32 4294901760, %v385_v49 }
  0xaf   : > { %6702 = vst [vmem:[#allocation133_spill] sm:$0xff] %v4654_v24  ;;  %6703 = vst [vmem:[#allocation134_spill] sm:$0xff] %v4656_v1  ;;  %v321_v1 = vld [vmem:[#allocation6 + $0x160] sm:$0xff]  ;;  %v4676_v24 = vsub.f32 %v317_v22, %v1771_v21  ;;  %3172 = vmatpush1.bf16.msra.mxu1 %v4668_v7  ;;  %v1777_v55 = vand.u32 4294901760, %v322_v9  ;;  %v1781_v22 = vand.u32 4294901760, %v324_v53 }
  0xb0   : > { %6704 = vst [vmem:[#allocation135_spill] sm:$0xff] %v4658_v31  ;;  %6705 = vst [vmem:[#allocation136_spill] sm:$0xff] %v4662_v2  ;;  %v387_v31 = vld [vmem:[#allocation8 + $0x170] sm:$0xff]  ;;  %v4678_v2 = vsub.f32 %v319_v29, %v1775_v42  ;;  %v1779_v28 = vand.u32 4294901760, %v321_v1  ;;  %3174 = vmatprep.subr.bf16.mxu1 %v4682_v14  ;;  %v1783_v42 = vand.u32 4294901760, %v323_v36  ;;  %v4698_v45 = vsub.f32 %v385_v49, %v495_v37 }
  0xb1   : > { %6706 = vst [vmem:[#allocation137_spill] sm:$0xff] %v4664_v20  ;;  %6707 = vst [vmem:[#allocation138_spill] sm:$0xff] %v4666_v54  ;;  %v499_v29 = vand.u32 4294901760, %v387_v31  ;;  %v4690_v21 = vsub.f32 %v322_v9, %v1777_v55  ;;  %v501_v20 = vand.u32 4294901760, %v390_v26  ;;  %v4692_v32 = vpack.c.bf16 %v1781_v22, %v1777_v55  ;;  %v394_v55 = vld [vmem:[#allocation8 + $0x1a8] sm:$0xff]  ;;  %v396_v54 = vld [vmem:[#allocation8 + $0x1b8] sm:$0xff] }
  0xb2   : > { %6708 = vst [vmem:[#allocation139_spill] sm:$0xff] %v4668_v7  ;;  %6709 = vst [vmem:[#allocation140_spill] sm:$0xff] %v4670_v8  ;;  %v505_v7 = vand.u32 4294901760, %v392_v59  ;;  %v4694_v60 = vsub.f32 %v324_v53, %v1781_v22  ;;  %v4702_v9 = vpack.c.bf16 %v1783_v42, %v1779_v28  ;;  %v327_v8 = vld [vmem:[#allocation6 + $0x190] sm:$0xff] }
  0xb3   : > { %6710 = vst [vmem:[#allocation141_spill] sm:$0xff] %v4672_v38  ;;  %6711 = vst [vmem:[#allocation142_spill] sm:$0xff] %v4674_v15  ;;  %v4696_v11 = vpack.c.bf16 %v499_v29, %v495_v37  ;;  %v389_v15 = vld [vmem:[#allocation8 + $0x180] sm:$0xff]  ;;  %v4700_v38 = vsub.f32 %v387_v31, %v499_v29  ;;  %3558 = vmatprep.subr.bf16.mxu0 %v4692_v32  ;;  %v4712_v49 = vsub.f32 %v390_v26, %v501_v20 }
  0xb4   : > { %6712 = vst [vmem:[#allocation143_spill] sm:$0xff] %v4676_v24  ;;  %6713 = vst [vmem:[#allocation144_spill] sm:$0xff] %v4678_v2  ;;  %v326_v2 = vld [vmem:[#allocation6 + $0x188] sm:$0xff]  ;;  %v328_v24 = vld [vmem:[#allocation6 + $0x198] sm:$0xff]  ;;  %v4710_v53 = vpack.c.bf16 %v505_v7, %v501_v20  ;;  %v4714_v22 = vsub.f32 %v392_v59, %v505_v7  ;;  %3560 = vmatpush1.bf16.msra.mxu0 %v4702_v9  ;;  %v503_v37 = vand.u32 4294901760, %v389_v15 }
  0xb5   : > { %6714 = vst [vmem:[#allocation145_spill] sm:$0xff] %v4682_v14  ;;  %6715 = vst [vmem:[#allocation146_spill] sm:$0xff] %v4684_v0  ;;  %v325_v0 = vld [vmem:[#allocation6 + $0x180] sm:$0xff]  ;;  %v4704_v14 = vsub.f32 %v321_v1, %v1779_v28  ;;  %3176 = vmatpush1.bf16.msra.mxu1 %v4696_v11  ;;  %v1785_v31 = vand.u32 4294901760, %v326_v2  ;;  %v1789_v1 = vand.u32 4294901760, %v328_v24 }
  0xb6   : > { %6716 = vst [vmem:[#allocation147_spill] sm:$0xff] %v4686_v47  ;;  %6717 = vst [vmem:[#allocation148_spill] sm:$0xff] %v4690_v21  ;;  %v391_v47 = vld [vmem:[#allocation8 + $0x190] sm:$0xff]  ;;  %v4706_v21 = vsub.f32 %v323_v36, %v1783_v42  ;;  %v1787_v29 = vand.u32 4294901760, %v325_v0  ;;  %3178 = vmatprep.subr.bf16.mxu1 %v4710_v53  ;;  %v1791_v42 = vand.u32 4294901760, %v327_v8  ;;  %v4726_v26 = vsub.f32 %v389_v15, %v503_v37 }
  0xb7   : > { %6718 = vst [vmem:[#allocation149_spill] sm:$0xff] %v4692_v32  ;;  %6719 = vst [vmem:[#allocation150_spill] sm:$0xff] %v4694_v60  ;;  %v507_v36 = vand.u32 4294901760, %v391_v47  ;;  %v4718_v28 = vsub.f32 %v326_v2, %v1785_v31  ;;  %v509_v32 = vand.u32 4294901760, %v394_v55  ;;  %v4720_v20 = vpack.c.bf16 %v1789_v1, %v1785_v31  ;;  %v398_v31 = vld [vmem:[#allocation8 + $0x1c8] sm:$0xff]  ;;  %v400_v60 = vld [vmem:[#allocation8 + $0x1d8] sm:$0xff] }
  0xb8   : > { %6720 = vst [vmem:[#allocation151_spill] sm:$0xff] %v4696_v11  ;;  %6721 = vst [vmem:[#allocation152_spill] sm:$0xff] %v4698_v45  ;;  %v513_v11 = vand.u32 4294901760, %v396_v54  ;;  %v4722_v59 = vsub.f32 %v328_v24, %v1789_v1  ;;  %v4730_v2 = vpack.c.bf16 %v1791_v42, %v1787_v29  ;;  %v331_v45 = vld [vmem:[#allocation6 + $0x1b0] sm:$0xff] }
  0xb9   : > { %6722 = vst [vmem:[#allocation153_spill] sm:$0xff] %v4700_v38  ;;  %6723 = vst [vmem:[#allocation154_spill] sm:$0xff] %v4702_v9  ;;  %v4724_v7 = vpack.c.bf16 %v507_v36, %v503_v37  ;;  %v393_v9 = vld [vmem:[#allocation8 + $0x1a0] sm:$0xff]  ;;  %v4728_v38 = vsub.f32 %v391_v47, %v507_v36  ;;  %3562 = vmatprep.subr.bf16.mxu0 %v4720_v20  ;;  %v4740_v15 = vsub.f32 %v394_v55, %v509_v32 }
  0xba   : > { %6724 = vst [vmem:[#allocation155_spill] sm:$0xff] %v4704_v14  ;;  %6725 = vst [vmem:[#allocation156_spill] sm:$0xff] %v4706_v21  ;;  %v330_v21 = vld [vmem:[#allocation6 + $0x1a8] sm:$0xff]  ;;  %v332_v14 = vld [vmem:[#allocation6 + $0x1b8] sm:$0xff]  ;;  %v4738_v24 = vpack.c.bf16 %v513_v11, %v509_v32  ;;  %v4742_v1 = vsub.f32 %v396_v54, %v513_v11  ;;  %3564 = vmatpush1.bf16.msra.mxu0 %v4730_v2  ;;  %v511_v37 = vand.u32 4294901760, %v393_v9 }
  0xbb   : > { %6726 = vst [vmem:[#allocation157_spill] sm:$0xff] %v4710_v53  ;;  %6727 = vst [vmem:[#allocation158_spill] sm:$0xff] %v4712_v49  ;;  %v329_v49 = vld [vmem:[#allocation6 + $0x1a0] sm:$0xff]  ;;  %v4732_v53 = vsub.f32 %v325_v0, %v1787_v29  ;;  %3180 = vmatpush1.bf16.msra.mxu1 %v4724_v7  ;;  %v1793_v47 = vand.u32 4294901760, %v330_v21  ;;  %v1797_v0 = vand.u32 4294901760, %v332_v14 }
  0xbc   : > { %6728 = vst [vmem:[#allocation159_spill] sm:$0xff] %v4714_v22  ;;  %6729 = vst [vmem:[#allocation160_spill] sm:$0xff] %v4718_v28  ;;  %v395_v22 = vld [vmem:[#allocation8 + $0x1b0] sm:$0xff]  ;;  %v4734_v28 = vsub.f32 %v327_v8, %v1791_v42  ;;  %v1795_v36 = vand.u32 4294901760, %v329_v49  ;;  %3182 = vmatprep.subr.bf16.mxu1 %v4738_v24  ;;  %v1799_v42 = vand.u32 4294901760, %v331_v45  ;;  %v4754_v55 = vsub.f32 %v393_v9, %v511_v37 }
  0xbd   : > { %6730 = vst [vmem:[#allocation161_spill] sm:$0xff] %v4720_v20  ;;  %6731 = vst [vmem:[#allocation162_spill] sm:$0xff] %v4722_v59  ;;  %v515_v8 = vand.u32 4294901760, %v395_v22  ;;  %v4746_v29 = vsub.f32 %v330_v21, %v1793_v47  ;;  %v517_v20 = vand.u32 4294901760, %v398_v31  ;;  %v4748_v32 = vpack.c.bf16 %v1797_v0, %v1793_v47  ;;  %v402_v47 = vld [vmem:[#allocation8 + $0x1e8] sm:$0xff]  ;;  %v404_v59 = vld [vmem:[#allocation8 + $0x1f8] sm:$0xff] }
  0xbe   : > { %6732 = vst [vmem:[#allocation163_spill] sm:$0xff] %v4724_v7  ;;  %6733 = vst [vmem:[#allocation164_spill] sm:$0xff] %v4726_v26  ;;  %v521_v7 = vand.u32 4294901760, %v400_v60  ;;  %v4750_v54 = vsub.f32 %v332_v14, %v1797_v0  ;;  %v4758_v21 = vpack.c.bf16 %v1799_v42, %v1795_v36  ;;  %v335_v26 = vld [vmem:[#allocation6 + $0x1d0] sm:$0xff] }
  0xbf   : > { %6734 = vst [vmem:[#allocation165_spill] sm:$0xff] %v4728_v38  ;;  %6735 = vst [vmem:[#allocation166_spill] sm:$0xff] %v4730_v2  ;;  %v4752_v11 = vpack.c.bf16 %v515_v8, %v511_v37  ;;  %v397_v2 = vld [vmem:[#allocation8 + $0x1c0] sm:$0xff]  ;;  %v4756_v38 = vsub.f32 %v395_v22, %v515_v8  ;;  %3566 = vmatprep.subr.bf16.mxu0 %v4748_v32  ;;  %v4768_v9 = vsub.f32 %v398_v31, %v517_v20 }
  0xc0   : > { %6736 = vst [vmem:[#allocation167_spill] sm:$0xff] %v4732_v53  ;;  %6737 = vst [vmem:[#allocation168_spill] sm:$0xff] %v4734_v28  ;;  %v334_v28 = vld [vmem:[#allocation6 + $0x1c8] sm:$0xff]  ;;  %v336_v53 = vld [vmem:[#allocation6 + $0x1d8] sm:$0xff]  ;;  %v4766_v14 = vpack.c.bf16 %v521_v7, %v517_v20  ;;  %v4770_v22 = vsub.f32 %v400_v60, %v521_v7  ;;  %3568 = vmatpush1.bf16.msra.mxu0 %v4758_v21 }
  0xc1   : > { %6738 = vst [vmem:[#allocation169_spill] sm:$0xff] %v4738_v24  ;;  %6739 = vst [vmem:[#allocation170_spill] sm:$0xff] %v4740_v15  ;;  %v333_v15 = vld [vmem:[#allocation6 + $0x1c0] sm:$0xff]  ;;  %v4760_v24 = vsub.f32 %v329_v49, %v1795_v36  ;;  %3184 = vmatpush1.bf16.msra.mxu1 %v4752_v11  ;;  %v1801_v0 = vand.u32 4294901760, %v334_v28  ;;  %v1805_v49 = vand.u32 4294901760, %v336_v53  ;;  %v340_v20 = vld [vmem:[#allocation6 + $0x1f8] sm:$0xff] }
  0xc2   : > { %6740 = vst [vmem:[#allocation171_spill] sm:$0xff] %v4742_v1  ;;  %6741 = vst [vmem:[#allocation172_spill] sm:$0xff] %v4746_v29  ;;  %v399_v1 = vld [vmem:[#allocation8 + $0x1d0] sm:$0xff]  ;;  %v4762_v29 = vsub.f32 %v331_v45, %v1799_v42  ;;  %v519_v45 = vand.u32 4294901760, %v397_v2  ;;  %v1803_v8 = vand.u32 4294901760, %v333_v15  ;;  %3186 = vmatprep.subr.bf16.mxu1 %v4766_v14  ;;  %v1807_v42 = vand.u32 4294901760, %v335_v26 }
  0xc3   : > { %6742 = vst [vmem:[#allocation173_spill] sm:$0xff] %v4748_v32  ;;  %6743 = vst [vmem:[#allocation174_spill] sm:$0xff] %v4750_v54  ;;  %v523_v37 = vand.u32 4294901760, %v399_v1  ;;  %v4774_v36 = vsub.f32 %v334_v28, %v1801_v0  ;;  %v525_v32 = vand.u32 4294901760, %v402_v47  ;;  %v4776_v31 = vpack.c.bf16 %v1805_v49, %v1801_v0  ;;  %v244_v0 = vld [vmem:[%s4365_s26] sm:$0xff] }
  0xc4   : > { %6744 = vst [vmem:[#allocation175_spill] sm:$0xff] %v4752_v11  ;;  %6745 = vst [vmem:[#allocation176_spill] sm:$0xff] %v4754_v55  ;;  %v529_v11 = vand.u32 4294901760, %v404_v59  ;;  %v4778_v60 = vsub.f32 %v336_v53, %v1805_v49  ;;  %v4786_v28 = vpack.c.bf16 %v1807_v42, %v1803_v8  ;;  %v339_v55 = vld [vmem:[#allocation6 + $0x1f0] sm:$0xff] }
  0xc5   : > { %6746 = vst [vmem:[#allocation177_spill] sm:$0xff] %v4756_v38  ;;  %6747 = vst [vmem:[#allocation178_spill] sm:$0xff] %v4758_v21  ;;  %v4780_v7 = vpack.c.bf16 %v523_v37, %v519_v45  ;;  %v4782_v21 = vsub.f32 %v397_v2, %v519_v45  ;;  %v4790_v38 = vsub.f32 %v335_v26, %v1807_v42  ;;  %3570 = vmatprep.subr.bf16.mxu0 %v4776_v31 }
  0xc6   : > { %6748 = vst [vmem:[#allocation179_spill] sm:$0xff] %v4760_v24  ;;  %6749 = vst [vmem:[#allocation180_spill] sm:$0xff] %v4762_v29  ;;  %v338_v29 = vld [vmem:[#allocation6 + $0x1e8] sm:$0xff]  ;;  %v337_v24 = vld [vmem:[#allocation6 + $0x1e0] sm:$0xff]  ;;  %v4795_v53 = vpack.c.bf16 %v529_v11, %v525_v32  ;;  %v4797_v2 = vsub.f32 %v402_v47, %v525_v32  ;;  %v4799_v49 = vsub.f32 %v404_v59, %v529_v11  ;;  %3572 = vmatpush1.bf16.msra.mxu0 %v4786_v28 }
  0xc7   : > { %6750 = vst [vmem:[#allocation181_spill] sm:$0xff] %v4766_v14  ;;  %6751 = vst [vmem:[#allocation182_spill] sm:$0xff] %v4768_v9  ;;  %v403_v9 = vld [vmem:[#allocation8 + $0x1f0] sm:$0xff]  ;;  %v4784_v14 = vsub.f32 %v399_v1, %v523_v37  ;;  %3188 = vmatpush1.bf16.msra.mxu1 %v4780_v7  ;;  %v1809_v1 = vand.u32 4294901760, %v338_v29  ;;  %v1813_v45 = vand.u32 4294901760, %v340_v20  ;;  %v1811_v26 = vand.u32 4294901760, %v337_v24 }
  0xc8   : > { %6752 = vst [vmem:[#allocation183_spill] sm:$0xff] %v4770_v22  ;;  %6753 = vst [vmem:[#allocation184_spill] sm:$0xff] %v4774_v36  ;;  %v401_v22 = vld [vmem:[#allocation8 + $0x1e0] sm:$0xff]  ;;  %v4788_v36 = vsub.f32 %v333_v15, %v1803_v8  ;;  %v531_v37 = vand.u32 4294901760, %v403_v9  ;;  %3190 = vmatprep.subr.bf16.mxu1 %v4795_v53  ;;  %v1815_v42 = vand.u32 4294901760, %v339_v55 }
  0xc9   : > { %6754 = vst [vmem:[#allocation185_spill] sm:$0xff] %v4776_v31  ;;  %6755 = vst [vmem:[#allocation186_spill] sm:$0xff] %v4778_v60  ;;  %v527_v15 = vand.u32 4294901760, %v401_v22  ;;  %v4803_v8 = vsub.f32 %v338_v29, %v1809_v1  ;;  %v246_v31 = vcombine.high %v244_v0, %v244_v0  ;;  %v4808_v32 = vsub.f32 %v340_v20, %v1813_v45 }
  0xca   : > { %6756 = vst [vmem:[#allocation187_spill] sm:$0xff] %v4780_v7  ;;  %6757 = vst [vmem:[#allocation188_spill] sm:$0xff] %v4782_v21  ;;  %v6266_v7 = vand.u32 4294901760, %v4377_v16  ;;  %v4814_v47 = vsub.f32 %v403_v9, %v531_v37  ;;  %v4820_v29 = vsub.f32 %v339_v55, %v1815_v42  ;;  %v6282_v55 = vand.u32 4294901760, %v4381_v18 }
  0xcb   : > { %6758 = vst [vmem:[#allocation189_spill] sm:$0xff] %v4784_v14  ;;  %6759 = vst [vmem:[#allocation190_spill] sm:$0xff] %v4786_v28  ;;  %v4810_v59 = vpack.c.bf16 %v531_v37, %v527_v15  ;;  %v4812_v11 = vsub.f32 %v401_v22, %v527_v15  ;;  %v4816_v28 = vpack.c.bf16 %v1815_v42, %v1811_v26  ;;  %v6275_v22 = vand.u32 4294901760, %v4379_v17 }
  0xcc   : > { %6760 = vst [vmem:[#allocation191_spill] sm:$0xff] %v4788_v36  ;;  %6761 = vst [vmem:[#allocation192_spill] sm:$0xff] %v4790_v38  ;;  %v4806_v38 = vpack.c.bf16 %v1813_v45, %v1809_v1  ;;  %v270_v1 = vsel %vm248_vm0, %v246_v31, 0.0  ;;  %v553_v20 = vsub.f32 %v4377_v16, %v6266_v7  ;;  %v256_v9 = vsel %vm248_vm0, %v246_v31, -inf }
  0xcd   : > { %6762 = vst [vmem:[#allocation193_spill] sm:$0xff] %v4795_v53  ;;  %6763 = vst [vmem:[#allocation194_spill] sm:$0xff] %v4797_v2  ;;  %3192 = vmatpush1.bf16.msra.mxu1 %v4810_v59  ;;  %v257_v45 = vrot.slane %v256_v9, 4  ;;  %v6283_v15 = vand.u32 4294901760, %v4385_v23  ;;  %v263_v42 = vsel %vm248_vm0, %v244_v0, 0.0  ;;  %v6288_v7 = vand.u32 4294901760, %v4389_v25 }
  0xce   : > { %6764 = vst [vmem:[#allocation195_spill] sm:$0xff] %v4799_v49  ;;  %6765 = vst [vmem:[#allocation196_spill] sm:$0xff] %v4803_v8  ;;  %v4818_v49 = vsub.f32 %v337_v24, %v1811_v26  ;;  %3574 = vmatprep.subr.bf16.mxu0 %v4806_v38  ;;  %v271_v24 = vrot.slane %v270_v1, 4  ;;  %v554_v37 = vand.u32 4294901760, %v553_v20  ;;  %v565_v26 = vsub.f32 %v4379_v17, %v6275_v22 }
  0xcf   : > { %6766 = vst [vmem:[#allocation197_spill] sm:$0xff] %v4806_v38  ;;  %6767 = vst [vmem:[#allocation198_spill] sm:$0xff] %v4808_v32  ;;  %3576 = vmatpush1.bf16.msra.mxu0 %v4816_v28  ;;  %v258_v38 = vmax.f32 %v256_v9, %v257_v45  ;;  %v1837_v31 = vsub.f32 %v4381_v18, %v6282_v55  ;;  %v264_v20 = vrot.slane %v263_v42, 4  ;;  %v6299_v17 = vand.u32 4294901760, %v4392_v27 }
  0xd0   : > { %6768 = vst [vmem:[#allocation199_spill] sm:$0xff] %v4810_v59  ;;  %6769 = vst [vmem:[#allocation200_spill] sm:$0xff] %v4812_v11  ;;  %v272_v59 = vadd.f32 %v271_v24, %v270_v1  ;;  %v566_v53 = vand.u32 4294901760, %v565_v26  ;;  %v559_v22 = vsub.f32 %v4389_v25, %v6288_v7  ;;  %v249_v18 = vsel %vm248_vm0, %v244_v0, -inf }
  0xd1   : > { %6770 = vst [vmem:[#allocation201_spill] sm:$0xff] %v4814_v47  ;;  %6771 = vst [vmem:[#allocation202_spill] sm:$0xff] %v4816_v28  ;;  %v1849_v28 = vsub.f32 %v4385_v23, %v6283_v15  ;;  %v1838_v1 = vand.u32 4294901760, %v1837_v31  ;;  %v265_v45 = vadd.f32 %v264_v20, %v263_v42  ;;  %v571_v55 = vsub.f32 %v4392_v27, %v6299_v17 }
  0xd2   : > { %6772 = vst [vmem:[#allocation203_spill] sm:$0xff] %v4818_v49  ;;  %6773 = vst [vmem:[#allocation204_spill] sm:$0xff] %v4820_v29  ;;  %v273_v16 = vrot.slane %v272_v59, 2  ;;  %v259_v29 = vrot.slane %v258_v38, 2  ;;  %v3193_v24 = vpack.c.bf16 %v566_v53, %v554_v37  ;;  %v560_v49 = vand.u32 4294901760, %v559_v22 }
  0xd3   : > { %v1850_v9 = vand.u32 4294901760, %v1849_v28  ;;  %v266_v7 = vrot.slane %v265_v45, 2  ;;  %v572_v25 = vand.u32 4294901760, %v571_v55  ;;  %v250_v47 = vrot.slane %v249_v18, 4 }
  0xd4   : > { %v274_v15 = vadd.f32 %v273_v16, %v272_v59  ;;  %v260_v26 = vmax.f32 %v258_v38, %v259_v29  ;;  %3194 = vmatprep.subr.bf16.mxu1 %v3193_v24  ;;  %v6298_v11 = vand.u32 4294901760, %v4398_v39  ;;  %v6296_v53 = vand.u32 4294901760, %v4400_v40 }
  0xd5   : > { %v3577_v23 = vpack.c.bf16 %v1850_v9, %v1838_v1  ;;  %v6295_v22 = vand.u32 4294901760, %v4402_v41  ;;  %v267_v37 = vadd.f32 %v266_v7, %v265_v45  ;;  %v4855_v42 = vpack.c.bf16 %v572_v25, %v560_v49 }
  0xd6   : > { %v275_v31 = vrot.slane %v274_v15, 1  ;;  %v261_v28 = vrot.slane %v260_v26, 1  ;;  %v251_v16 = vmax.f32 %v249_v18, %v250_v47  ;;  %v1843_v38 = vsub.f32 %v4398_v39, %v6298_v11 }
  0xd7   : > { %3578 = vmatprep.subr.bf16.mxu0 %v3577_v23  ;;  %v1855_v29 = vsub.f32 %v4400_v40, %v6296_v53  ;;  %v577_v23 = vsub.f32 %v4402_v41, %v6295_v22  ;;  %v268_v55 = vrot.slane %v267_v37, 1  ;;  %v6293_v25 = vand.u32 4294901760, %v4406_v46 }
  0xd8   : > { %v276_v0 = vadd.f32 %v275_v31, %v274_v15  ;;  %v262_v59 = vmax.f32 %v260_v26, %v261_v28  ;;  %v252_v20 = vrot.slane %v251_v16, 2  ;;  %v1844_v7 = vand.u32 4294901760, %v1843_v38 }
  0xd9   : > { %v1856_v47 = vand.u32 4294901760, %v1855_v29  ;;  %v578_v15 = vand.u32 4294901760, %v577_v23  ;;  %v269_v1 = vadd.f32 %v268_v55, %v267_v37  ;;  %v589_v24 = vsub.f32 %v4406_v46, %v6293_v25 }
  0xda   : > { %v4867_v18 = vand.u32 4294901760, %v276_v0  ;;  %v4869_v49 = vand.u32 4294901760, %v262_v59  ;;  %v253_v9 = vmax.f32 %v251_v16, %v252_v20  ;;  %v6294_v45 = vand.u32 4294901760, %v4410_v48 }
  0xdb   : > { %v4881_v28 = vpack.c.bf16 %v1856_v47, %v1844_v7  ;;  %v6297_v38 = vand.u32 4294901760, %v4413_v50  ;;  %v4884_v29 = vand.u32 4294901760, %v269_v1  ;;  %v590_v16 = vand.u32 4294901760, %v589_v24 }
  0xdc   : > { %6774 = vst [vmem:[#allocation205_spill] sm:$0xff] %v4867_v18  ;;  %6775 = vst [vmem:[#allocation206_spill] sm:$0xff] %v4869_v49  ;;  %v4876_v26 = vsub.f32 %v276_v0, %v4867_v18  ;;  %v4879_v31 = vsub.f32 %v262_v59, %v4869_v49  ;;  %v254_v37 = vrot.slane %v253_v9, 1  ;;  %v1861_v23 = vsub.f32 %v4410_v48, %v6294_v45 }
  0xdd   : > { %6778 = vst [vmem:[#allocation209_spill] sm:$0xff] %v4884_v29  ;;  %v1873_v59 = vsub.f32 %v4413_v50, %v6297_v38  ;;  %v6301_v20 = vand.u32 4294901760, %v4415_v52  ;;  %v4896_v7 = vsub.f32 %v269_v1, %v4884_v29  ;;  %v3197_v25 = vpack.c.bf16 %v590_v16, %v578_v15 }
  0xde   : > { %6776 = vst [vmem:[#allocation207_spill] sm:$0xff] %v4876_v26  ;;  %6777 = vst [vmem:[#allocation208_spill] sm:$0xff] %v4879_v31  ;;  %v6302_v55 = vand.u32 4294901760, %v4876_v26  ;;  %v6300_v0 = vand.u32 4294901760, %v4879_v31  ;;  %v255_v47 = vmax.f32 %v253_v9, %v254_v37  ;;  %v1862_v24 = vand.u32 4294901760, %v1861_v23 }
  0xdf   : > { %6779 = vst [vmem:[#allocation210_spill] sm:$0xff] %v4896_v7  ;;  %v1874_v53 = vand.u32 4294901760, %v1873_v59  ;;  %v583_v38 = vsub.f32 %v4415_v52, %v6301_v20  ;;  %v6303_v11 = vand.u32 4294901760, %v4896_v7  ;;  %v6306_v15 = vand.u32 4294901760, %v4421_v61 }
  0xe0   : > { %v536_v45 = vsub.f32 %v4876_v26, %v6302_v55  ;;  %v1820_v22 = vsub.f32 %v4879_v31, %v6300_v0  ;;  %v4908_v1 = vand.u32 4294901760, %v255_v47  ;;  %v6308_v9 = vand.u32 4294901760, %v4423_v62 }
  0xe1   : > { %v3581_v23 = vpack.c.bf16 %v1874_v53, %v1862_v24  ;;  %v584_v17 = vand.u32 4294901760, %v583_v38  ;;  %v542_v59 = vsub.f32 %v4896_v7, %v6303_v11  ;;  %v595_v20 = vsub.f32 %v4421_v61, %v6306_v15 }
  0xe2   : > { %6780 = vst [vmem:[#allocation211_spill] sm:$0xff] %v4908_v1  ;;  %v537_v37 = vand.u32 4294901760, %v536_v45  ;;  %v1821_v16 = vand.u32 4294901760, %v1820_v22  ;;  %v4916_v0 = vsub.f32 %v255_v47, %v4908_v1  ;;  %v1867_v55 = vsub.f32 %v4423_v62, %v6308_v9 }
  0xe3   : > { %v6307_v53 = vand.u32 4294901760, %v4427_v4  ;;  %v6309_v22 = vand.u32 4294901760, %v4431_v6  ;;  %v6314_v45 = vand.u32 4294901760, %v4434_v10  ;;  %v6317_v38 = vand.u32 4294901760, %v4438_v12 }
  0xe4   : > { %6781 = vst [vmem:[#allocation212_spill] sm:$0xff] %v4916_v0  ;;  %538 = vmatprep.mubr.f32.mxu1 %v537_v37  ;;  %1822 = vmatprep.mubr.f32.mxu0 %v1821_v16  ;;  %v543_v47 = vand.u32 4294901760, %v542_v59  ;;  %v6333_v24 = vand.u32 4294901760, %v4916_v0  ;;  %v596_v11 = vand.u32 4294901760, %v595_v20  ;;  %v1868_v7 = vand.u32 4294901760, %v1867_v55 }
  0xe5   : > { %v1879_v15 = vsub.f32 %v4427_v4, %v6307_v53  ;;  %v601_v37 = vsub.f32 %v4431_v6, %v6309_v22  ;;  %v613_v16 = vsub.f32 %v4434_v10, %v6314_v45  ;;  %v1885_v59 = vsub.f32 %v4438_v12, %v6317_v38 }
  0xe6   : > { %544 = vmatmul.mubr.f32.vlgmr.msra.gmra.mrb[0].mxu1 %v543_v47  ;;  %v1826_v55 = vsub.f32 %v4916_v0, %v6333_v24  ;;  %v3199_v20 = vpack.c.bf16 %v596_v11, %v584_v17  ;;  %v6332_v53 = vand.u32 4294901760, %v4440_v13  ;;  %v6330_v9 = vand.u32 4294901760, %v4447_v33 }
  0xe7   : > { %3196 = vmatpush1.bf16.msra.mxu1 %v4855_v42  ;;  %v1880_v22 = vand.u32 4294901760, %v1879_v15  ;;  %v602_v31 = vand.u32 4294901760, %v601_v37  ;;  %v614_v26 = vand.u32 4294901760, %v613_v16  ;;  %v1886_v45 = vand.u32 4294901760, %v1885_v59  ;;  %935 = vmatprep.mubr.f32.mxu1 %v4867_v18  ;;  %v6791_v18 = vld [vmem:[#allocation78_spill] sm:$0xff] }
  0xe8   : > { %v1827_v1 = vand.u32 4294901760, %v1826_v55  ;;  %3198 = vmatprep.subr.bf16.mxu1 %v3197_v25  ;;  %v1897_v47 = vsub.f32 %v4440_v13, %v6332_v53  ;;  %v607_v17 = vsub.f32 %v4447_v33, %v6330_v9  ;;  %v6320_v11 = vand.u32 4294901760, %v4449_v34 }
  0xe9   : > { %v3583_v38 = vpack.c.bf16 %v1880_v22, %v1868_v7  ;;  %v3201_v42 = vpack.c.bf16 %v614_v26, %v602_v31  ;;  %v6318_v15 = vand.u32 4294901760, %v4453_v43  ;;  %v6319_v37 = vand.u32 4294901760, %v4455_v44 }
  0xea   : > { %1828 = vmatmul.mubr.f32.vlgmr.msra.gmra.mrb[0].mxu0 %v1827_v1  ;;  %v1898_v16 = vand.u32 4294901760, %v1897_v47  ;;  %v608_v59 = vand.u32 4294901760, %v607_v17  ;;  %v619_v25 = vsub.f32 %v4449_v34, %v6320_v11  ;;  %v6322_v55 = vand.u32 4294901760, %v4459_v51 }
  0xeb   : > { %3580 = vmatpush1.bf16.msra.mxu0 %v4881_v28  ;;  %3200 = vmatpush1.bf16.msra.mxu1 %v3199_v20  ;;  %v1891_v26 = vsub.f32 %v4453_v43, %v6318_v15  ;;  %v1903_v31 = vsub.f32 %v4455_v44, %v6319_v37  ;;  %v6321_v7 = vand.u32 4294901760, %v4463_v56  ;;  %v6327_v1 = vand.u32 4294901760, %v4467_v58 }
  0xec   : > { %3582 = vmatprep.subr.bf16.mxu0 %v3581_v23  ;;  %3202 = vmatprep.subr.bf16.mxu1 %v3201_v42  ;;  %v3585_v22 = vpack.c.bf16 %v1898_v16, %v1886_v45  ;;  %v620_v47 = vand.u32 4294901760, %v619_v25  ;;  %v625_v28 = vsub.f32 %v4459_v51, %v6322_v55  ;;  %v6323_v20 = vand.u32 4294901760, %v4470_v63 }
  0xed   : > { %v1892_v17 = vand.u32 4294901760, %v1891_v26  ;;  %v1904_v15 = vand.u32 4294901760, %v1903_v31  ;;  %v637_v37 = vsub.f32 %v4463_v56, %v6321_v7  ;;  %v1909_v11 = vsub.f32 %v4467_v58, %v6327_v1  ;;  %2219 = vmatprep.mubr.f32.mxu0 %v4869_v49  ;;  %v6784_v1 = vld [vmem:[#allocation68_spill] sm:$0xff] }
  0xee   : > { %v3203_v23 = vpack.c.bf16 %v620_v47, %v608_v59  ;;  %v626_v45 = vand.u32 4294901760, %v625_v28  ;;  %v1921_v42 = vsub.f32 %v4470_v63, %v6323_v20  ;;  %v6326_v16 = vand.u32 4294901760, %v4473_v19 }
  0xef   : > { %3584 = vmatpush1.bf16.msra.mxu0 %v3583_v38  ;;  %v3587_v25 = vpack.c.bf16 %v1904_v15, %v1892_v17  ;;  %v638_v26 = vand.u32 4294901760, %v637_v37  ;;  %v1910_v31 = vand.u32 4294901760, %v1909_v11  ;;  %v6325_v7 = vand.u32 4294901760, %v4477_v35 }
  0xf0   : > { %3586 = vmatprep.subr.bf16.mxu0 %v3585_v22  ;;  %3204 = vmatpush1.bf16.msra.mxu1 %v3203_v23  ;;  %v1922_v55 = vand.u32 4294901760, %v1921_v42  ;;  %v631_v59 = vsub.f32 %v4473_v19, %v6326_v16  ;;  %v6324_v47 = vand.u32 4294901760, %v4481_v30  ;;  %v6328_v28 = vand.u32 4294901760, %v4483_v57 }
  0xf1   : > { %v3205_v20 = vpack.c.bf16 %v638_v26, %v626_v45  ;;  %v643_v38 = vsub.f32 %v4477_v35, %v6325_v7  ;;  %v6329_v11 = vand.u32 4294901760, %v4487_v5  ;;  %v6331_v15 = vand.u32 4294901760, %v4489_v3  ;;  %v6782_v26 = vld [vmem:[#allocation64_spill] sm:$0xff]  ;;  %v6783_v7 = vld [vmem:[#allocation66_spill] sm:$0xff] }
  0xf2   : > { %v3589_v37 = vpack.c.bf16 %v1922_v55, %v1910_v31  ;;  %v632_v22 = vand.u32 4294901760, %v631_v59  ;;  %v1915_v17 = vsub.f32 %v4481_v30, %v6324_v47  ;;  %v1927_v23 = vsub.f32 %v4483_v57, %v6328_v28 }
  0xf3   : > { %3588 = vmatpush1.bf16.msra.mxu0 %v3587_v25  ;;  %3206 = vmatprep.subr.bf16.mxu1 %v3205_v20  ;;  %v644_v45 = vand.u32 4294901760, %v643_v38  ;;  %v649_v42 = vsub.f32 %v4487_v5, %v6329_v11  ;;  %v661_v55 = vsub.f32 %v4489_v3, %v6331_v15  ;;  %v6334_v31 = vand.u32 4294901760, %v6782_v26 }
  0xf4   : > { %3590 = vmatprep.subr.bf16.mxu0 %v3589_v37  ;;  %v1916_v59 = vand.u32 4294901760, %v1915_v17  ;;  %v1928_v47 = vand.u32 4294901760, %v1927_v23  ;;  %v6335_v16 = vand.u32 4294901760, %v6783_v7  ;;  %v6338_v28 = vand.u32 4294901760, %v6784_v1  ;;  %v6785_v17 = vld [vmem:[#allocation69_spill] sm:$0xff] }
  0xf5   : > { %v3207_v25 = vpack.c.bf16 %v644_v45, %v632_v22  ;;  %v650_v20 = vand.u32 4294901760, %v649_v42  ;;  %v662_v38 = vand.u32 4294901760, %v661_v55  ;;  %v1933_v11 = vsub.f32 %v6782_v26, %v6334_v31  ;;  %v6786_v45 = vld [vmem:[#allocation71_spill] sm:$0xff]  ;;  %v6787_v55 = vld [vmem:[#allocation72_spill] sm:$0xff]  ;;  %v6825_v26 = vld [vmem:[#allocation129_spill] sm:$0xff] }
  0xf6   : > { %v3591_v9 = vpack.c.bf16 %v1928_v47, %v1916_v59  ;;  %v1945_v15 = vsub.f32 %v6783_v7, %v6335_v16  ;;  %v655_v37 = vsub.f32 %v6784_v1, %v6338_v28  ;;  %v6339_v23 = vand.u32 4294901760, %v6785_v17  ;;  %v6788_v16 = vld [vmem:[#allocation74_spill] sm:$0xff] }
  0xf7   : > { %3208 = vmatpush1.bf16.msra.mxu1 %v3207_v25  ;;  %v3209_v53 = vpack.c.bf16 %v662_v38, %v650_v20  ;;  %v1934_v22 = vand.u32 4294901760, %v1933_v11  ;;  %v6345_v42 = vand.u32 4294901760, %v6786_v45  ;;  %v6346_v24 = vand.u32 4294901760, %v6787_v55  ;;  %v6789_v20 = vld [vmem:[#allocation75_spill] sm:$0xff] }
  0xf8   : > { %3592 = vmatpush1.bf16.msra.mxu0 %v3591_v9  ;;  %v1946_v31 = vand.u32 4294901760, %v1945_v15  ;;  %v656_v47 = vand.u32 4294901760, %v655_v37  ;;  %v667_v59 = vsub.f32 %v6785_v17, %v6339_v23  ;;  %v6348_v49 = vand.u32 4294901760, %v6788_v16  ;;  %v6790_v9 = vld [vmem:[#allocation76_spill] sm:$0xff] }
  0xf9   : > { %3210 = vmatprep.subr.bf16.mxu1 %v3209_v53  ;;  %v1939_v25 = vsub.f32 %v6786_v45, %v6345_v42  ;;  %v1951_v11 = vsub.f32 %v6787_v55, %v6346_v24  ;;  %v6352_v38 = vand.u32 4294901760, %v6789_v20  ;;  %v6353_v15 = vand.u32 4294901760, %v6790_v9  ;;  %v6793_v45 = vld [vmem:[#allocation81_spill] sm:$0xff] }
  0xfa   : > { %v3593_v37 = vpack.c.bf16 %v1946_v31, %v1934_v22  ;;  %v668_v28 = vand.u32 4294901760, %v667_v59  ;;  %v673_v23 = vsub.f32 %v6788_v16, %v6348_v49  ;;  %v6355_v53 = vand.u32 4294901760, %v6791_v18  ;;  %v6792_v59 = vld [vmem:[#allocation80_spill] sm:$0xff] }
  0xfb   : > { %v1940_v0 = vand.u32 4294901760, %v1939_v25  ;;  %v1952_v17 = vand.u32 4294901760, %v1951_v11  ;;  %v685_v42 = vsub.f32 %v6789_v20, %v6352_v38  ;;  %v1957_v24 = vsub.f32 %v6790_v9, %v6353_v15 }
  0xfc   : > { %3594 = vmatprep.subr.bf16.mxu0 %v3593_v37  ;;  %v3211_v55 = vpack.c.bf16 %v668_v28, %v656_v47  ;;  %v674_v31 = vand.u32 4294901760, %v673_v23  ;;  %v1969_v22 = vsub.f32 %v6791_v18, %v6355_v53  ;;  %v6356_v49 = vand.u32 4294901760, %v6792_v59  ;;  %v6794_v37 = vld [vmem:[#allocation83_spill] sm:$0xff]  ;;  %v6795_v23 = vld [vmem:[#allocation84_spill] sm:$0xff] }
  0xfd   : > { %v3595_v16 = vpack.c.bf16 %v1952_v17, %v1940_v0  ;;  %v686_v25 = vand.u32 4294901760, %v685_v42  ;;  %v1958_v11 = vand.u32 4294901760, %v1957_v24  ;;  %v6358_v1 = vand.u32 4294901760, %v6793_v45  ;;  %v6796_v17 = vld [vmem:[#allocation86_spill] sm:$0xff]  ;;  %v6797_v42 = vld [vmem:[#allocation87_spill] sm:$0xff] }
  0xfe   : > { %3212 = vmatpush1.bf16.msra.mxu1 %v3211_v55  ;;  %v1970_v38 = vand.u32 4294901760, %v1969_v22  ;;  %v679_v15 = vsub.f32 %v6792_v59, %v6356_v49  ;;  %v6359_v28 = vand.u32 4294901760, %v6794_v37  ;;  %v6363_v47 = vand.u32 4294901760, %v6795_v23 }
  0xff   : > { %3596 = vmatpush1.bf16.msra.mxu0 %v3595_v16  ;;  %v3213_v9 = vpack.c.bf16 %v686_v25, %v674_v31  ;;  %v691_v0 = vsub.f32 %v6793_v45, %v6358_v1  ;;  %v6364_v24 = vand.u32 4294901760, %v6796_v17  ;;  %v6366_v53 = vand.u32 4294901760, %v6797_v42  ;;  %v6800_v45 = vld [vmem:[#allocation92_spill] sm:$0xff] }
 0x100   : > { %v3597_v55 = vpack.c.bf16 %v1970_v38, %v1958_v11  ;;  %v680_v22 = vand.u32 4294901760, %v679_v15  ;;  %v1963_v49 = vsub.f32 %v6794_v37, %v6359_v28  ;;  %v1975_v59 = vsub.f32 %v6795_v23, %v6363_v47  ;;  %v6798_v38 = vld [vmem:[#allocation88_spill] sm:$0xff]  ;;  %v6799_v28 = vld [vmem:[#allocation90_spill] sm:$0xff] }
 0x101   : > { %3214 = vmatprep.subr.bf16.mxu1 %v3213_v9  ;;  %v692_v16 = vand.u32 4294901760, %v691_v0  ;;  %v697_v31 = vsub.f32 %v6796_v17, %v6364_v24  ;;  %v709_v25 = vsub.f32 %v6797_v42, %v6366_v53  ;;  %v6369_v15 = vand.u32 4294901760, %v6798_v38 }
 0x102   : > { %3598 = vmatprep.subr.bf16.mxu0 %v3597_v55  ;;  %v1964_v11 = vand.u32 4294901760, %v1963_v49  ;;  %v1976_v1 = vand.u32 4294901760, %v1975_v59  ;;  %v6370_v37 = vand.u32 4294901760, %v6799_v28  ;;  %v6372_v18 = vand.u32 4294901760, %v6800_v45  ;;  %v6801_v59 = vld [vmem:[#allocation93_spill] sm:$0xff] }
 0x103   : > { %v3215_v47 = vpack.c.bf16 %v692_v16, %v680_v22  ;;  %v698_v9 = vand.u32 4294901760, %v697_v31  ;;  %v710_v0 = vand.u32 4294901760, %v709_v25  ;;  %v1981_v24 = vsub.f32 %v6798_v38, %v6369_v15  ;;  %v6802_v16 = vld [vmem:[#allocation95_spill] sm:$0xff]  ;;  %v6803_v25 = vld [vmem:[#allocation96_spill] sm:$0xff] }
 0x104   : > { %v3599_v17 = vpack.c.bf16 %v1976_v1, %v1964_v11  ;;  %v1993_v53 = vsub.f32 %v6799_v28, %v6370_v37  ;;  %v703_v49 = vsub.f32 %v6800_v45, %v6372_v18  ;;  %v6373_v55 = vand.u32 4294901760, %v6801_v59  ;;  %v6804_v37 = vld [vmem:[#allocation98_spill] sm:$0xff] }
 0x105   : > { %3216 = vmatpush1.bf16.msra.mxu1 %v3215_v47  ;;  %v3217_v42 = vpack.c.bf16 %v710_v0, %v698_v9  ;;  %v1982_v22 = vand.u32 4294901760, %v1981_v24  ;;  %v6377_v31 = vand.u32 4294901760, %v6802_v16  ;;  %v6378_v23 = vand.u32 4294901760, %v6803_v25  ;;  %v6805_v9 = vld [vmem:[#allocation99_spill] sm:$0xff] }
 0x106   : > { %3600 = vmatpush1.bf16.msra.mxu0 %v3599_v17  ;;  %v1994_v15 = vand.u32 4294901760, %v1993_v53  ;;  %v704_v1 = vand.u32 4294901760, %v703_v49  ;;  %v715_v11 = vsub.f32 %v6801_v59, %v6373_v55  ;;  %v6380_v28 = vand.u32 4294901760, %v6804_v37  ;;  %v6806_v17 = vld [vmem:[#allocation100_spill] sm:$0xff]  ;;  %v6807_v59 = vld [vmem:[#allocation102_spill] sm:$0xff] }
 0x107   : > { %3218 = vmatprep.subr.bf16.mxu1 %v3217_v42  ;;  %v1987_v47 = vsub.f32 %v6802_v16, %v6377_v31  ;;  %v1999_v24 = vsub.f32 %v6803_v25, %v6378_v23  ;;  %v6384_v0 = vand.u32 4294901760, %v6805_v9  ;;  %v6385_v53 = vand.u32 4294901760, %v6806_v17  ;;  %v6809_v16 = vld [vmem:[#allocation105_spill] sm:$0xff] }
 0x108   : > { %v3601_v49 = vpack.c.bf16 %v1994_v15, %v1982_v22  ;;  %v716_v18 = vand.u32 4294901760, %v715_v11  ;;  %v721_v55 = vsub.f32 %v6804_v37, %v6380_v28  ;;  %v6387_v42 = vand.u32 4294901760, %v6807_v59  ;;  %v6808_v11 = vld [vmem:[#allocation104_spill] sm:$0xff] }
 0x109   : > { %v1988_v45 = vand.u32 4294901760, %v1987_v47  ;;  %v2000_v38 = vand.u32 4294901760, %v1999_v24  ;;  %v733_v31 = vsub.f32 %v6805_v9, %v6384_v0  ;;  %v2005_v23 = vsub.f32 %v6806_v17, %v6385_v53 }
 0x10a   : > { %3602 = vmatprep.subr.bf16.mxu0 %v3601_v49  ;;  %v3219_v25 = vpack.c.bf16 %v716_v18, %v704_v1  ;;  %v722_v15 = vand.u32 4294901760, %v721_v55  ;;  %v2017_v22 = vsub.f32 %v6807_v59, %v6387_v42  ;;  %v6388_v28 = vand.u32 4294901760, %v6808_v11  ;;  %v6810_v49 = vld [vmem:[#allocation107_spill] sm:$0xff]  ;;  %v6811_v55 = vld [vmem:[#allocation108_spill] sm:$0xff] }
 0x10b   : > { %v3603_v37 = vpack.c.bf16 %v2000_v38, %v1988_v45  ;;  %v734_v47 = vand.u32 4294901760, %v733_v31  ;;  %v2006_v24 = vand.u32 4294901760, %v2005_v23  ;;  %v6390_v20 = vand.u32 4294901760, %v6809_v16  ;;  %v6812_v38 = vld [vmem:[#allocation110_spill] sm:$0xff]  ;;  %v6813_v31 = vld [vmem:[#allocation111_spill] sm:$0xff] }
 0x10c   : > { %3220 = vmatpush1.bf16.msra.mxu1 %v3219_v25  ;;  %v2018_v0 = vand.u32 4294901760, %v2017_v22  ;;  %v727_v53 = vsub.f32 %v6808_v11, %v6388_v28  ;;  %v6391_v18 = vand.u32 4294901760, %v6810_v49  ;;  %v6395_v1 = vand.u32 4294901760, %v6811_v55 }
 0x10d   : > { %3604 = vmatpush1.bf16.msra.mxu0 %v3603_v37  ;;  %v3221_v17 = vpack.c.bf16 %v734_v47, %v722_v15  ;;  %v739_v45 = vsub.f32 %v6809_v16, %v6390_v20  ;;  %v6396_v23 = vand.u32 4294901760, %v6812_v38  ;;  %v6398_v42 = vand.u32 4294901760, %v6813_v31  ;;  %v6816_v16 = vld [vmem:[#allocation116_spill] sm:$0xff] }
 0x10e   : > { %v3605_v25 = vpack.c.bf16 %v2018_v0, %v2006_v24  ;;  %v728_v22 = vand.u32 4294901760, %v727_v53  ;;  %v2011_v28 = vsub.f32 %v6810_v49, %v6391_v18  ;;  %v2023_v11 = vsub.f32 %v6811_v55, %v6395_v1  ;;  %v6814_v0 = vld [vmem:[#allocation112_spill] sm:$0xff]  ;;  %v6815_v18 = vld [vmem:[#allocation114_spill] sm:$0xff] }
 0x10f   : > { %3222 = vmatprep.subr.bf16.mxu1 %v3221_v17  ;;  %v740_v37 = vand.u32 4294901760, %v739_v45  ;;  %v745_v15 = vsub.f32 %v6812_v38, %v6396_v23  ;;  %v757_v47 = vsub.f32 %v6813_v31, %v6398_v42  ;;  %v6401_v53 = vand.u32 4294901760, %v6814_v0 }
 0x110   : > { %3606 = vmatprep.subr.bf16.mxu0 %v3605_v25  ;;  %v2012_v24 = vand.u32 4294901760, %v2011_v28  ;;  %v2024_v20 = vand.u32 4294901760, %v2023_v11  ;;  %v6402_v49 = vand.u32 4294901760, %v6815_v18  ;;  %v6404_v59 = vand.u32 4294901760, %v6816_v16  ;;  %v6817_v11 = vld [vmem:[#allocation117_spill] sm:$0xff] }
 0x111   : > { %v3223_v1 = vpack.c.bf16 %v740_v37, %v728_v22  ;;  %v746_v17 = vand.u32 4294901760, %v745_v15  ;;  %v758_v45 = vand.u32 4294901760, %v757_v47  ;;  %v2029_v23 = vsub.f32 %v6814_v0, %v6401_v53  ;;  %v6818_v37 = vld [vmem:[#allocation119_spill] sm:$0xff]  ;;  %v6819_v47 = vld [vmem:[#allocation120_spill] sm:$0xff] }
 0x112   : > { %v3607_v38 = vpack.c.bf16 %v2024_v20, %v2012_v24  ;;  %v2041_v42 = vsub.f32 %v6815_v18, %v6402_v49  ;;  %v751_v28 = vsub.f32 %v6816_v16, %v6404_v59  ;;  %v6405_v25 = vand.u32 4294901760, %v6817_v11  ;;  %v6820_v49 = vld [vmem:[#allocation122_spill] sm:$0xff] }
 0x113   : > { %3224 = vmatpush1.bf16.msra.mxu1 %v3223_v1  ;;  %v3225_v31 = vpack.c.bf16 %v758_v45, %v746_v17  ;;  %v2030_v22 = vand.u32 4294901760, %v2029_v23  ;;  %v6409_v15 = vand.u32 4294901760, %v6818_v37  ;;  %v6410_v55 = vand.u32 4294901760, %v6819_v47  ;;  %v6821_v17 = vld [vmem:[#allocation123_spill] sm:$0xff] }
 0x114   : > { %3608 = vmatpush1.bf16.msra.mxu0 %v3607_v38  ;;  %v2042_v53 = vand.u32 4294901760, %v2041_v42  ;;  %v752_v20 = vand.u32 4294901760, %v751_v28  ;;  %v763_v24 = vsub.f32 %v6817_v11, %v6405_v25  ;;  %v6412_v18 = vand.u32 4294901760, %v6820_v49  ;;  %v6822_v38 = vld [vmem:[#allocation124_spill] sm:$0xff]  ;;  %v6823_v11 = vld [vmem:[#allocation126_spill] sm:$0xff] }
 0x115   : > { %3226 = vmatprep.subr.bf16.mxu1 %v3225_v31  ;;  %v2035_v1 = vsub.f32 %v6818_v37, %v6409_v15  ;;  %v2047_v23 = vsub.f32 %v6819_v47, %v6410_v55  ;;  %v6416_v45 = vand.u32 4294901760, %v6821_v17  ;;  %v6417_v42 = vand.u32 4294901760, %v6822_v38 }
 0x116   : > { %v3609_v28 = vpack.c.bf16 %v2042_v53, %v2030_v22  ;;  %v764_v59 = vand.u32 4294901760, %v763_v24  ;;  %v769_v25 = vsub.f32 %v6820_v49, %v6412_v18  ;;  %v6419_v31 = vand.u32 4294901760, %v6823_v11  ;;  %v6824_v24 = vld [vmem:[#allocation128_spill] sm:$0xff] }
 0x117   : > { %v2036_v16 = vand.u32 4294901760, %v2035_v1  ;;  %v2048_v0 = vand.u32 4294901760, %v2047_v23  ;;  %v781_v15 = vsub.f32 %v6821_v17, %v6416_v45  ;;  %v2053_v55 = vsub.f32 %v6822_v38, %v6417_v42 }
 0x118   : > { %3610 = vmatprep.subr.bf16.mxu0 %v3609_v28  ;;  %v3227_v9 = vpack.c.bf16 %v764_v59, %v752_v20  ;;  %v770_v53 = vand.u32 4294901760, %v769_v25  ;;  %v2065_v22 = vsub.f32 %v6823_v11, %v6419_v31  ;;  %v6420_v18 = vand.u32 4294901760, %v6824_v24  ;;  %v6826_v28 = vld [vmem:[#allocation131_spill] sm:$0xff]  ;;  %v6827_v25 = vld [vmem:[#allocation132_spill] sm:$0xff] }
 0x119   : > { %v3611_v7 = vpack.c.bf16 %v2048_v0, %v2036_v16  ;;  %v782_v1 = vand.u32 4294901760, %v781_v15  ;;  %v2054_v23 = vand.u32 4294901760, %v2053_v55  ;;  %v6422_v49 = vand.u32 4294901760, %v6825_v26  ;;  %v6828_v0 = vld [vmem:[#allocation134_spill] sm:$0xff]  ;;  %v6829_v15 = vld [vmem:[#allocation135_spill] sm:$0xff] }
 0x11a   : > { %3228 = vmatpush1.bf16.msra.mxu1 %v3227_v9  ;;  %v2066_v45 = vand.u32 4294901760, %v2065_v22  ;;  %v775_v42 = vsub.f32 %v6824_v24, %v6420_v18  ;;  %v6423_v59 = vand.u32 4294901760, %v6826_v28  ;;  %v6427_v20 = vand.u32 4294901760, %v6827_v25 }
 0x11b   : > { %3612 = vmatpush1.bf16.msra.mxu0 %v3611_v7  ;;  %v3229_v38 = vpack.c.bf16 %v782_v1, %v770_v53  ;;  %v787_v16 = vsub.f32 %v6825_v26, %v6422_v49  ;;  %v6428_v55 = vand.u32 4294901760, %v6828_v0  ;;  %v6430_v31 = vand.u32 4294901760, %v6829_v15  ;;  %v6832_v26 = vld [vmem:[#allocation140_spill] sm:$0xff] }
 0x11c   : > { %v3613_v9 = vpack.c.bf16 %v2066_v45, %v2054_v23  ;;  %v776_v22 = vand.u32 4294901760, %v775_v42  ;;  %v2059_v18 = vsub.f32 %v6826_v28, %v6423_v59  ;;  %v2071_v24 = vsub.f32 %v6827_v25, %v6427_v20  ;;  %v6830_v45 = vld [vmem:[#allocation136_spill] sm:$0xff]  ;;  %v6831_v59 = vld [vmem:[#allocation138_spill] sm:$0xff] }
 0x11d   : > { %3230 = vmatprep.subr.bf16.mxu1 %v3229_v38  ;;  %v788_v7 = vand.u32 4294901760, %v787_v16  ;;  %v793_v53 = vsub.f32 %v6828_v0, %v6428_v55  ;;  %v805_v1 = vsub.f32 %v6829_v15, %v6430_v31  ;;  %v6433_v42 = vand.u32 4294901760, %v6830_v45 }
 0x11e   : > { %3614 = vmatprep.subr.bf16.mxu0 %v3613_v9  ;;  %v2060_v23 = vand.u32 4294901760, %v2059_v18  ;;  %v2072_v49 = vand.u32 4294901760, %v2071_v24  ;;  %v6434_v28 = vand.u32 4294901760, %v6831_v59  ;;  %v6436_v11 = vand.u32 4294901760, %v6832_v26  ;;  %v6833_v24 = vld [vmem:[#allocation141_spill] sm:$0xff] }
 0x11f   : > { %v3231_v20 = vpack.c.bf16 %v788_v7, %v776_v22  ;;  %v794_v38 = vand.u32 4294901760, %v793_v53  ;;  %v806_v16 = vand.u32 4294901760, %v805_v1  ;;  %v2077_v55 = vsub.f32 %v6830_v45, %v6433_v42  ;;  %v6834_v7 = vld [vmem:[#allocation143_spill] sm:$0xff]  ;;  %v6835_v1 = vld [vmem:[#allocation144_spill] sm:$0xff] }
 0x120   : > { %v3615_v0 = vpack.c.bf16 %v2072_v49, %v2060_v23  ;;  %v2089_v31 = vsub.f32 %v6831_v59, %v6434_v28  ;;  %v799_v18 = vsub.f32 %v6832_v26, %v6436_v11  ;;  %v6437_v9 = vand.u32 4294901760, %v6833_v24  ;;  %v6836_v28 = vld [vmem:[#allocation146_spill] sm:$0xff] }
 0x121   : > { %3232 = vmatpush1.bf16.msra.mxu1 %v3231_v20  ;;  %v3233_v15 = vpack.c.bf16 %v806_v16, %v794_v38  ;;  %v2078_v22 = vand.u32 4294901760, %v2077_v55  ;;  %v6441_v53 = vand.u32 4294901760, %v6834_v7  ;;  %v6442_v25 = vand.u32 4294901760, %v6835_v1  ;;  %v6837_v38 = vld [vmem:[#allocation147_spill] sm:$0xff] }
 0x122   : > { %3616 = vmatpush1.bf16.msra.mxu0 %v3615_v0  ;;  %v2090_v42 = vand.u32 4294901760, %v2089_v31  ;;  %v800_v49 = vand.u32 4294901760, %v799_v18  ;;  %v811_v23 = vsub.f32 %v6833_v24, %v6437_v9  ;;  %v6444_v59 = vand.u32 4294901760, %v6836_v28  ;;  %v6838_v0 = vld [vmem:[#allocation148_spill] sm:$0xff]  ;;  %v6839_v24 = vld [vmem:[#allocation150_spill] sm:$0xff] }
 0x123   : > { %3234 = vmatprep.subr.bf16.mxu1 %v3233_v15  ;;  %v2083_v20 = vsub.f32 %v6834_v7, %v6441_v53  ;;  %v2095_v55 = vsub.f32 %v6835_v1, %v6442_v25  ;;  %v6448_v16 = vand.u32 4294901760, %v6837_v38  ;;  %v6449_v31 = vand.u32 4294901760, %v6838_v0  ;;  %v6841_v7 = vld [vmem:[#allocation153_spill] sm:$0xff] }
 0x124   : > { %v3617_v18 = vpack.c.bf16 %v2090_v42, %v2078_v22  ;;  %v812_v11 = vand.u32 4294901760, %v811_v23  ;;  %v817_v9 = vsub.f32 %v6836_v28, %v6444_v59  ;;  %v6451_v15 = vand.u32 4294901760, %v6839_v24  ;;  %v6840_v23 = vld [vmem:[#allocation152_spill] sm:$0xff] }
 0x125   : > { %v2084_v26 = vand.u32 4294901760, %v2083_v20  ;;  %v2096_v45 = vand.u32 4294901760, %v2095_v55  ;;  %v829_v53 = vsub.f32 %v6837_v38, %v6448_v16  ;;  %v2101_v25 = vsub.f32 %v6838_v0, %v6449_v31 }
 0x126   : > { %3618 = vmatprep.subr.bf16.mxu0 %v3617_v18  ;;  %v3235_v1 = vpack.c.bf16 %v812_v11, %v800_v49  ;;  %v818_v42 = vand.u32 4294901760, %v817_v9  ;;  %v2113_v22 = vsub.f32 %v6839_v24, %v6451_v15  ;;  %v6452_v59 = vand.u32 4294901760, %v6840_v23  ;;  %v6842_v18 = vld [vmem:[#allocation155_spill] sm:$0xff]  ;;  %v6843_v9 = vld [vmem:[#allocation156_spill] sm:$0xff] }
 0x127   : > { %v3619_v28 = vpack.c.bf16 %v2096_v45, %v2084_v26  ;;  %v830_v20 = vand.u32 4294901760, %v829_v53  ;;  %v2102_v55 = vand.u32 4294901760, %v2101_v25  ;;  %v6454_v17 = vand.u32 4294901760, %v6841_v7  ;;  %v6844_v45 = vld [vmem:[#allocation158_spill] sm:$0xff]  ;;  %v6845_v53 = vld [vmem:[#allocation159_spill] sm:$0xff] }
 0x128   : > { %3236 = vmatpush1.bf16.msra.mxu1 %v3235_v1  ;;  %v2114_v16 = vand.u32 4294901760, %v2113_v22  ;;  %v823_v31 = vsub.f32 %v6840_v23, %v6452_v59  ;;  %v6455_v11 = vand.u32 4294901760, %v6842_v18  ;;  %v6459_v49 = vand.u32 4294901760, %v6843_v9 }
 0x129   : > { %3620 = vmatpush1.bf16.msra.mxu0 %v3619_v28  ;;  %v3237_v0 = vpack.c.bf16 %v830_v20, %v818_v42  ;;  %v835_v26 = vsub.f32 %v6841_v7, %v6454_v17  ;;  %v6460_v25 = vand.u32 4294901760, %v6844_v45  ;;  %v6462_v15 = vand.u32 4294901760, %v6845_v53  ;;  %v6848_v7 = vld [vmem:[#allocation164_spill] sm:$0xff] }
 0x12a   : > { %v3621_v1 = vpack.c.bf16 %v2114_v16, %v2102_v55  ;;  %v824_v22 = vand.u32 4294901760, %v823_v31  ;;  %v2107_v59 = vsub.f32 %v6842_v18, %v6455_v11  ;;  %v2119_v23 = vsub.f32 %v6843_v9, %v6459_v49  ;;  %v6846_v16 = vld [vmem:[#allocation160_spill] sm:$0xff]  ;;  %v6847_v11 = vld [vmem:[#allocation162_spill] sm:$0xff] }
 0x12b   : > { %3238 = vmatprep.subr.bf16.mxu1 %v3237_v0  ;;  %v836_v28 = vand.u32 4294901760, %v835_v26  ;;  %v841_v42 = vsub.f32 %v6844_v45, %v6460_v25  ;;  %v853_v20 = vsub.f32 %v6845_v53, %v6462_v15  ;;  %v6465_v31 = vand.u32 4294901760, %v6846_v16 }
 0x12c   : > { %3622 = vmatprep.subr.bf16.mxu0 %v3621_v1  ;;  %v2108_v55 = vand.u32 4294901760, %v2107_v59  ;;  %v2120_v17 = vand.u32 4294901760, %v2119_v23  ;;  %v6466_v18 = vand.u32 4294901760, %v6847_v11  ;;  %v6468_v24 = vand.u32 4294901760, %v6848_v7  ;;  %v6849_v23 = vld [vmem:[#allocation165_spill] sm:$0xff] }
 0x12d   : > { %v3239_v49 = vpack.c.bf16 %v836_v28, %v824_v22  ;;  %v842_v0 = vand.u32 4294901760, %v841_v42  ;;  %v854_v26 = vand.u32 4294901760, %v853_v20  ;;  %v2125_v25 = vsub.f32 %v6846_v16, %v6465_v31  ;;  %v6850_v28 = vld [vmem:[#allocation167_spill] sm:$0xff]  ;;  %v6851_v20 = vld [vmem:[#allocation168_spill] sm:$0xff] }
 0x12e   : > { %v3623_v45 = vpack.c.bf16 %v2120_v17, %v2108_v55  ;;  %v2137_v15 = vsub.f32 %v6847_v11, %v6466_v18  ;;  %v847_v59 = vsub.f32 %v6848_v7, %v6468_v24  ;;  %v6469_v1 = vand.u32 4294901760, %v6849_v23  ;;  %v6852_v18 = vld [vmem:[#allocation170_spill] sm:$0xff] }
 0x12f   : > { %3240 = vmatpush1.bf16.msra.mxu1 %v3239_v49  ;;  %v3241_v53 = vpack.c.bf16 %v854_v26, %v842_v0  ;;  %v2126_v22 = vand.u32 4294901760, %v2125_v25  ;;  %v6472_v42 = vand.u32 4294901760, %v6850_v28  ;;  %v6473_v9 = vand.u32 4294901760, %v6851_v20  ;;  %v6853_v0 = vld [vmem:[#allocation171_spill] sm:$0xff] }
 0x130   : > { %3624 = vmatpush1.bf16.msra.mxu0 %v3623_v45  ;;  %v2138_v31 = vand.u32 4294901760, %v2137_v15  ;;  %v848_v17 = vand.u32 4294901760, %v847_v59  ;;  %v859_v55 = vsub.f32 %v6849_v23, %v6469_v1  ;;  %v6475_v11 = vand.u32 4294901760, %v6852_v18  ;;  %v6854_v45 = vld [vmem:[#allocation172_spill] sm:$0xff] }
 0x131   : > { %3242 = vmatprep.subr.bf16.mxu1 %v3241_v53  ;;  %v2131_v49 = vsub.f32 %v6850_v28, %v6472_v42  ;;  %v2143_v25 = vsub.f32 %v6851_v20, %v6473_v9  ;;  %v6479_v26 = vand.u32 4294901760, %v6853_v0  ;;  %v6480_v15 = vand.u32 4294901760, %v6854_v45  ;;  %v6856_v28 = vld [vmem:[#allocation177_spill] sm:$0xff] }
 0x132   : > { %v3625_v59 = vpack.c.bf16 %v2138_v31, %v2126_v22  ;;  %v860_v24 = vand.u32 4294901760, %v859_v55  ;;  %v865_v1 = vsub.f32 %v6852_v18, %v6475_v11  ;;  %v6482_v53 = vand.u32 4294901760, %v4750_v54  ;;  %v6855_v55 = vld [vmem:[#allocation176_spill] sm:$0xff] }
 0x133   : > { %v2132_v23 = vand.u32 4294901760, %v2131_v49  ;;  %v2144_v7 = vand.u32 4294901760, %v2143_v25  ;;  %v877_v42 = vsub.f32 %v6853_v0, %v6479_v26  ;;  %v2149_v9 = vsub.f32 %v6854_v45, %v6480_v15  ;;  %v6923_v0 = vld [vmem:[#allocation69_spill] sm:$0xff] }
 0x134   : > { %3626 = vmatprep.subr.bf16.mxu0 %v3625_v59  ;;  %v3243_v20 = vpack.c.bf16 %v860_v24, %v848_v17  ;;  %v866_v31 = vand.u32 4294901760, %v865_v1  ;;  %v2161_v22 = vsub.f32 %v4750_v54, %v6482_v53  ;;  %v6483_v11 = vand.u32 4294901760, %v6855_v55  ;;  %v6857_v59 = vld [vmem:[#allocation179_spill] sm:$0xff]  ;;  %v6858_v1 = vld [vmem:[#allocation180_spill] sm:$0xff]  ;;  %v6916_v54 = vld [vmem:[#allocation194_spill] sm:$0xff] }
 0x135   : > { %v3627_v18 = vpack.c.bf16 %v2144_v7, %v2132_v23  ;;  %v878_v49 = vand.u32 4294901760, %v877_v42  ;;  %v2150_v25 = vand.u32 4294901760, %v2149_v9  ;;  %v6485_v16 = vand.u32 4294901760, %v6856_v28  ;;  %v6859_v23 = vld [vmem:[#allocation182_spill] sm:$0xff]  ;;  %v6860_v42 = vld [vmem:[#allocation183_spill] sm:$0xff] }
 0x136   : > { %3244 = vmatpush1.bf16.msra.mxu1 %v3243_v20  ;;  %v2162_v26 = vand.u32 4294901760, %v2161_v22  ;;  %v871_v15 = vsub.f32 %v6855_v55, %v6483_v11  ;;  %v6486_v24 = vand.u32 4294901760, %v6857_v59  ;;  %v6488_v17 = vand.u32 4294901760, %v6858_v1 }
 0x137   : > { %3628 = vmatpush1.bf16.msra.mxu0 %v3627_v18  ;;  %v3245_v45 = vpack.c.bf16 %v878_v49, %v866_v31  ;;  %v883_v7 = vsub.f32 %v6856_v28, %v6485_v16  ;;  %v6489_v9 = vand.u32 4294901760, %v6859_v23  ;;  %v6491_v53 = vand.u32 4294901760, %v6860_v42 }
 0x138   : > { %v3629_v20 = vpack.c.bf16 %v2162_v26, %v2150_v25  ;;  %v872_v22 = vand.u32 4294901760, %v871_v15  ;;  %v2155_v11 = vsub.f32 %v6857_v59, %v6486_v24  ;;  %v2167_v55 = vsub.f32 %v6858_v1, %v6488_v17  ;;  %v6861_v26 = vld [vmem:[#allocation184_spill] sm:$0xff] }
 0x139   : > { %3246 = vmatprep.subr.bf16.mxu1 %v3245_v45  ;;  %v884_v18 = vand.u32 4294901760, %v883_v7  ;;  %v889_v31 = vsub.f32 %v6859_v23, %v6489_v9  ;;  %v901_v49 = vsub.f32 %v6860_v42, %v6491_v53  ;;  %v6492_v15 = vand.u32 4294901760, %v6861_v26 }
 0x13a   : > { %3630 = vmatprep.subr.bf16.mxu0 %v3629_v20  ;;  %v2156_v25 = vand.u32 4294901760, %v2155_v11  ;;  %v2168_v16 = vand.u32 4294901760, %v2167_v55  ;;  %v6493_v24 = vand.u32 4294901760, %v4778_v60  ;;  %v6495_v59 = vand.u32 4294901760, %v4782_v21 }
 0x13b   : > { %v3247_v17 = vpack.c.bf16 %v884_v18, %v872_v22  ;;  %v890_v45 = vand.u32 4294901760, %v889_v31  ;;  %v902_v7 = vand.u32 4294901760, %v901_v49  ;;  %v2173_v9 = vsub.f32 %v6861_v26, %v6492_v15  ;;  %v6862_v31 = vld [vmem:[#allocation192_spill] sm:$0xff] }
 0x13c   : > { %v3631_v23 = vpack.c.bf16 %v2168_v16, %v2156_v25  ;;  %v2185_v53 = vsub.f32 %v4778_v60, %v6493_v24  ;;  %v895_v11 = vsub.f32 %v4782_v21, %v6495_v59  ;;  %v6494_v55 = vand.u32 4294901760, %v4784_v14  ;;  %v6920_v26 = vld [vmem:[#allocation64_spill] sm:$0xff] }
 0x13d   : > { %3248 = vmatpush1.bf16.msra.mxu1 %v3247_v17  ;;  %v3249_v20 = vpack.c.bf16 %v902_v7, %v890_v45  ;;  %v2174_v22 = vand.u32 4294901760, %v2173_v9  ;;  %v6498_v18 = vand.u32 4294901760, %v4788_v36  ;;  %v6499_v49 = vand.u32 4294901760, %v6862_v31  ;;  %v6863_v45 = vld [vmem:[#allocation195_spill] sm:$0xff] }
 0x13e   : > { %3632 = vmatpush1.bf16.msra.mxu0 %v3631_v23  ;;  %v2186_v15 = vand.u32 4294901760, %v2185_v53  ;;  %v896_v16 = vand.u32 4294901760, %v895_v11  ;;  %v907_v25 = vsub.f32 %v4784_v14, %v6494_v55  ;;  %v6501_v24 = vand.u32 4294901760, %v4797_v2 }
 0x13f   : > { %3250 = vmatprep.subr.bf16.mxu1 %v3249_v20  ;;  %v2179_v17 = vsub.f32 %v4788_v36, %v6498_v18  ;;  %v2191_v9 = vsub.f32 %v6862_v31, %v6499_v49  ;;  %v6508_v7 = vand.u32 4294901760, %v6863_v45  ;;  %v6509_v53 = vand.u32 4294901760, %v4803_v8  ;;  %v6865_v36 = vld [vmem:[#allocation201_spill] sm:$0xff] }
 0x140   : > { %v3633_v23 = vpack.c.bf16 %v2186_v15, %v2174_v22  ;;  %v908_v11 = vand.u32 4294901760, %v907_v25  ;;  %v913_v55 = vsub.f32 %v4797_v2, %v6501_v24  ;;  %v6513_v20 = vand.u32 4294901760, %v4808_v32  ;;  %v6864_v25 = vld [vmem:[#allocation200_spill] sm:$0xff] }
 0x141   : > { %v2180_v59 = vand.u32 4294901760, %v2179_v17  ;;  %v2192_v14 = vand.u32 4294901760, %v2191_v9  ;;  %v925_v18 = vsub.f32 %v6863_v45, %v6508_v7  ;;  %v2197_v49 = vsub.f32 %v4803_v8, %v6509_v53 }
 0x142   : > { %3634 = vmatprep.subr.bf16.mxu0 %v3633_v23  ;;  %v3251_v31 = vpack.c.bf16 %v908_v11, %v896_v16  ;;  %v914_v15 = vand.u32 4294901760, %v913_v55  ;;  %v2209_v22 = vsub.f32 %v4808_v32, %v6513_v20  ;;  %v6512_v24 = vand.u32 4294901760, %v6864_v25  ;;  %v6866_v23 = vld [vmem:[#allocation203_spill] sm:$0xff]  ;;  %v6867_v55 = vld [vmem:[#allocation204_spill] sm:$0xff] }
 0x143   : > { %v3635_v2 = vpack.c.bf16 %v2192_v14, %v2180_v59  ;;  %v926_v17 = vand.u32 4294901760, %v925_v18  ;;  %v2198_v9 = vand.u32 4294901760, %v2197_v49  ;;  %v6515_v21 = vand.u32 4294901760, %v6865_v36 }
 0x144   : > { %3252 = vmatpush1.bf16.msra.mxu1 %v3251_v31  ;;  %v2210_v7 = vand.u32 4294901760, %v2209_v22  ;;  %v919_v53 = vsub.f32 %v6864_v25, %v6512_v24  ;;  %v6517_v16 = vand.u32 4294901760, %v6866_v23  ;;  %v6518_v11 = vand.u32 4294901760, %v6867_v55 }
 0x145   : > { %3636 = vmatpush1.bf16.msra.mxu0 %v3635_v2  ;;  %v3253_v8 = vpack.c.bf16 %v926_v17, %v914_v15  ;;  %v931_v14 = vsub.f32 %v6865_v36, %v6515_v21  ;;  %v6868_v15 = vld [vmem:[#allocation14_spill] sm:$0xff]  ;;  %v6869_v17 = vld [vmem:[#allocation15_spill] sm:$0xff]  ;;  %v6870_v21 = vld [vmem:[#allocation16_spill] sm:$0xff] }
 0x146   : > { %v3637_v59 = vpack.c.bf16 %v2210_v7, %v2198_v9  ;;  %v920_v18 = vand.u32 4294901760, %v919_v53  ;;  %v2203_v31 = vsub.f32 %v6866_v23, %v6517_v16  ;;  %v2215_v49 = vsub.f32 %v6867_v55, %v6518_v11  ;;  %v6871_v7 = vld [vmem:[#allocation18_spill] sm:$0xff]  ;;  %v6872_v36 = vld [vmem:[#allocation20_spill] sm:$0xff]  ;;  %v6931_v23 = vld [vmem:[#allocation81_spill] sm:$0xff] }
 0x147   : > { %3254 = vmatprep.subr.bf16.mxu1 %v3253_v8  ;;  %v932_v22 = vand.u32 4294901760, %v931_v14  ;;  %v3257_v20 = vpack.c.bf16 %v6869_v17, %v6868_v15  ;;  %v3641_v53 = vpack.c.bf16 %v6871_v7, %v6870_v21  ;;  %v3259_v16 = vpack.c.bf16 %v4392_v27, %v6872_v36  ;;  %v6902_v27 = vld [vmem:[#allocation164_spill] sm:$0xff]  ;;  %v6904_v7 = vld [vmem:[#allocation167_spill] sm:$0xff]  ;;  %v6913_v21 = vld [vmem:[#allocation189_spill] sm:$0xff] }
 0x148   : > { %3638 = vmatprep.subr.bf16.mxu0 %v3637_v59  ;;  %v2204_v24 = vand.u32 4294901760, %v2203_v31  ;;  %v2216_v2 = vand.u32 4294901760, %v2215_v49  ;;  %v3643_v8 = vpack.c.bf16 %v4400_v40, %v4398_v39  ;;  %v3261_v14 = vpack.c.bf16 %v4406_v46, %v4402_v41  ;;  %v6873_v31 = vld [vmem:[#allocation211_spill] sm:$0xff]  ;;  %v6898_v46 = vld [vmem:[#allocation158_spill] sm:$0xff]  ;;  %v6911_v40 = vld [vmem:[#allocation208_spill] sm:$0xff] }
 0x149   : > { %v3255_v25 = vpack.c.bf16 %v932_v22, %v920_v18  ;;  %v3645_v59 = vpack.c.bf16 %v4413_v50, %v4410_v48  ;;  %v3649_v18 = vpack.c.bf16 %v4440_v13, %v4438_v12  ;;  %v3267_v49 = vpack.c.bf16 %v4449_v34, %v4447_v33  ;;  %v6884_v33 = vld [vmem:[#allocation136_spill] sm:$0xff]  ;;  %v6886_v13 = vld [vmem:[#allocation207_spill] sm:$0xff]  ;;  %v6893_v34 = vld [vmem:[#allocation150_spill] sm:$0xff] }
 0x14a   : > { %v3639_v9 = vpack.c.bf16 %v2216_v2, %v2204_v24  ;;  %v3263_v24 = vpack.c.bf16 %v4421_v61, %v4415_v52  ;;  %v3651_v22 = vpack.c.bf16 %v4455_v44, %v4453_v43  ;;  %v3269_v2 = vpack.c.bf16 %v4463_v56, %v4459_v51  ;;  %v6875_v56 = vld [vmem:[#allocation123_spill] sm:$0xff]  ;;  %v6877_v51 = vld [vmem:[#allocation126_spill] sm:$0xff]  ;;  %v6890_v44 = vld [vmem:[#allocation144_spill] sm:$0xff] }
 0x14b   : > { %3256 = vmatpush1.bf16.msra.mxu1 %v3255_v25  ;;  %v3647_v25 = vpack.c.bf16 %v4427_v4, %v4423_v62  ;;  %v3273_v11 = vpack.c.bf16 %v4489_v3, %v4487_v5  ;;  %v6885_v3 = vld [vmem:[#allocation138_spill] sm:$0xff]  ;;  %v6892_v62 = vld [vmem:[#allocation148_spill] sm:$0xff]  ;;  %v6895_v52 = vld [vmem:[#allocation153_spill] sm:$0xff] }
 0x14c   : > { %3640 = vmatpush1.bf16.msra.mxu0 %v3639_v9  ;;  %3258 = vmatprep.subr.bf16.mxu1 %v3257_v20  ;;  %v3265_v20 = vpack.c.bf16 %v4434_v10, %v4431_v6  ;;  %v3271_v9 = vpack.c.bf16 %v4477_v35, %v4473_v19  ;;  %v6880_v35 = vld [vmem:[#allocation131_spill] sm:$0xff]  ;;  %v6881_v19 = vld [vmem:[#allocation132_spill] sm:$0xff]  ;;  %v6891_v4 = vld [vmem:[#allocation146_spill] sm:$0xff] }
 0x14d   : > { %3642 = vmatprep.subr.bf16.mxu0 %v3641_v53  ;;  %v3653_v53 = vpack.c.bf16 %v4470_v63, %v4467_v58  ;;  %v6878_v63 = vld [vmem:[#allocation128_spill] sm:$0xff]  ;;  %v6879_v58 = vld [vmem:[#allocation129_spill] sm:$0xff]  ;;  %v6889_v10 = vld [vmem:[#allocation143_spill] sm:$0xff] }
 0x14e   : > { %937 = vmatmul.mubr.f32.vlgmr.msra.gmra.mrb[0].mxu1 %v4884_v29  ;;  %v6874_v29 = vld [vmem:[#allocation122_spill] sm:$0xff]  ;;  %v6896_v50 = vld [vmem:[#allocation155_spill] sm:$0xff]  ;;  %v6897_v48 = vld [vmem:[#allocation156_spill] sm:$0xff] }
 0x14f   : > { %3260 = vmatpush1.bf16.msra.mxu1 %v3259_v16  ;;  %2221 = vmatmul.mubr.f32.vlgmr.msra.gmra.mrb[0].mxu0 %v6873_v31  ;;  %v3655_v16 = vpack.c.bf16 %v4483_v57, %v4481_v30  ;;  %v6882_v57 = vld [vmem:[#allocation134_spill] sm:$0xff]  ;;  %v6887_v31 = vld [vmem:[#allocation140_spill] sm:$0xff]  ;;  %v6899_v41 = vld [vmem:[#allocation159_spill] sm:$0xff] }
 0x150   : > { %3644 = vmatpush1.bf16.msra.mxu0 %v3643_v8  ;;  %3262 = vmatprep.subr.bf16.mxu1 %v3261_v14  ;;  %v6876_v14 = vld [vmem:[#allocation124_spill] sm:$0xff]  ;;  %v6888_v8 = vld [vmem:[#allocation141_spill] sm:$0xff]  ;;  %v6901_v6 = vld [vmem:[#allocation162_spill] sm:$0xff] }
 0x151   : > { %3646 = vmatprep.subr.bf16.mxu0 %v3645_v59  ;;  %v6883_v59 = vld [vmem:[#allocation135_spill] sm:$0xff]  ;;  %1137 = vmatprep.mubr.f32.mxu1 %v6886_v13  ;;  %v6894_v30 = vld [vmem:[#allocation152_spill] sm:$0xff]  ;;  %v6903_v43 = vld [vmem:[#allocation165_spill] sm:$0xff] }
 0x152   : > { %v6905_v61 = vld [vmem:[#allocation168_spill] sm:$0xff]  ;;  %v6909_v12 = vld [vmem:[#allocation179_spill] sm:$0xff]  ;;  %2421 = vmatprep.mubr.f32.mxu0 %v6911_v40  ;;  %v6919_v40 = vld [vmem:[#allocation201_spill] sm:$0xff] }
 0x153   : > { %3264 = vmatpush1.bf16.msra.mxu1 %v3263_v24  ;;  %v6908_v24 = vld [vmem:[#allocation176_spill] sm:$0xff]  ;;  %v6926_v39 = vld [vmem:[#allocation74_spill] sm:$0xff] }
 0x154   : > { %3648 = vmatpush1.bf16.msra.mxu0 %v3647_v25  ;;  %3266 = vmatprep.subr.bf16.mxu1 %v3265_v20  ;;  %v6921_v20 = vld [vmem:[#allocation66_spill] sm:$0xff]  ;;  %v6922_v5 = vld [vmem:[#allocation68_spill] sm:$0xff] }
 0x155   : > { %3650 = vmatprep.subr.bf16.mxu0 %v3649_v18  ;;  %v3657_v36 = vpack.c.bf16 %v6921_v20, %v6920_v26  ;;  %v3275_v17 = vpack.c.bf16 %v6923_v0, %v6922_v5  ;;  %v6927_v18 = vld [vmem:[#allocation75_spill] sm:$0xff]  ;;  %v6929_v13 = vld [vmem:[#allocation78_spill] sm:$0xff]  ;;  %v6933_v0 = vld [vmem:[#allocation84_spill] sm:$0xff] }
 0x156   : > { %v3277_v32 = vpack.c.bf16 %v6927_v18, %v6926_v39  ;;  %v6935_v5 = vld [vmem:[#allocation87_spill] sm:$0xff]  ;;  %v6939_v39 = vld [vmem:[#allocation93_spill] sm:$0xff] }
 0x157   : > { %3268 = vmatpush1.bf16.msra.mxu1 %v3267_v49  ;;  %v6928_v49 = vld [vmem:[#allocation76_spill] sm:$0xff] }
 0x158   : > { %3652 = vmatpush1.bf16.msra.mxu0 %v3651_v22  ;;  %3270 = vmatprep.subr.bf16.mxu1 %v3269_v2  ;;  %v6924_v22 = vld [vmem:[#allocation71_spill] sm:$0xff]  ;;  %v6925_v2 = vld [vmem:[#allocation72_spill] sm:$0xff]  ;;  %v3661_v25 = vpack.c.bf16 %v6929_v13, %v6928_v49 }
 0x159   : > { %3654 = vmatprep.subr.bf16.mxu0 %v3653_v53  ;;  %v3659_v15 = vpack.c.bf16 %v6925_v2, %v6924_v22  ;;  %v6930_v53 = vld [vmem:[#allocation80_spill] sm:$0xff]  ;;  %v6937_v22 = vld [vmem:[#allocation90_spill] sm:$0xff] }
 0x15a   : > { %v3279_v20 = vpack.c.bf16 %v6931_v23, %v6930_v53  ;;  %v6936_v2 = vld [vmem:[#allocation88_spill] sm:$0xff]  ;;  %v6943_v53 = vld [vmem:[#allocation99_spill] sm:$0xff] }
 0x15b   : > { %3272 = vmatpush1.bf16.msra.mxu1 %v3271_v9  ;;  %v6932_v9 = vld [vmem:[#allocation83_spill] sm:$0xff]  ;;  %v3665_v18 = vpack.c.bf16 %v6937_v22, %v6936_v2  ;;  %v6941_v23 = vld [vmem:[#allocation96_spill] sm:$0xff] }
 0x15c   : > { %3656 = vmatpush1.bf16.msra.mxu0 %v3655_v16  ;;  %3274 = vmatprep.subr.bf16.mxu1 %v3273_v11  ;;  %v3663_v16 = vpack.c.bf16 %v6933_v0, %v6932_v9  ;;  %v6934_v11 = vld [vmem:[#allocation86_spill] sm:$0xff]  ;;  %v6944_v0 = vld [vmem:[#allocation100_spill] sm:$0xff] }
 0x15d   : > { %3658 = vmatprep.subr.bf16.mxu0 %v3657_v36  ;;  %v3281_v26 = vpack.c.bf16 %v6935_v5, %v6934_v11  ;;  %v6938_v36 = vld [vmem:[#allocation92_spill] sm:$0xff]  ;;  %v6945_v9 = vld [vmem:[#allocation102_spill] sm:$0xff]  ;;  %v6947_v11 = vld [vmem:[#allocation105_spill] sm:$0xff] }
 0x15e   : > { %v3283_v13 = vpack.c.bf16 %v6939_v39, %v6938_v36  ;;  %v3669_v5 = vpack.c.bf16 %v6945_v9, %v6944_v0  ;;  %v6949_v39 = vld [vmem:[#allocation108_spill] sm:$0xff]  ;;  %v6951_v36 = vld [vmem:[#allocation111_spill] sm:$0xff] }
 0x15f   : > { %3276 = vmatpush1.bf16.msra.mxu1 %v3275_v17  ;;  %v6940_v17 = vld [vmem:[#allocation95_spill] sm:$0xff] }
 0x160   : > { %3660 = vmatpush1.bf16.msra.mxu0 %v3659_v15  ;;  %3278 = vmatprep.subr.bf16.mxu1 %v3277_v32  ;;  %v3667_v15 = vpack.c.bf16 %v6941_v23, %v6940_v17  ;;  %v6942_v32 = vld [vmem:[#allocation98_spill] sm:$0xff]  ;;  %v6952_v23 = vld [vmem:[#allocation112_spill] sm:$0xff] }
 0x161   : > { %3662 = vmatprep.subr.bf16.mxu0 %v3661_v25  ;;  %v3285_v49 = vpack.c.bf16 %v6943_v53, %v6942_v32  ;;  %v6946_v25 = vld [vmem:[#allocation104_spill] sm:$0xff]  ;;  %v6953_v17 = vld [vmem:[#allocation114_spill] sm:$0xff]  ;;  %v6955_v32 = vld [vmem:[#allocation117_spill] sm:$0xff] }
 0x162   : > { %v3287_v22 = vpack.c.bf16 %v6947_v11, %v6946_v25  ;;  %v3673_v53 = vpack.c.bf16 %v6953_v17, %v6952_v23 }
 0x163   : > { %3280 = vmatpush1.bf16.msra.mxu1 %v3279_v20  ;;  %v6948_v20 = vld [vmem:[#allocation107_spill] sm:$0xff] }
 0x164   : > { %3664 = vmatpush1.bf16.msra.mxu0 %v3663_v16  ;;  %3282 = vmatprep.subr.bf16.mxu1 %v3281_v26  ;;  %v3671_v16 = vpack.c.bf16 %v6949_v39, %v6948_v20  ;;  %v6950_v26 = vld [vmem:[#allocation110_spill] sm:$0xff] }
 0x165   : > { %3666 = vmatprep.subr.bf16.mxu0 %v3665_v18  ;;  %v3289_v2 = vpack.c.bf16 %v6951_v36, %v6950_v26  ;;  %v6954_v18 = vld [vmem:[#allocation116_spill] sm:$0xff] }
 0x166   : > { %v3291_v9 = vpack.c.bf16 %v6955_v32, %v6954_v18 }
 0x167   : > { %3284 = vmatpush1.bf16.msra.mxu1 %v3283_v13  ;;  %v6956_v13 = vpack.c.bf16 %v6819_v47, %v6818_v37 }
 0x168   : > { %3668 = vmatpush1.bf16.msra.mxu0 %v3667_v15  ;;  %3286 = vmatprep.subr.bf16.mxu1 %v3285_v49  ;;  %v6957_v49 = vpack.c.bf16 %v6875_v56, %v6874_v29  ;;  %v6963_v15 = vpack.c.bf16 %v6888_v8, %v6887_v31 }
 0x169   : > { %3670 = vmatprep.subr.bf16.mxu0 %v3669_v5  ;;  %v6958_v5 = vpack.c.bf16 %v6877_v51, %v6876_v14 }
 0x16b   : > { %3288 = vmatpush1.bf16.msra.mxu1 %v3287_v22  ;;  %v6959_v22 = vpack.c.bf16 %v6879_v58, %v6878_v63 }
 0x16c   : > { %3672 = vmatpush1.bf16.msra.mxu0 %v3671_v16  ;;  %3290 = vmatprep.subr.bf16.mxu1 %v3289_v2  ;;  %v6960_v2 = vpack.c.bf16 %v6881_v19, %v6880_v35  ;;  %v6964_v16 = vpack.c.bf16 %v6890_v44, %v6889_v10 }
 0x16d   : > { %3674 = vmatprep.subr.bf16.mxu0 %v3673_v53  ;;  %v6961_v53 = vpack.c.bf16 %v6883_v59, %v6882_v57 }
 0x16f   : > { %3292 = vmatpush1.bf16.msra.mxu1 %v3291_v9  ;;  %v6962_v9 = vpack.c.bf16 %v6885_v3, %v6884_v33 }
 0x170   : > { %3676 = vmatpush1.bf16.msra.mxu0 %v6956_v13  ;;  %3294 = vmatprep.subr.bf16.mxu1 %v6957_v49  ;;  %v6965_v13 = vpack.c.bf16 %v6837_v38, %v6891_v4  ;;  %v6966_v49 = vpack.c.bf16 %v6893_v34, %v6892_v62 }
 0x171   : > { %3678 = vmatprep.subr.bf16.mxu0 %v6958_v5  ;;  %v6967_v5 = vpack.c.bf16 %v6895_v52, %v6894_v30 }
 0x173   : > { %3296 = vmatpush1.bf16.msra.mxu1 %v6959_v22  ;;  %v6968_v22 = vpack.c.bf16 %v6897_v48, %v6896_v50  ;;  %v6978_v48 = vld [vmem:[#allocation172_spill] sm:$0xff] }
 0x174   : > { %3680 = vmatpush1.bf16.msra.mxu0 %v6960_v2  ;;  %3298 = vmatprep.subr.bf16.mxu1 %v6961_v53  ;;  %v6969_v2 = vpack.c.bf16 %v6899_v41, %v6898_v46  ;;  %v6970_v53 = vld [vmem:[#allocation160_spill] sm:$0xff] }
 0x175   : > { %3682 = vmatprep.subr.bf16.mxu0 %v6962_v9  ;;  %v6971_v9 = vpack.c.bf16 %v6901_v6, %v6970_v53 }
 0x177   : > { %3300 = vmatpush1.bf16.msra.mxu1 %v6963_v15  ;;  %v6972_v15 = vpack.c.bf16 %v6903_v43, %v6902_v27 }
 0x178   : > { %3684 = vmatpush1.bf16.msra.mxu0 %v6964_v16  ;;  %3302 = vmatprep.subr.bf16.mxu1 %v6965_v13  ;;  %v6973_v16 = vpack.c.bf16 %v6905_v61, %v6904_v7  ;;  %v6974_v13 = vld [vmem:[#allocation171_spill] sm:$0xff] }
 0x179   : > { %3686 = vmatprep.subr.bf16.mxu0 %v6966_v49  ;;  %v6975_v49 = vld [vmem:[#allocation170_spill] sm:$0xff] }
 0x17b   : > { %3304 = vmatpush1.bf16.msra.mxu1 %v6967_v5  ;;  %v6976_v5 = vpack.c.bf16 %v6974_v13, %v6975_v49  ;;  %v7087_v49 = vld [vmem:[#allocation27_spill] sm:$0xff] }
 0x17c   : > { %3688 = vmatpush1.bf16.msra.mxu0 %v6968_v22  ;;  %3306 = vmatprep.subr.bf16.mxu1 %v6969_v2  ;;  %v6977_v22 = vld [vmem:[#allocation174_spill] sm:$0xff]  ;;  %v6980_v2 = vpack.c.bf16 %v6856_v28, %v6908_v24  ;;  %v7085_v24 = vld [vmem:[#allocation25_spill] sm:$0xff] }
 0x17d   : > { %3690 = vmatprep.subr.bf16.mxu0 %v6971_v9  ;;  %v6979_v41 = vpack.c.bf16 %v6977_v22, %v6978_v48  ;;  %v6981_v9 = vpack.c.bf16 %v6858_v1, %v6909_v12  ;;  %v6989_v48 = vld [vmem:[#allocation191_spill] sm:$0xff]  ;;  %v6993_v1 = vld [vmem:[#allocation196_spill] sm:$0xff] }
 0x17f   : > { %3308 = vmatpush1.bf16.msra.mxu1 %v6972_v15  ;;  %v6982_v15 = vld [vmem:[#allocation182_spill] sm:$0xff] }
 0x180   : > { %3692 = vmatpush1.bf16.msra.mxu0 %v6973_v16  ;;  %3310 = vmatprep.subr.bf16.mxu1 %v6976_v5  ;;  %v6983_v61 = vpack.c.bf16 %v6860_v42, %v6982_v15  ;;  %v6984_v16 = vld [vmem:[#allocation184_spill] sm:$0xff]  ;;  %v7078_v15 = vld [vmem:[#allocation21_spill] sm:$0xff] }
 0x181   : > { %3694 = vmatprep.subr.bf16.mxu0 %v6979_v41  ;;  %v6985_v13 = vpack.c.bf16 %v4778_v60, %v6984_v16  ;;  %v6986_v5 = vld [vmem:[#allocation188_spill] sm:$0xff]  ;;  %v7075_v16 = vld [vmem:[#allocation199_spill] sm:$0xff] }
 0x182   : > { %v6987_v22 = vpack.c.bf16 %v6913_v21, %v6986_v5  ;;  %v6988_v41 = vld [vmem:[#allocation192_spill] sm:$0xff] }
 0x183   : > { %3312 = vmatpush1.bf16.msra.mxu1 %v6980_v2  ;;  %v6990_v28 = vpack.c.bf16 %v6988_v41, %v6989_v48  ;;  %v6991_v2 = vpack.c.bf16 %v6863_v45, %v6916_v54  ;;  %v7000_v41 = vld [vmem:[#allocation17_spill] sm:$0xff]  ;;  %v7002_v45 = vld [vmem:[#allocation19_spill] sm:$0xff] }
 0x184   : > { %3696 = vmatpush1.bf16.msra.mxu0 %v6981_v9  ;;  %3314 = vmatprep.subr.bf16.mxu1 %v6983_v61  ;;  %v6992_v9 = vld [vmem:[#allocation198_spill] sm:$0xff]  ;;  %v6995_v61 = vld [vmem:[#allocation200_spill] sm:$0xff] }
 0x185   : > { %3698 = vmatprep.subr.bf16.mxu0 %v6985_v13  ;;  %v6994_v42 = vpack.c.bf16 %v6992_v9, %v6993_v1  ;;  %v6996_v60 = vpack.c.bf16 %v6919_v40, %v6995_v61  ;;  %v6997_v13 = vld [vmem:[#allocation203_spill] sm:$0xff]  ;;  %v7004_v9 = vld [vmem:[#allocation22_spill] sm:$0xff]  ;;  %v7006_v40 = vld [vmem:[#allocation28_spill] sm:$0xff] }
 0x186   : > { %v6998_v21 = vpack.c.bf16 %v6867_v55, %v6997_v13  ;;  %v7013_v13 = vld [vmem:[#allocation37_spill] sm:$0xff]  ;;  %v7015_v1 = vld [vmem:[#allocation43_spill] sm:$0xff] }
 0x187   : > { %3316 = vmatpush1.bf16.msra.mxu1 %v6987_v22  ;;  %v6999_v22 = vld [vmem:[#allocation13_spill] sm:$0xff] }
 0x188   : > { %3700 = vmatpush1.bf16.msra.mxu0 %v6990_v28  ;;  %3318 = vmatprep.subr.bf16.mxu1 %v6991_v2  ;;  %v7001_v28 = vld [vmem:[#allocation210_spill] sm:$0xff]  ;;  %v7003_v2 = vld [vmem:[#allocation212_spill] sm:$0xff] }
 0x189   : > { %3702 = vmatprep.subr.bf16.mxu0 %v6994_v42  ;;  %v7005_v42 = vld [vmem:[#allocation26_spill] sm:$0xff] }
 0x18b   : > { %3320 = vmatpush1.bf16.msra.mxu1 %v6996_v60  ;;  %v7007_v60 = vld [vmem:[#allocation207_spill] sm:$0xff] }
 0x18c   : > { %3704 = vmatpush1.bf16.msra.mxu0 %v6998_v21  ;;  %3322 = vmatprep.subr.bf16.mxu1 %v6999_v22  ;;  %v7008_v61 = vand.u32 4294901760, %v7007_v60  ;;  %v7009_v21 = vld [vmem:[#allocation208_spill] sm:$0xff]  ;;  %v7020_v60 = vld [vmem:[#allocation58_spill] sm:$0xff] }
 0x18d   : > { %3706 = vmatprep.subr.bf16.mxu0 %v7000_v41  ;;  %v7010_v55 = vand.u32 4294901760, %v7009_v21  ;;  %v7011_v22 = vld [vmem:[#allocation32_spill] sm:$0xff]  ;;  %v7012_v41 = vld [vmem:[#allocation35_spill] sm:$0xff]  ;;  %v7022_v21 = vld [vmem:[#allocation65_spill] sm:$0xff] }
 0x18e   : > { %1140 = vmatmul.mubr.f32.vlgmr.msra.gmra.mrb[0].mxu1 %v7001_v28 }
 0x18f   : > { %3324 = vmatpush1.bf16.msra.mxu1 %v7002_v45  ;;  %2424 = vmatmul.mubr.f32.vlgmr.msra.gmra.mrb[0].mxu0 %v7003_v2  ;;  %v7014_v45 = vld [vmem:[#allocation40_spill] sm:$0xff] }
 0x190   : > { %3708 = vmatpush1.bf16.msra.mxu0 %v7004_v9  ;;  %3326 = vmatprep.subr.bf16.mxu1 %v7005_v42  ;;  %v7016_v9 = vld [vmem:[#allocation46_spill] sm:$0xff]  ;;  %v7017_v42 = vld [vmem:[#allocation49_spill] sm:$0xff] }
 0x191   : > { %3710 = vmatprep.subr.bf16.mxu0 %v7006_v40  ;;  %1277 = vmatprep.mubr.f32.mxu1 %v7008_v61  ;;  %v7018_v40 = vld [vmem:[#allocation52_spill] sm:$0xff] }
 0x192   : > { %2561 = vmatprep.mubr.f32.mxu0 %v7010_v55  ;;  %v7019_v61 = vld [vmem:[#allocation56_spill] sm:$0xff]  ;;  %v7021_v55 = vld [vmem:[#allocation61_spill] sm:$0xff] }
 0x193   : > { %3328 = vmatpush1.bf16.msra.mxu1 %v7011_v22  ;;  %v7068_v22 = vld [vmem:[#allocation15_spill] sm:$0xff] }
 0x194   : > { %3712 = vmatpush1.bf16.msra.mxu0 %v7012_v41  ;;  %3330 = vmatprep.subr.bf16.mxu1 %v7013_v13  ;;  %v7023_v41 = vld [vmem:[#allocation67_spill] sm:$0xff]  ;;  %v7024_v13 = vld [vmem:[#allocation70_spill] sm:$0xff] }
 0x195   : > { %3714 = vmatprep.subr.bf16.mxu0 %v7014_v45  ;;  %v7025_v45 = vld [vmem:[#allocation73_spill] sm:$0xff] }
 0x197   : > { %3332 = vmatpush1.bf16.msra.mxu1 %v7015_v1  ;;  %v7026_v1 = vld [vmem:[#allocation77_spill] sm:$0xff] }
 0x198   : > { %3716 = vmatpush1.bf16.msra.mxu0 %v7016_v9  ;;  %3334 = vmatprep.subr.bf16.mxu1 %v7017_v42  ;;  %v7027_v9 = vld [vmem:[#allocation79_spill] sm:$0xff]  ;;  %v7028_v42 = vld [vmem:[#allocation82_spill] sm:$0xff] }
 0x199   : > { %3718 = vmatprep.subr.bf16.mxu0 %v7018_v40  ;;  %v7029_v40 = vld [vmem:[#allocation85_spill] sm:$0xff] }
 0x19b   : > { %3336 = vmatpush1.bf16.msra.mxu1 %v7019_v61  ;;  %v7030_v61 = vld [vmem:[#allocation89_spill] sm:$0xff] }
 0x19c   : > { %3720 = vmatpush1.bf16.msra.mxu0 %v7020_v60  ;;  %3338 = vmatprep.subr.bf16.mxu1 %v7021_v55  ;;  %v7031_v60 = vld [vmem:[#allocation91_spill] sm:$0xff]  ;;  %v7032_v55 = vld [vmem:[#allocation94_spill] sm:$0xff] }
 0x19d   : > { %3722 = vmatprep.subr.bf16.mxu0 %v7022_v21  ;;  %v7033_v21 = vld [vmem:[#allocation97_spill] sm:$0xff] }
 0x19f   : > { %3340 = vmatpush1.bf16.msra.mxu1 %v7023_v41  ;;  %v7034_v41 = vld [vmem:[#allocation101_spill] sm:$0xff] }
 0x1a0   : > { %3724 = vmatpush1.bf16.msra.mxu0 %v7024_v13  ;;  %3342 = vmatprep.subr.bf16.mxu1 %v7025_v45  ;;  %v7035_v13 = vld [vmem:[#allocation103_spill] sm:$0xff]  ;;  %v7036_v45 = vld [vmem:[#allocation106_spill] sm:$0xff] }
 0x1a1   : > { %3726 = vmatprep.subr.bf16.mxu0 %v7026_v1  ;;  %v7037_v1 = vld [vmem:[#allocation109_spill] sm:$0xff] }
 0x1a3   : > { %3344 = vmatpush1.bf16.msra.mxu1 %v7027_v9  ;;  %v7038_v9 = vld [vmem:[#allocation113_spill] sm:$0xff] }
 0x1a4   : > { %3728 = vmatpush1.bf16.msra.mxu0 %v7028_v42  ;;  %3346 = vmatprep.subr.bf16.mxu1 %v7029_v40  ;;  %v7039_v42 = vld [vmem:[#allocation115_spill] sm:$0xff]  ;;  %v7040_v40 = vld [vmem:[#allocation118_spill] sm:$0xff] }
 0x1a5   : > { %3730 = vmatprep.subr.bf16.mxu0 %v7030_v61  ;;  %v7041_v61 = vld [vmem:[#allocation121_spill] sm:$0xff] }
 0x1a7   : > { %3348 = vmatpush1.bf16.msra.mxu1 %v7031_v60  ;;  %v7042_v60 = vld [vmem:[#allocation125_spill] sm:$0xff] }
 0x1a8   : > { %3732 = vmatpush1.bf16.msra.mxu0 %v7032_v55  ;;  %3350 = vmatprep.subr.bf16.mxu1 %v7033_v21  ;;  %v7043_v55 = vld [vmem:[#allocation127_spill] sm:$0xff]  ;;  %v7044_v21 = vld [vmem:[#allocation130_spill] sm:$0xff] }
 0x1a9   : > { %3734 = vmatprep.subr.bf16.mxu0 %v7034_v41  ;;  %v7045_v41 = vld [vmem:[#allocation133_spill] sm:$0xff] }
 0x1ab   : > { %3352 = vmatpush1.bf16.msra.mxu1 %v7035_v13  ;;  %v7046_v13 = vld [vmem:[#allocation137_spill] sm:$0xff] }
 0x1ac   : > { %3736 = vmatpush1.bf16.msra.mxu0 %v7036_v45  ;;  %3354 = vmatprep.subr.bf16.mxu1 %v7037_v1  ;;  %v7047_v45 = vld [vmem:[#allocation139_spill] sm:$0xff]  ;;  %v7048_v1 = vld [vmem:[#allocation142_spill] sm:$0xff] }
 0x1ad   : > { %3738 = vmatprep.subr.bf16.mxu0 %v7038_v9  ;;  %v7049_v9 = vld [vmem:[#allocation145_spill] sm:$0xff] }
 0x1af   : > { %3356 = vmatpush1.bf16.msra.mxu1 %v7039_v42  ;;  %v7050_v42 = vld [vmem:[#allocation149_spill] sm:$0xff] }
 0x1b0   : > { %3740 = vmatpush1.bf16.msra.mxu0 %v7040_v40  ;;  %3358 = vmatprep.subr.bf16.mxu1 %v7041_v61  ;;  %v7051_v40 = vld [vmem:[#allocation151_spill] sm:$0xff]  ;;  %v7052_v61 = vld [vmem:[#allocation154_spill] sm:$0xff] }
 0x1b1   : > { %3742 = vmatprep.subr.bf16.mxu0 %v7042_v60  ;;  %v7053_v60 = vld [vmem:[#allocation157_spill] sm:$0xff] }
 0x1b3   : > { %3360 = vmatpush1.bf16.msra.mxu1 %v7043_v55  ;;  %v7054_v55 = vld [vmem:[#allocation161_spill] sm:$0xff] }
 0x1b4   : > { %3744 = vmatpush1.bf16.msra.mxu0 %v7044_v21  ;;  %3362 = vmatprep.subr.bf16.mxu1 %v7045_v41  ;;  %v7055_v21 = vld [vmem:[#allocation163_spill] sm:$0xff]  ;;  %v7056_v41 = vld [vmem:[#allocation166_spill] sm:$0xff] }
 0x1b5   : > { %3746 = vmatprep.subr.bf16.mxu0 %v7046_v13  ;;  %v7057_v13 = vld [vmem:[#allocation169_spill] sm:$0xff] }
 0x1b7   : > { %3364 = vmatpush1.bf16.msra.mxu1 %v7047_v45  ;;  %v7058_v45 = vld [vmem:[#allocation173_spill] sm:$0xff] }
 0x1b8   : > { %3748 = vmatpush1.bf16.msra.mxu0 %v7048_v1  ;;  %3366 = vmatprep.subr.bf16.mxu1 %v7049_v9  ;;  %v7059_v1 = vld [vmem:[#allocation175_spill] sm:$0xff]  ;;  %v7060_v9 = vld [vmem:[#allocation178_spill] sm:$0xff] }
 0x1b9   : > { %3750 = vmatprep.subr.bf16.mxu0 %v7050_v42  ;;  %v7061_v42 = vld [vmem:[#allocation181_spill] sm:$0xff] }
 0x1bb   : > { %3368 = vmatpush1.bf16.msra.mxu1 %v7051_v40  ;;  %v7062_v40 = vld [vmem:[#allocation185_spill] sm:$0xff] }
 0x1bc   : > { %3752 = vmatpush1.bf16.msra.mxu0 %v7052_v61  ;;  %3370 = vmatprep.subr.bf16.mxu1 %v7053_v60  ;;  %v7063_v61 = vld [vmem:[#allocation187_spill] sm:$0xff]  ;;  %v7064_v60 = vld [vmem:[#allocation190_spill] sm:$0xff] }
 0x1bd   : > { %3754 = vmatprep.subr.bf16.mxu0 %v7054_v55  ;;  %v7065_v55 = vld [vmem:[#allocation193_spill] sm:$0xff] }
 0x1bf   : > { %3372 = vmatpush1.bf16.msra.mxu1 %v7055_v21  ;;  %v7066_v21 = vld [vmem:[#allocation14_spill] sm:$0xff] }
 0x1c0   : > { %3756 = vmatpush1.bf16.msra.mxu0 %v7056_v41  ;;  %3374 = vmatprep.subr.bf16.mxu1 %v7057_v13  ;;  %v7067_v41 = vand.u32 4294901760, %v7066_v21  ;;  %v7069_v13 = vand.u32 4294901760, %v7068_v22  ;;  %v7081_v21 = vld [vmem:[#allocation23_spill] sm:$0xff] }
 0x1c1   : > { %3758 = vmatprep.subr.bf16.mxu0 %v7058_v45  ;;  %v7070_v45 = vld [vmem:[#allocation197_spill] sm:$0xff]  ;;  %v7082_v22 = vand.u32 4294901760, %v7081_v21 }
 0x1c2   : > { %v3385_v54 = vpack.c.bf16 %v7069_v13, %v7067_v41  ;;  %v7083_v41 = vld [vmem:[#allocation24_spill] sm:$0xff] }
 0x1c3   : > { %3376 = vmatpush1.bf16.msra.mxu1 %v7059_v1  ;;  %v7071_v1 = vld [vmem:[#allocation16_spill] sm:$0xff]  ;;  %v7084_v13 = vand.u32 4294901760, %v7083_v41 }
 0x1c4   : > { %3760 = vmatpush1.bf16.msra.mxu0 %v7060_v9  ;;  %3378 = vmatprep.subr.bf16.mxu1 %v7061_v42  ;;  %v7072_v48 = vand.u32 4294901760, %v7071_v1  ;;  %v7073_v9 = vld [vmem:[#allocation18_spill] sm:$0xff]  ;;  %v7086_v1 = vand.u32 4294901760, %v7085_v24 }
 0x1c5   : > { %3762 = vmatprep.subr.bf16.mxu0 %v7062_v40  ;;  %v7074_v5 = vand.u32 4294901760, %v7073_v9  ;;  %v7076_v40 = vld [vmem:[#allocation20_spill] sm:$0xff]  ;;  %v7088_v9 = vand.u32 4294901760, %v7087_v49  ;;  %v7099_v49 = vld [vmem:[#allocation34_spill] sm:$0xff] }
 0x1c7   : > { %3380 = vmatpush1.bf16.msra.mxu1 %v7063_v61  ;;  %v3769_v42 = vpack.c.bf16 %v7074_v5, %v7072_v48  ;;  %v7077_v61 = vand.u32 4294901760, %v7076_v40  ;;  %v3389_v48 = vpack.c.bf16 %v7088_v9, %v7086_v1  ;;  %v7089_v5 = vld [vmem:[#allocation29_spill] sm:$0xff]  ;;  %v7091_v40 = vld [vmem:[#allocation30_spill] sm:$0xff] }
 0x1c8   : > { %3764 = vmatpush1.bf16.msra.mxu0 %v7064_v60  ;;  %3382 = vmatprep.subr.bf16.mxu1 %v7065_v55  ;;  %v7079_v60 = vand.u32 4294901760, %v7078_v15  ;;  %v7080_v55 = vld [vmem:[#allocation202_spill] sm:$0xff]  ;;  %v7092_v7 = vand.u32 4294901760, %v7091_v40 }
 0x1c9   : > { %3766 = vmatprep.subr.bf16.mxu0 %v7070_v45  ;;  %v3771_v45 = vpack.c.bf16 %v7084_v13, %v7082_v22  ;;  %v7097_v22 = vld [vmem:[#allocation33_spill] sm:$0xff]  ;;  %v7101_v13 = vld [vmem:[#allocation36_spill] sm:$0xff] }
 0x1ca   : > { %v3387_v12 = vpack.c.bf16 %v7079_v60, %v7077_v61  ;;  %v7093_v61 = vand.u32 4294901760, %v7001_v28  ;;  %v7095_v60 = vld [vmem:[#allocation31_spill] sm:$0xff]  ;;  %v7098_v24 = vand.u32 4294901760, %v7097_v22  ;;  %v7102_v1 = vand.u32 4294901760, %v7101_v13  ;;  %v7111_v22 = vld [vmem:[#allocation205_spill] sm:$0xff] }
 0x1cb   : > { %3384 = vmatpush1.bf16.msra.mxu1 %v7075_v16  ;;  %v7090_v16 = vand.u32 4294901760, %v7089_v5  ;;  %v7096_v21 = vand.u32 4294901760, %v7095_v60  ;;  %v7105_v28 = vld [vmem:[#allocation39_spill] sm:$0xff] }
 0x1cc   : > { %3768 = vmatpush1.bf16.msra.mxu0 %v7080_v55  ;;  %3386 = vmatprep.subr.bf16.mxu1 %v3385_v54  ;;  %v7094_v54 = vand.u32 4294901760, %v7003_v2  ;;  %v7106_v5 = vand.u32 4294901760, %v7105_v28  ;;  %v7107_v2 = vld [vmem:[#allocation41_spill] sm:$0xff]  ;;  %v7117_v13 = vld [vmem:[#allocation47_spill] sm:$0xff]  ;;  %v7121_v28 = vld [vmem:[#allocation50_spill] sm:$0xff] }
 0x1cd   : > { %3770 = vmatprep.subr.bf16.mxu0 %v3769_v42  ;;  %v3773_v15 = vpack.c.bf16 %v7092_v7, %v7090_v16  ;;  %v3391_v41 = vpack.c.bf16 %v7098_v24, %v7096_v21  ;;  %v7100_v42 = vand.u32 4294901760, %v7099_v49  ;;  %v7103_v7 = vld [vmem:[#allocation38_spill] sm:$0xff]  ;;  %v7108_v40 = vand.u32 4294901760, %v7107_v2  ;;  %v7115_v24 = vld [vmem:[#allocation45_spill] sm:$0xff]  ;;  %v7123_v2 = vld [vmem:[#allocation51_spill] sm:$0xff] }
 0x1ce   : > { %1281 = vmatmul.mubr.f32.vlgmr.msra.gmra.mrb[0].mxu1 %v7093_v61  ;;  %v7104_v16 = vand.u32 4294901760, %v7103_v7  ;;  %v7109_v61 = vld [vmem:[#allocation42_spill] sm:$0xff]  ;;  %v7116_v49 = vand.u32 4294901760, %v7115_v24 }
 0x1cf   : > { %3388 = vmatpush1.bf16.msra.mxu1 %v3387_v12  ;;  %2565 = vmatmul.mubr.f32.vlgmr.msra.gmra.mrb[0].mxu0 %v7094_v54  ;;  %v3775_v9 = vpack.c.bf16 %v7102_v1, %v7100_v42  ;;  %v7110_v54 = vand.u32 4294901760, %v7109_v61  ;;  %v7118_v1 = vand.u32 4294901760, %v7117_v13  ;;  %v7127_v55 = vld [vmem:[#allocation54_spill] sm:$0xff]  ;;  %v7133_v13 = vld [vmem:[#allocation59_spill] sm:$0xff] }
 0x1d0   : > { %3772 = vmatpush1.bf16.msra.mxu0 %v3771_v45  ;;  %3390 = vmatprep.subr.bf16.mxu1 %v3389_v48  ;;  %v3393_v12 = vpack.c.bf16 %v7106_v5, %v7104_v16  ;;  %v7112_v45 = vld [vmem:[#allocation206_spill] sm:$0xff]  ;;  %v7113_v48 = vld [vmem:[#allocation44_spill] sm:$0xff]  ;;  %v7122_v5 = vand.u32 4294901760, %v7121_v28 }
 0x1d1   : > { %3774 = vmatprep.subr.bf16.mxu0 %v3773_v15  ;;  %v3777_v60 = vpack.c.bf16 %v7110_v54, %v7108_v40  ;;  %1544 = vmatprep.mubr.f32.mxu1 %v7111_v22  ;;  %v7114_v21 = vand.u32 4294901760, %v7113_v48  ;;  %v7119_v15 = vld [vmem:[#allocation48_spill] sm:$0xff]  ;;  %v7124_v40 = vand.u32 4294901760, %v7123_v2  ;;  %v7125_v54 = vld [vmem:[#allocation53_spill] sm:$0xff]  ;;  %v7128_v48 = vand.u32 4294901760, %v7127_v55  ;;  %v7139_v2 = vld [vmem:[#allocation63_spill] sm:$0xff] }
 0x1d2   : > { %2828 = vmatprep.mubr.f32.mxu0 %v7112_v45  ;;  %v7120_v7 = vand.u32 4294901760, %v7119_v15  ;;  %v7135_v15 = vld [vmem:[#allocation60_spill] sm:$0xff] }
 0x1d3   : > { %3392 = vmatpush1.bf16.msra.mxu1 %v3391_v41  ;;  %v3395_v42 = vpack.c.bf16 %v7116_v49, %v7114_v21  ;;  %v3397_v61 = vpack.c.bf16 %v7124_v40, %v7122_v5  ;;  %v7126_v41 = vand.u32 4294901760, %v7125_v54  ;;  %v7129_v21 = vld [vmem:[#allocation55_spill] sm:$0xff]  ;;  %v7137_v5 = vld [vmem:[#allocation62_spill] sm:$0xff]  ;;  %v7140_v40 = vand.u32 4294901760, %v7139_v2  ;;  %v7141_v55 = vld [vmem:[#allocation64_spill] sm:$0xff] }
 0x1d4   : > { %3776 = vmatpush1.bf16.msra.mxu0 %v3775_v9  ;;  %3394 = vmatprep.subr.bf16.mxu1 %v3393_v12  ;;  %v3779_v16 = vpack.c.bf16 %v7120_v7, %v7118_v1  ;;  %v7130_v9 = vand.u32 4294901760, %v7129_v21  ;;  %v7131_v12 = vld [vmem:[#allocation57_spill] sm:$0xff]  ;;  %v7134_v1 = vand.u32 4294901760, %v7133_v13  ;;  %v7136_v7 = vand.u32 4294901760, %v7135_v15  ;;  %v7149_v13 = vld [vmem:[#allocation71_spill] sm:$0xff]  ;;  %v7151_v15 = vld [vmem:[#allocation72_spill] sm:$0xff] }
 0x1d5   : > { %3778 = vmatprep.subr.bf16.mxu0 %v3777_v60  ;;  %v3781_v45 = vpack.c.bf16 %v7128_v48, %v7126_v41  ;;  %v7132_v24 = vand.u32 4294901760, %v7131_v12  ;;  %v7138_v60 = vand.u32 4294901760, %v7137_v5  ;;  %v7143_v41 = vld [vmem:[#allocation66_spill] sm:$0xff]  ;;  %v7155_v2 = vld [vmem:[#allocation75_spill] sm:$0xff] }
 0x1d6   : > { %v3783_v28 = vpack.c.bf16 %v7136_v7, %v7134_v1  ;;  %v7144_v48 = vand.u32 4294901760, %v7143_v41  ;;  %v7150_v1 = vand.u32 4294901760, %v7149_v13  ;;  %v7152_v7 = vand.u32 4294901760, %v7151_v15  ;;  %v7159_v41 = vld [vmem:[#allocation78_spill] sm:$0xff]  ;;  %v7165_v13 = vld [vmem:[#allocation83_spill] sm:$0xff]  ;;  %v7167_v15 = vld [vmem:[#allocation84_spill] sm:$0xff] }
 0x1d7   : > { %3396 = vmatpush1.bf16.msra.mxu1 %v3395_v42  ;;  %v3399_v49 = vpack.c.bf16 %v7132_v24, %v7130_v9  ;;  %v3401_v54 = vpack.c.bf16 %v7140_v40, %v7138_v60  ;;  %v7142_v42 = vand.u32 4294901760, %v7141_v55  ;;  %v7145_v9 = vld [vmem:[#allocation68_spill] sm:$0xff]  ;;  %v7153_v60 = vld [vmem:[#allocation74_spill] sm:$0xff]  ;;  %v7156_v40 = vand.u32 4294901760, %v7155_v2  ;;  %v7171_v2 = vld [vmem:[#allocation87_spill] sm:$0xff] }
 0x1d8   : > { %3780 = vmatpush1.bf16.msra.mxu0 %v3779_v16  ;;  %3398 = vmatprep.subr.bf16.mxu1 %v3397_v61  ;;  %v7146_v16 = vand.u32 4294901760, %v7145_v9  ;;  %v7147_v61 = vld [vmem:[#allocation69_spill] sm:$0xff]  ;;  %v3787_v5 = vpack.c.bf16 %v7152_v7, %v7150_v1  ;;  %v7166_v1 = vand.u32 4294901760, %v7165_v13  ;;  %v7168_v7 = vand.u32 4294901760, %v7167_v15  ;;  %v7181_v13 = vld [vmem:[#allocation95_spill] sm:$0xff]  ;;  %v7183_v15 = vld [vmem:[#allocation96_spill] sm:$0xff] }
 0x1d9   : > { %3782 = vmatprep.subr.bf16.mxu0 %v3781_v45  ;;  %v3785_v21 = vpack.c.bf16 %v7144_v48, %v7142_v42  ;;  %v7148_v12 = vand.u32 4294901760, %v7147_v61  ;;  %v7154_v45 = vand.u32 4294901760, %v7153_v60  ;;  %v7157_v42 = vld [vmem:[#allocation76_spill] sm:$0xff]  ;;  %v7160_v48 = vand.u32 4294901760, %v7159_v41  ;;  %v7175_v41 = vld [vmem:[#allocation90_spill] sm:$0xff] }
 0x1da   : > { %v3791_v60 = vpack.c.bf16 %v7168_v7, %v7166_v1  ;;  %v7182_v1 = vand.u32 4294901760, %v7181_v13  ;;  %v7184_v7 = vand.u32 4294901760, %v7183_v15  ;;  %v7201_v15 = vand.u32 4294901760, %v6955_v32 }
 0x1db   : > { %3400 = vmatpush1.bf16.msra.mxu1 %v3399_v49  ;;  %v3403_v24 = vpack.c.bf16 %v7148_v12, %v7146_v16  ;;  %v3405_v55 = vpack.c.bf16 %v7156_v40, %v7154_v45  ;;  %v7158_v49 = vand.u32 4294901760, %v7157_v42  ;;  %v7161_v16 = vld [vmem:[#allocation80_spill] sm:$0xff]  ;;  %v7169_v45 = vld [vmem:[#allocation86_spill] sm:$0xff]  ;;  %v7172_v40 = vand.u32 4294901760, %v7171_v2  ;;  %v7187_v2 = vld [vmem:[#allocation99_spill] sm:$0xff] }
 0x1dc   : > { %3784 = vmatpush1.bf16.msra.mxu0 %v3783_v28  ;;  %3402 = vmatprep.subr.bf16.mxu1 %v3401_v54  ;;  %v7162_v28 = vand.u32 4294901760, %v7161_v16  ;;  %v7163_v54 = vld [vmem:[#allocation81_spill] sm:$0xff]  ;;  %v7208_v32 = vand.u32 4294901760, %v6878_v63  ;;  %v7215_v63 = vand.u32 4294901760, %v6885_v3  ;;  %v7222_v3 = vand.u32 4294901760, %v6892_v62 }
 0x1dd   : > { %3786 = vmatprep.subr.bf16.mxu0 %v3785_v21  ;;  %v3789_v9 = vpack.c.bf16 %v7160_v48, %v7158_v49  ;;  %v7164_v61 = vand.u32 4294901760, %v7163_v54  ;;  %v7170_v21 = vand.u32 4294901760, %v7169_v45  ;;  %v7173_v49 = vld [vmem:[#allocation88_spill] sm:$0xff]  ;;  %v7176_v48 = vand.u32 4294901760, %v7175_v41 }
 0x1de   : > { %v3795_v45 = vpack.c.bf16 %v7184_v7, %v7182_v1  ;;  %v7204_v7 = vand.u32 4294901760, %v6874_v29  ;;  %v7211_v29 = vand.u32 4294901760, %v6881_v19  ;;  %v7218_v19 = vand.u32 4294901760, %v6889_v10 }
 0x1df   : > { %3404 = vmatpush1.bf16.msra.mxu1 %v3403_v24  ;;  %v3407_v12 = vpack.c.bf16 %v7164_v61, %v7162_v28  ;;  %v3409_v42 = vpack.c.bf16 %v7172_v40, %v7170_v21  ;;  %v7174_v24 = vand.u32 4294901760, %v7173_v49  ;;  %v7177_v28 = vld [vmem:[#allocation92_spill] sm:$0xff]  ;;  %v7185_v21 = vld [vmem:[#allocation98_spill] sm:$0xff]  ;;  %v7188_v40 = vand.u32 4294901760, %v7187_v2 }
 0x1e0   : > { %3788 = vmatpush1.bf16.msra.mxu0 %v3787_v5  ;;  %3406 = vmatprep.subr.bf16.mxu1 %v3405_v55  ;;  %v7178_v5 = vand.u32 4294901760, %v7177_v28  ;;  %v7179_v55 = vld [vmem:[#allocation93_spill] sm:$0xff]  ;;  %v7212_v2 = vand.u32 4294901760, %v6882_v57  ;;  %v7219_v57 = vand.u32 4294901760, %v6890_v44  ;;  %v7226_v44 = vand.u32 4294901760, %v6896_v50 }
 0x1e1   : > { %3790 = vmatprep.subr.bf16.mxu0 %v3789_v9  ;;  %v3793_v16 = vpack.c.bf16 %v7176_v48, %v7174_v24  ;;  %v7180_v54 = vand.u32 4294901760, %v7179_v55  ;;  %v7186_v9 = vand.u32 4294901760, %v7185_v21  ;;  %v7190_v24 = vld [vmem:[#allocation102_spill] sm:$0xff]  ;;  %v7195_v55 = vand.u32 4294901760, %v6949_v39 }
 0x1e2   : > { %v7191_v41 = vand.u32 4294901760, %v7190_v24  ;;  %v7202_v39 = vand.u32 4294901760, %v6818_v37  ;;  %v7220_v24 = vand.u32 4294901760, %v6891_v4  ;;  %v7227_v4 = vld [vmem:[#allocation156_spill] sm:$0xff] }
 0x1e3   : > { %3408 = vmatpush1.bf16.msra.mxu1 %v3407_v12  ;;  %v3411_v61 = vpack.c.bf16 %v7180_v54, %v7178_v5  ;;  %v3413_v49 = vpack.c.bf16 %v7188_v40, %v7186_v9  ;;  %v7189_v12 = vand.u32 4294901760, %v6944_v0  ;;  %v7194_v5 = vand.u32 4294901760, %v6948_v20 }
 0x1e4   : > { %3792 = vmatpush1.bf16.msra.mxu0 %v3791_v60  ;;  %3410 = vmatprep.subr.bf16.mxu1 %v3409_v42  ;;  %v7192_v60 = vand.u32 4294901760, %v6946_v25  ;;  %v7193_v42 = vand.u32 4294901760, %v6947_v11  ;;  %v7197_v0 = vand.u32 4294901760, %v6951_v36  ;;  %v7199_v25 = vand.u32 4294901760, %v6953_v17 }
 0x1e5   : > { %3794 = vmatprep.subr.bf16.mxu0 %v3793_v16  ;;  %v3797_v48 = vpack.c.bf16 %v7191_v41, %v7189_v12  ;;  %v3799_v54 = vpack.c.bf16 %v7195_v55, %v7194_v5  ;;  %v7196_v16 = vand.u32 4294901760, %v6950_v26  ;;  %v7200_v11 = vand.u32 4294901760, %v6954_v18  ;;  %v7230_v5 = vld [vmem:[#allocation159_spill] sm:$0xff] }
 0x1e6   : > { %v3415_v28 = vpack.c.bf16 %v7193_v42, %v7192_v60  ;;  %v7203_v26 = vand.u32 4294901760, %v6819_v47  ;;  %v7206_v17 = vand.u32 4294901760, %v6876_v14  ;;  %v7207_v18 = vand.u32 4294901760, %v6877_v51 }
 0x1e7   : > { %3412 = vmatpush1.bf16.msra.mxu1 %v3411_v61  ;;  %v3417_v13 = vpack.c.bf16 %v7197_v0, %v7196_v16  ;;  %v7198_v61 = vand.u32 4294901760, %v6952_v23  ;;  %v3419_v20 = vpack.c.bf16 %v7201_v15, %v7200_v11  ;;  %v7205_v23 = vand.u32 4294901760, %v6875_v56  ;;  %v7236_v0 = vld [vmem:[#allocation167_spill] sm:$0xff] }
 0x1e8   : > { %3796 = vmatpush1.bf16.msra.mxu0 %v3795_v45  ;;  %3414 = vmatprep.subr.bf16.mxu1 %v3413_v49  ;;  %v3803_v36 = vpack.c.bf16 %v7203_v26, %v7202_v39  ;;  %v3805_v21 = vpack.c.bf16 %v7207_v18, %v7206_v17  ;;  %v7209_v9 = vand.u32 4294901760, %v6879_v58  ;;  %v7210_v47 = vand.u32 4294901760, %v6880_v35  ;;  %v7242_v15 = vld [vmem:[#allocation171_spill] sm:$0xff]  ;;  %v7246_v26 = vld [vmem:[#allocation174_spill] sm:$0xff] }
 0x1e9   : > { %3798 = vmatprep.subr.bf16.mxu0 %v3797_v48  ;;  %v3801_v1 = vpack.c.bf16 %v7199_v25, %v7198_v61  ;;  %v3421_v45 = vpack.c.bf16 %v7205_v23, %v7204_v7  ;;  %v7213_v14 = vand.u32 4294901760, %v6883_v59  ;;  %v7214_v51 = vand.u32 4294901760, %v6884_v33  ;;  %v7250_v23 = vld [vmem:[#allocation177_spill] sm:$0xff]  ;;  %v7252_v18 = vld [vmem:[#allocation179_spill] sm:$0xff] }
 0x1ea   : > { %v3423_v37 = vpack.c.bf16 %v7209_v9, %v7208_v32  ;;  %v3807_v56 = vpack.c.bf16 %v7211_v29, %v7210_v47  ;;  %v7216_v58 = vand.u32 4294901760, %v6887_v31  ;;  %v7217_v12 = vand.u32 4294901760, %v6888_v8  ;;  %v7254_v32 = vld [vmem:[#allocation180_spill] sm:$0xff]  ;;  %v7256_v47 = vld [vmem:[#allocation182_spill] sm:$0xff] }
 0x1eb   : > { %3416 = vmatpush1.bf16.msra.mxu1 %v3415_v28  ;;  %v3425_v40 = vpack.c.bf16 %v7213_v14, %v7212_v2  ;;  %v3809_v49 = vpack.c.bf16 %v7215_v63, %v7214_v51  ;;  %v3811_v59 = vpack.c.bf16 %v7219_v57, %v7218_v19  ;;  %v7221_v33 = vand.u32 4294901760, %v6837_v38  ;;  %v7262_v63 = vld [vmem:[#allocation186_spill] sm:$0xff]  ;;  %v7266_v19 = vld [vmem:[#allocation189_spill] sm:$0xff] }
 0x1ec   : > { %3800 = vmatpush1.bf16.msra.mxu0 %v3799_v54  ;;  %3418 = vmatprep.subr.bf16.mxu1 %v3417_v13  ;;  %v3427_v35 = vpack.c.bf16 %v7217_v12, %v7216_v58  ;;  %v7223_v31 = vand.u32 4294901760, %v6893_v34  ;;  %v7224_v8 = vand.u32 4294901760, %v6894_v30  ;;  %v7225_v60 = vand.u32 4294901760, %v6895_v52  ;;  %v7264_v12 = vld [vmem:[#allocation188_spill] sm:$0xff] }
 0x1ed   : > { %3802 = vmatprep.subr.bf16.mxu0 %v3801_v1  ;;  %v3429_v41 = vpack.c.bf16 %v7221_v33, %v7220_v24  ;;  %v7228_v42 = vand.u32 4294901760, %v7227_v4  ;;  %v7229_v28 = vand.u32 4294901760, %v6898_v46  ;;  %v7231_v62 = vand.u32 4294901760, %v7230_v5  ;;  %v7238_v46 = vld [vmem:[#allocation168_spill] sm:$0xff]  ;;  %v7240_v1 = vld [vmem:[#allocation170_spill] sm:$0xff]  ;;  %v7268_v24 = vld [vmem:[#allocation191_spill] sm:$0xff] }
 0x1ee   : > { %v3813_v48 = vpack.c.bf16 %v7223_v31, %v7222_v3  ;;  %v3431_v10 = vpack.c.bf16 %v7225_v60, %v7224_v8  ;;  %v7232_v34 = vand.u32 4294901760, %v6970_v53  ;;  %v7233_v30 = vand.u32 4294901760, %v6901_v6  ;;  %v7244_v6 = vld [vmem:[#allocation172_spill] sm:$0xff]  ;;  %v7274_v60 = vld [vmem:[#allocation195_spill] sm:$0xff] }
 0x1ef   : > { %3420 = vmatpush1.bf16.msra.mxu1 %v3419_v20  ;;  %v3815_v38 = vpack.c.bf16 %v7228_v42, %v7226_v44  ;;  %v3433_v55 = vpack.c.bf16 %v7231_v62, %v7229_v28  ;;  %v7234_v52 = vand.u32 4294901760, %v6902_v27  ;;  %v7235_v16 = vand.u32 4294901760, %v6903_v43  ;;  %v7248_v43 = vld [vmem:[#allocation176_spill] sm:$0xff] }
 0x1f0   : > { %3804 = vmatpush1.bf16.msra.mxu0 %v3803_v36  ;;  %3422 = vmatprep.subr.bf16.mxu1 %v3421_v45  ;;  %v3817_v54 = vpack.c.bf16 %v7233_v30, %v7232_v34  ;;  %v7237_v13 = vand.u32 4294901760, %v7236_v0  ;;  %v7239_v61 = vand.u32 4294901760, %v7238_v46  ;;  %v7241_v11 = vand.u32 4294901760, %v7240_v1  ;;  %v7276_v4 = vld [vmem:[#allocation196_spill] sm:$0xff]  ;;  %v7282_v34 = vld [vmem:[#allocation201_spill] sm:$0xff]  ;;  %v7291_v1 = vld [vmem:[#allocation19_spill] sm:$0xff] }
 0x1f1   : > { %3806 = vmatprep.subr.bf16.mxu0 %v3805_v21  ;;  %v3435_v50 = vpack.c.bf16 %v7235_v16, %v7234_v52  ;;  %v7243_v53 = vand.u32 4294901760, %v7242_v15  ;;  %v7245_v39 = vand.u32 4294901760, %v7244_v6  ;;  %v7247_v27 = vand.u32 4294901760, %v7246_v26  ;;  %v7280_v62 = vld [vmem:[#allocation200_spill] sm:$0xff]  ;;  %v7284_v52 = vld [vmem:[#allocation203_spill] sm:$0xff]  ;;  %v7288_v46 = vld [vmem:[#allocation13_spill] sm:$0xff] }
 0x1f2   : > { %v3819_v25 = vpack.c.bf16 %v7239_v61, %v7237_v13  ;;  %v7249_v7 = vand.u32 4294901760, %v7248_v43  ;;  %v7251_v45 = vand.u32 4294901760, %v7250_v23  ;;  %v7253_v21 = vand.u32 4294901760, %v7252_v18  ;;  %v7289_v61 = vld [vmem:[#allocation17_spill] sm:$0xff]  ;;  %v7293_v15 = vld [vmem:[#allocation22_spill] sm:$0xff]  ;;  %v7298_v26 = vld [vmem:[#allocation35_spill] sm:$0xff] }
 0x1f3   : > { %3424 = vmatpush1.bf16.msra.mxu1 %v3423_v37  ;;  %v3437_v20 = vpack.c.bf16 %v7243_v53, %v7241_v11  ;;  %v3821_v36 = vpack.c.bf16 %v7247_v27, %v7245_v39  ;;  %v7255_v9 = vand.u32 4294901760, %v7254_v32  ;;  %v7257_v29 = vand.u32 4294901760, %v7256_v47  ;;  %v7292_v11 = vld [vmem:[#allocation211_spill] sm:$0xff]  ;;  %v7294_v53 = vld [vmem:[#allocation26_spill] sm:$0xff]  ;;  %v7297_v39 = vld [vmem:[#allocation32_spill] sm:$0xff] }
 0x1f4   : > { %3808 = vmatpush1.bf16.msra.mxu0 %v3807_v56  ;;  %3426 = vmatprep.subr.bf16.mxu1 %v3425_v40  ;;  %v3439_v17 = vpack.c.bf16 %v7251_v45, %v7249_v7  ;;  %v7258_v56 = vld [vmem:[#allocation183_spill] sm:$0xff]  ;;  %v7260_v40 = vld [vmem:[#allocation184_spill] sm:$0xff]  ;;  %v7267_v57 = vand.u32 4294901760, %v7266_v19  ;;  %v7269_v33 = vand.u32 4294901760, %v7268_v24  ;;  %v7277_v42 = vand.u32 4294901760, %v7276_v4  ;;  %v7296_v6 = vld [vmem:[#allocation206_spill] sm:$0xff] }
 0x1f5   : > { %3810 = vmatprep.subr.bf16.mxu0 %v3809_v49  ;;  %v3823_v37 = vpack.c.bf16 %v7255_v9, %v7253_v21  ;;  %v7259_v2 = vand.u32 4294901760, %v7258_v56  ;;  %v7261_v51 = vand.u32 4294901760, %v7260_v40  ;;  %v7263_v49 = vand.u32 4294901760, %v7262_v63  ;;  %v7299_v27 = vld [vmem:[#allocation37_spill] sm:$0xff]  ;;  %v7301_v43 = vld [vmem:[#allocation43_spill] sm:$0xff]  ;;  %v7302_v7 = vld [vmem:[#allocation46_spill] sm:$0xff] }
 0x1f6   : > { %v7283_v30 = vand.u32 4294901760, %v7282_v34  ;;  %v7285_v16 = vand.u32 4294901760, %v7284_v52  ;;  %v7303_v23 = vld [vmem:[#allocation49_spill] sm:$0xff]  ;;  %v7304_v45 = vld [vmem:[#allocation52_spill] sm:$0xff]  ;;  %v7309_v32 = vld [vmem:[#allocation67_spill] sm:$0xff] }
 0x1f7   : > { %3428 = vmatpush1.bf16.msra.mxu1 %v3427_v35  ;;  %v3441_v14 = vpack.c.bf16 %v7259_v2, %v7257_v29  ;;  %v3825_v58 = vpack.c.bf16 %v7263_v49, %v7261_v51  ;;  %v7265_v35 = vand.u32 4294901760, %v7264_v12  ;;  %v7307_v18 = vld [vmem:[#allocation61_spill] sm:$0xff]  ;;  %v7310_v9 = vld [vmem:[#allocation70_spill] sm:$0xff]  ;;  %v7313_v29 = vld [vmem:[#allocation79_spill] sm:$0xff] }
 0x1f8   : > { %3812 = vmatpush1.bf16.msra.mxu0 %v3811_v59  ;;  %3430 = vmatprep.subr.bf16.mxu1 %v3429_v41  ;;  %v7270_v41 = vld [vmem:[#allocation192_spill] sm:$0xff]  ;;  %v7308_v21 = vld [vmem:[#allocation65_spill] sm:$0xff]  ;;  %v7314_v56 = vld [vmem:[#allocation82_spill] sm:$0xff] }
 0x1f9   : > { %3814 = vmatprep.subr.bf16.mxu0 %v3813_v48  ;;  %v3443_v59 = vpack.c.bf16 %v7267_v57, %v7265_v35  ;;  %v7271_v3 = vand.u32 4294901760, %v7270_v41  ;;  %v7272_v48 = vld [vmem:[#allocation194_spill] sm:$0xff]  ;;  %v7312_v47 = vld [vmem:[#allocation77_spill] sm:$0xff]  ;;  %v7317_v40 = vld [vmem:[#allocation91_spill] sm:$0xff] }
 0x1fa   : > { %v7273_v8 = vand.u32 4294901760, %v7272_v48  ;;  %v7315_v2 = vld [vmem:[#allocation85_spill] sm:$0xff]  ;;  %v7318_v51 = vld [vmem:[#allocation94_spill] sm:$0xff]  ;;  %v7325_v57 = vld [vmem:[#allocation115_spill] sm:$0xff] }
 0x1fb   : > { %3432 = vmatpush1.bf16.msra.mxu1 %v3431_v10  ;;  %v3827_v31 = vpack.c.bf16 %v7271_v3, %v7269_v33  ;;  %v7275_v10 = vand.u32 4294901760, %v7274_v60  ;;  %v7319_v63 = vld [vmem:[#allocation97_spill] sm:$0xff]  ;;  %v7322_v12 = vld [vmem:[#allocation106_spill] sm:$0xff]  ;;  %v7329_v41 = vld [vmem:[#allocation127_spill] sm:$0xff] }
 0x1fc   : > { %3816 = vmatpush1.bf16.msra.mxu0 %v3815_v38  ;;  %3434 = vmatprep.subr.bf16.mxu1 %v3433_v55  ;;  %v7278_v38 = vld [vmem:[#allocation198_spill] sm:$0xff]  ;;  %v7281_v55 = vand.u32 4294901760, %v7280_v62  ;;  %v7320_v49 = vld [vmem:[#allocation101_spill] sm:$0xff]  ;;  %v7337_v4 = vld [vmem:[#allocation151_spill] sm:$0xff] }
 0x1fd   : > { %3818 = vmatprep.subr.bf16.mxu0 %v3817_v54  ;;  %v3445_v44 = vpack.c.bf16 %v7275_v10, %v7273_v8  ;;  %v7279_v28 = vand.u32 4294901760, %v7278_v38  ;;  %v7323_v35 = vld [vmem:[#allocation109_spill] sm:$0xff]  ;;  %v7330_v3 = vld [vmem:[#allocation130_spill] sm:$0xff]  ;;  %v7333_v8 = vld [vmem:[#allocation139_spill] sm:$0xff] }
 0x1fe   : > { %v3447_v54 = vpack.c.bf16 %v7283_v30, %v7281_v55  ;;  %v7324_v19 = vld [vmem:[#allocation113_spill] sm:$0xff]  ;;  %v7334_v60 = vld [vmem:[#allocation142_spill] sm:$0xff]  ;;  %v7345_v30 = vld [vmem:[#allocation175_spill] sm:$0xff] }
 0x1ff   : > { %3436 = vmatpush1.bf16.msra.mxu1 %v3435_v50  ;;  %v3829_v5 = vpack.c.bf16 %v7279_v28, %v7277_v42  ;;  %v7286_v50 = vld [vmem:[#allocation204_spill] sm:$0xff]  ;;  %v7327_v24 = vld [vmem:[#allocation121_spill] sm:$0xff]  ;;  %v7338_v42 = vld [vmem:[#allocation154_spill] sm:$0xff] }
 0x200   : > { %3820 = vmatpush1.bf16.msra.mxu0 %v3819_v25  ;;  %3438 = vmatprep.subr.bf16.mxu1 %v3437_v20  ;;  %v7287_v0 = vand.u32 4294901760, %v7286_v50  ;;  %v7290_v25 = vld [vmem:[#allocation209_spill] sm:$0xff]  ;;  %v7295_v20 = vld [vmem:[#allocation28_spill] sm:$0xff]  ;;  %v7342_v62 = vld [vmem:[#allocation166_spill] sm:$0xff] }
 0x201   : > { %3822 = vmatprep.subr.bf16.mxu0 %v3821_v36  ;;  %v7300_v36 = vld [vmem:[#allocation40_spill] sm:$0xff]  ;;  %v7328_v33 = vld [vmem:[#allocation125_spill] sm:$0xff]  ;;  %v7349_v50 = vld [vmem:[#allocation187_spill] sm:$0xff] }
 0x202   : > { %v3831_v13 = vpack.c.bf16 %v7287_v0, %v7285_v16  ;;  %v7332_v48 = vld [vmem:[#allocation137_spill] sm:$0xff]  ;;  %v7350_v0 = vld [vmem:[#allocation190_spill] sm:$0xff] }
 0x203   : > { %3440 = vmatpush1.bf16.msra.mxu1 %v3439_v17  ;;  %v7305_v17 = vld [vmem:[#allocation56_spill] sm:$0xff]  ;;  %v7335_v10 = vld [vmem:[#allocation145_spill] sm:$0xff] }
 0x204   : > { %3824 = vmatpush1.bf16.msra.mxu0 %v3823_v37  ;;  %3442 = vmatprep.subr.bf16.mxu1 %v3441_v14  ;;  %v7311_v37 = vld [vmem:[#allocation73_spill] sm:$0xff] }
 0x205   : > { %3826 = vmatprep.subr.bf16.mxu0 %v3825_v58  ;;  %v7316_v14 = vld [vmem:[#allocation89_spill] sm:$0xff]  ;;  %v7321_v58 = vld [vmem:[#allocation103_spill] sm:$0xff] }
 0x206   : > { %v7339_v38 = vld [vmem:[#allocation157_spill] sm:$0xff] }
 0x207   : > { %3444 = vmatpush1.bf16.msra.mxu1 %v3443_v59  ;;  %v7326_v59 = vld [vmem:[#allocation118_spill] sm:$0xff]  ;;  %v7340_v28 = vld [vmem:[#allocation161_spill] sm:$0xff] }
 0x208   : > { %3828 = vmatpush1.bf16.msra.mxu0 %v3827_v31  ;;  %3446 = vmatprep.subr.bf16.mxu1 %v3445_v44  ;;  %v7331_v31 = vld [vmem:[#allocation133_spill] sm:$0xff] }
 0x209   : > { %3830 = vmatprep.subr.bf16.mxu0 %v3829_v5  ;;  %v7336_v44 = vld [vmem:[#allocation149_spill] sm:$0xff]  ;;  %v7341_v5 = vld [vmem:[#allocation163_spill] sm:$0xff] }
 0x20a   : > { %v7343_v55 = vld [vmem:[#allocation169_spill] sm:$0xff] }
 0x20b   : > { %3448 = vmatpush1.bf16.msra.mxu1 %v3447_v54  ;;  %v7344_v34 = vld [vmem:[#allocation173_spill] sm:$0xff]  ;;  %v7346_v54 = vld [vmem:[#allocation178_spill] sm:$0xff] }
 0x20c   : > { %3832 = vmatpush1.bf16.msra.mxu0 %v3831_v13  ;;  %3450 = vmatprep.subr.bf16.mxu1 %v7288_v46  ;;  %v7347_v52 = vld [vmem:[#allocation181_spill] sm:$0xff] }
 0x20d   : > { %3834 = vmatprep.subr.bf16.mxu0 %v7289_v61  ;;  %v7348_v16 = vld [vmem:[#allocation185_spill] sm:$0xff]  ;;  %v7353_v61 = vld [vmem:[#allocation199_spill] sm:$0xff] }
 0x20e   : > { %1546 = vmatmul.mubr.f32.vlgmr.msra.gmra.mrb[0].mxu1 %v7290_v25  ;;  %v7351_v13 = vld [vmem:[#allocation193_spill] sm:$0xff] }
 0x20f   : > { %3452 = vmatpush1.bf16.msra.mxu1 %v7291_v1  ;;  %2830 = vmatmul.mubr.f32.vlgmr.msra.gmra.mrb[0].mxu0 %v7292_v11  ;;  %v7352_v46 = vld [vmem:[#allocation197_spill] sm:$0xff]  ;;  %v7354_v1 = vld [vmem:[#allocation202_spill] sm:$0xff] }
 0x210   : > { %3836 = vmatpush1.bf16.msra.mxu0 %v7293_v15  ;;  %3454 = vmatprep.subr.bf16.mxu1 %v7294_v53 }
 0x211   : > { %3838 = vmatprep.subr.bf16.mxu0 %v7295_v20  ;;  %1681 = vmatprep.mubr.f32.mxu1 %v7111_v22  ;;  %v7306_v22 = vld [vmem:[#allocation58_spill] sm:$0xff]  ;;  %v2974_v20 = vstv %s2973_s22 }
 0x212   : > { %2965 = vmatprep.mubr.f32.mxu0 %v7296_v6 }
 0x213   : > { %3456 = vmatpush1.bf16.msra.mxu1 %v7297_v39 }
 0x214   : > { %3840 = vmatpush1.bf16.msra.mxu0 %v7298_v26  ;;  %3458 = vmatprep.subr.bf16.mxu1 %v7299_v27 }
 0x215   : > { %3842 = vmatprep.subr.bf16.mxu0 %v7300_v36 }
 0x217   : > { %3460 = vmatpush1.bf16.msra.mxu1 %v7301_v43 }
 0x218   : > { %3844 = vmatpush1.bf16.msra.mxu0 %v7302_v7  ;;  %3462 = vmatprep.subr.bf16.mxu1 %v7303_v23 }
 0x219   : > { %3846 = vmatprep.subr.bf16.mxu0 %v7304_v45 }
 0x21b   : > { %3464 = vmatpush1.bf16.msra.mxu1 %v7305_v17 }
 0x21c   : > { %3848 = vmatpush1.bf16.msra.mxu0 %v7306_v22  ;;  %3466 = vmatprep.subr.bf16.mxu1 %v7307_v18  ;;  %v2989_v22 = vlaneseq }
 0x21d   : > { %3850 = vmatprep.subr.bf16.mxu0 %v7308_v21 }
 0x21e   : > { %v2990_v18 = vshrl.u32 %v2989_v22, 7 }
 0x21f   : > { %3468 = vmatpush1.bf16.msra.mxu1 %v7309_v32 }
 0x220   : > { %3852 = vmatpush1.bf16.msra.mxu0 %v7310_v9  ;;  %3470 = vmatprep.subr.bf16.mxu1 %v7311_v37  ;;  %v2991_v21 = vsub.s32 0, %v2990_v18 }
 0x221   : > { %3854 = vmatprep.subr.bf16.mxu0 %v7312_v47 }
 0x223   : > { %3472 = vmatpush1.bf16.msra.mxu1 %v7313_v29 }
 0x224   : > { %3856 = vmatpush1.bf16.msra.mxu0 %v7314_v56  ;;  %3474 = vmatprep.subr.bf16.mxu1 %v7315_v2  ;;  %v3997_v56 = vld [vmem:[%s4365_s26] sm:$0xff] }
 0x225   : > { %3858 = vmatprep.subr.bf16.mxu0 %v7316_v14 }
 0x227   : > { %3476 = vmatpush1.bf16.msra.mxu1 %v7317_v40 }
 0x228   : > { %3860 = vmatpush1.bf16.msra.mxu0 %v7318_v51  ;;  %3478 = vmatprep.subr.bf16.mxu1 %v7319_v63 }
 0x229   : > { %3862 = vmatprep.subr.bf16.mxu0 %v7320_v49 }
 0x22b   : > { %3480 = vmatpush1.bf16.msra.mxu1 %v7321_v58 }
 0x22c   : > { %3864 = vmatpush1.bf16.msra.mxu0 %v7322_v12  ;;  %3482 = vmatprep.subr.bf16.mxu1 %v7323_v35 }
 0x22d   : > { %3866 = vmatprep.subr.bf16.mxu0 %v7324_v19 }
 0x22f   : > { %3484 = vmatpush1.bf16.msra.mxu1 %v7325_v57 }
 0x230   : > { %3868 = vmatpush1.bf16.msra.mxu0 %v7326_v59  ;;  %3486 = vmatprep.subr.bf16.mxu1 %v7327_v24 }
 0x231   : > { %3870 = vmatprep.subr.bf16.mxu0 %v7328_v33 }
 0x233   : > { %3488 = vmatpush1.bf16.msra.mxu1 %v7329_v41 }
 0x234   : > { %3872 = vmatpush1.bf16.msra.mxu0 %v7330_v3  ;;  %3490 = vmatprep.subr.bf16.mxu1 %v7331_v31 }
 0x235   : > { %3874 = vmatprep.subr.bf16.mxu0 %v7332_v48 }
 0x237   : > { %3492 = vmatpush1.bf16.msra.mxu1 %v7333_v8 }
 0x238   : > { %3876 = vmatpush1.bf16.msra.mxu0 %v7334_v60  ;;  %3494 = vmatprep.subr.bf16.mxu1 %v7335_v10 }
 0x239   : > { %3878 = vmatprep.subr.bf16.mxu0 %v7336_v44 }
 0x23b   : > { %3496 = vmatpush1.bf16.msra.mxu1 %v7337_v4 }
 0x23c   : > { %3880 = vmatpush1.bf16.msra.mxu0 %v7338_v42  ;;  %3498 = vmatprep.subr.bf16.mxu1 %v7339_v38 }
 0x23d   : > { %3882 = vmatprep.subr.bf16.mxu0 %v7340_v28 }
 0x23f   : > { %3500 = vmatpush1.bf16.msra.mxu1 %v7341_v5 }
 0x240   : > { %3884 = vmatpush1.bf16.msra.mxu0 %v7342_v62  ;;  %3502 = vmatprep.subr.bf16.mxu1 %v7343_v55 }
 0x241   : > { %3886 = vmatprep.subr.bf16.mxu0 %v7344_v34 }
 0x243   : > { %3504 = vmatpush1.bf16.msra.mxu1 %v7345_v30 }
 0x244   : > { %3888 = vmatpush1.bf16.msra.mxu0 %v7346_v54  ;;  %3506 = vmatprep.subr.bf16.mxu1 %v7347_v52 }
 0x245   : > { %3890 = vmatprep.subr.bf16.mxu0 %v7348_v16 }
 0x247   : > { %3508 = vmatpush1.bf16.msra.mxu1 %v7349_v50 }
 0x248   : > { %3892 = vmatpush1.bf16.msra.mxu0 %v7350_v0  ;;  %3510 = vmatprep.subr.bf16.mxu1 %v7351_v13 }
 0x249   : > { %3894 = vmatprep.subr.bf16.mxu0 %v7352_v46 }
 0x24b   : > { %3512 = vmatpush1.bf16.msra.mxu1 %v7353_v61 }
 0x24c   : > { %3896 = vmatpush1.bf16.msra.mxu0 %v7354_v1 }
 0x24e   : > { %1683 = vmatmul.mubr.f32.vlgmr.msra.gmra.mrb[0].mxu1 %v7290_v25 }
 0x24f   : > { %2967 = vmatmul.mubr.f32.vlgmr.msra.gmra.mrb[0].mxu0 %v7292_v11 }
 0x321   : > { %v1684_v15 = vpop.f32.mrb[0].mxu1 }
 0x322   : > { %v2968_v53 = vpop.f32.mrb[0].mxu0  ;;  %v1686_v6 = vpop.f32.mrb[1].mxu1 }
 0x323   : > { %v3897_v39 = vadd.f32 %v2968_v53, %v1684_v15  ;;  %v2970_v26 = vpop.f32.mrb[1].mxu0 }
 0x324   : > { %v3898_v27 = vadd.f32 %v2970_v26, %v1686_v6 }
 0x325   : > { %v2975_v36 = vadd.f32 %v3897_v39, %v2974_v20 }
 0x326   : > { %v2976_v43 = vadd.f32 %v3898_v27, %v2974_v20 }
 0x327   : > { %v3120_v7 = vmul.f32 -1.442695, %v2975_v36 }
 0x328   : > { %v3121_v23 = vmul.f32 -1.442695, %v2976_v43 }
 0x329   : > { %3989 = vpow2.f32 %v3120_v7 }
 0x32a   : > { %3991 = vpow2.f32 %v3121_v23 }
 0x333   : > { %v3990_v45 = vpop.eup %3989 }
 0x334   : > { %v3992_v25 = vpop.eup %3991  ;;  %v2983_v11 = vadd.f32 1.0, %v3990_v45 }
 0x335   : > { %v2984_v17 = vadd.f32 1.0, %v3992_v25 }
 0x336   : > { %3993 = vrcp.f32 %v2983_v11 }
 0x337   : > { %3995 = vrcp.f32 %v2984_v17 }
 0x340   : > { %v3994_v32 = vpop.eup %3993 }
 0x341   : > { %v3996_v9 = vpop.eup %3995  ;;  %v2992_v37 = vrot.slane %v3994_v32, %v2991_v21 }
 0x342   : > { %v2996_v47 = vrot.slane %v3996_v9, %v2991_v21 }
 0x344   : > { %v2999_v29 = vcombine.low %v2992_v37, %v2996_v47 }
 0x346   : > { %v3001_v2 = vmul.f32 %v3997_v56, %v2999_v29 }
 0x348   : > { %3002 = vst [vmem:[%s243_s21] sm:$0xff] %v3001_v2 }
 0x349   : > { %4097 = shalt.err (!%p4094_p2)
}
 0x34a   : > { %s4098_s16 = scalar_lea.hbm %s6012_s7, 128  ;;  %s4102_s13 = scalar_lea.hbm %s6060_s4, 256 }
 0x34b   : > { %p4099_p13 = scmp.ne.s32.totalorder %s6012_s7, %s4098_s16  ;;  %p4103_p4 = scmp.lt.u32.totalorder %s6012_s7, %s6060_s4 }
 0x34c   : > { %p4104_p5 = scmp.lt.u32.totalorder %s4102_s13, %s4098_s16  ;;  %p4106_p11 = scmp.lt.u32.totalorder %s4098_s16, %s6012_s7 }
 0x34d   : > { %p4100_p6 = pnand %p4099_p13, %p7355_p0 }
 0x34e   : > { %p4105_p8 = por %p4104_p5, %p4103_p4 }
 0x34f   : > { %p4101_p10 = pneg %p4100_p6 }
 0x350   : > { %p4107_p1 = por %p4106_p11, %p4105_p8 }
 0x352   : > { %p4108_p3 = pnand %p4107_p1, %p4101_p10 }
 0x354   : > { %4111 = shalt.err (!%p4108_p3)
}
 0x355   : > { %3929 = dma.vmem_to_hbm [thread:$0]  (%p7355_p0), %s6014_s28, 128, %s6012_s7, %s3004_s8  }
 0x356 PF: > { %s3030_s26 = sand.u32 1, %s4142_s17   ;;  %p7356_p7 = scmp.ne.s32.totalorder %s6573_s23, 0 }
 0x357   : > { %p7357_p9 = scmp.ge.s32.totalorder %s4154_s20, 2  ;;  %s3031_s22 = scalar_lea.sflag [#allocation5], %s3030_s26 }
 0x359   : > { %p3943_p12 = pnand %p7357_p9, %p7356_p7 }
 0x35b   : > { %4137 = dma.done.wait (!%p3943_p12), %s3031_s22, 128  }
 0x35c   : > { %4139 = vsyncadd (!%p3943_p12), %s3031_s22, 4294967168  ;;  %p19_p2 = scmp.ge.s32.totalorder %s4300_s9, 4   ;;  %s7358_s17 = smov %s4146_s18 }
 0x35d   : > { %s7359_s18 = smov %s4150_s19  ;;  %s7360_s19 = smov %s4316_s14 }
 0x35e   : > { %s7361_s20 = smov %s4300_s9  ;;  %21 = sbr.rel (!%p19_p2) target bundleno = 8 (0x8), region = 89 }
 0x365   :  { %3036 = vsyncpa [#allocation4], 1 }
 0x366   :  { %3038 = vsyncpa [#allocation4 + $0x1], 1 }
 0x367   :  { %3039 = vsyncpa [#allocation7], 1 }
 0x368   :  { %3040 = vsyncpa [#allocation5], 1 }
 0x369   :  { %3042 = vsyncpa [#allocation5 + $0x1], 1 }

</bundles_post_ra>
